<compile_context>
chip_gen: v7x
topology: tpu7x:2x2x1
jax: 0.10.0
libtpu: 0.0.40
codegen_flags: <defaults>
</compile_context>

<pallas_src>
import jax
import jax.numpy as jnp
from jax.experimental import pallas as pl
from jax.experimental.pallas import tpu as pltpu

# ---------------- scaled-down BERT config ----------------
VOCAB = 50
HIDDEN = 128
NUM_LAYERS = 2
NUM_HEADS = 4
HEAD_DIM = HIDDEN // NUM_HEADS
INTERMEDIATE = 256
MAX_POS = 32
TYPE_VOCAB = 2
LN_EPS = 1e-12


def _ln(x, g, b):
    """f32 LayerNorm over the last axis (gamma/beta are (1, H))."""
    mu = jnp.mean(x, axis=-1, keepdims=True)
    var = jnp.mean(jnp.square(x - mu), axis=-1, keepdims=True)
    inv = jax.lax.rsqrt(var + LN_EPS)
    return (x - mu) * inv * g + b


# ---------------- fully fused encoder kernel ----------------
def _encoder_kernel(lens_ref,                                   # scalar prefetch (SMEM)
                    emb_ref, mask_ref, embg_ref, embb_ref,
                    wqkv_ref, bqkv_ref, wo_ref, bo_ref, ln1g_ref, ln1b_ref,
                    wi_ref, bi_ref, wf_ref, bf_ref, ln2g_ref, ln2b_ref,
                    poolw_ref, poolb_ref,
                    out_ref, att_ref, pooled_ref):
    bb, S, H = emb_ref.shape          # examples per block, seq len, hidden
    g = pl.program_id(0)

    # ---- prologue: embedding LayerNorm on all bb*S rows (batch folded) ----
    h = _ln(emb_ref[...].reshape(bb * S, H), embg_ref[...], embb_ref[...])

    # Per-example attention probs collected across layers so a single
    # lane-dense (S, NUM_LAYERS*NUM_HEADS*S) = (16, 128) store happens at the end.
    p_all = [[] for _ in range(bb)]

    for li in range(NUM_LAYERS):
        # Fused Q/K/V projection over all bb*S rows: bf16 MXU, f32 accumulate.
        # 1/sqrt(HEAD_DIM) is pre-folded into the Q columns of wqkv/bqkv.
        qkv = jnp.dot(h.astype(jnp.bfloat16), wqkv_ref[li],
                      preferred_element_type=jnp.float32) + bqkv_ref[li]   # (bb*S, 3H)

        ctx_rows = []
        for ex in range(bb):                       # static loop over examples
            qkv_e = qkv[ex * S:(ex + 1) * S]       # (S, 3H)
            m_e = mask_ref[ex]                     # (1, S) additive mask
            ctx_heads = []
            for hd in range(NUM_HEADS):            # static loop over heads
                lo = hd * HEAD_DIM
                q_h = qkv_e[:, lo:lo + HEAD_DIM]                            # pre-scaled
                k_h = qkv_e[:, H + lo:H + lo + HEAD_DIM]
                v_h = qkv_e[:, 2 * H + lo:2 * H + lo + HEAD_DIM]

                # Q.K^T via dot_general contracting dim 1 of both (no transpose).
                s = jax.lax.dot_general(
                    q_h, k_h, (((1,), (1,)), ((), ())),
                    preferred_element_type=jnp.float32) + m_e
                s_max = jnp.max(s, axis=-1, keepdims=True)
                p = jnp.exp(s - s_max)
                p = p * pl.reciprocal(jnp.sum(p, axis=-1, keepdims=True),
                                      approx=True)
                p_all[ex].append(p)
                ctx_heads.append(jnp.dot(p, v_h,
                                         preferred_element_type=jnp.float32))
            # lane-dense (S, H) context assembled in vregs (no VMEM scratch)
            ctx_rows.append(jnp.concatenate(ctx_heads, axis=-1))
        ctx = jnp.concatenate(ctx_rows, axis=0)    # (bb*S, H)

        # attention output projection + residual + LN1
        attn_out = jnp.dot(ctx.astype(jnp.bfloat16), wo_ref[li],
                           preferred_element_type=jnp.float32) + bo_ref[li]
        h1 = _ln(attn_out + h, ln1g_ref[li], ln1b_ref[li])

        # FFN: wi -> gelu -> wf, residual + LN2
        # TODO(synk): HF BERT default gelu is the exact erf form; tanh
        # approximation used here for robust Mosaic lowering (small drift).
        inter = jax.nn.gelu(
            jnp.dot(h1.astype(jnp.bfloat16), wi_ref[li],
                    preferred_element_type=jnp.float32) + bi_ref[li],
            approximate=True)
        ffn = jnp.dot(inter.astype(jnp.bfloat16), wf_ref[li],
                      preferred_element_type=jnp.float32) + bf_ref[li]
        h = _ln(ffn + h1, ln2g_ref[li], ln2b_ref[li])

    # ---- epilogue: pooler on CLS rows (pos 0 is always inside the length) ----
    cls = jnp.concatenate([h[ex * S:ex * S + 1] for ex in range(bb)], axis=0)
    pooled = jnp.tanh(
        jnp.dot(cls.astype(jnp.bfloat16), poolw_ref[...],
                preferred_element_type=jnp.float32) + poolb_ref[...])
    pooled_ref[...] = pooled[:, None, :]

    # ---- epilogue: per-example length masking + lane-dense stores ----
    row_ids = jax.lax.broadcasted_iota(jnp.int32, (S, H), 0)
    for ex in range(bb):
        L = lens_ref[g * bb + ex]
        h_e = h[ex * S:(ex + 1) * S]
        out_ref[ex] = jnp.where(row_ids < L, h_e, 0.0)             # (S, 128)
        att_ref[ex] = jnp.concatenate(p_all[ex], axis=-1)          # (S, 128)


def _batch_blocks(batch):
    """v7x has 2 TensorCores -> keep a 2-way 'parallel' grid over the batch;
    single-TC chips (v5e/v6e) fold the whole batch into one block (grid=(1,))
    so dense matmuls see B*S rows."""
    try:
        kind = jax.devices()[0].device_kind.lower()
    except Exception:
        return 1
    n_tc = 2 if "v7" in kind else 1
    return n_tc if (n_tc > 1 and batch % n_tc == 0) else 1


# ---------------- full Encoder.forward equivalent ----------------
def encoder_forward(params, input_ids, lengths, att_mask):
    B, S = input_ids.shape
    H = HIDDEN
    L = NUM_LAYERS
    NHS = NUM_HEADS * S

    # embeddings: gather + add is JAX glue; LayerNorm is fused into the kernel
    we = jnp.take(params["word_emb"], input_ids, axis=0)          # (B, S, H)
    pe = params["pos_emb"][:S][None, :, :]                        # (1, S, H)
    te = params["type_emb"][0][None, None, :]                     # (1, 1, H)
    emb = (we + pe + te).astype(jnp.float32)                      # (B, S, H)

    # BERT-style additive attention mask: (1 - mask) * -10000, (B, 1, S)
    ext_mask = ((1.0 - att_mask.astype(jnp.float32)) * -10000.0).reshape(B, 1, S)

    n_blocks = _batch_blocks(B)
    bb = B // n_blocks

    def full(shape):
        return pl.BlockSpec(shape, lambda g, lens, _s=len(shape): (0,) * _s)

    out, att_flat, pooled = pl.pallas_call(
        _encoder_kernel,
        out_shape=(
            jax.ShapeDtypeStruct((B, S, H), jnp.float32),          # hidden states
            jax.ShapeDtypeStruct((B, S, L * NHS), jnp.float32),    # lane-dense att
            jax.ShapeDtypeStruct((B, 1, H), jnp.float32),          # pooled
        ),
        grid_spec=pltpu.PrefetchScalarGridSpec(
            num_scalar_prefetch=1,
            grid=(n_blocks,),
            in_specs=[
                pl.BlockSpec((bb, S, H), lambda g, lens: (g, 0, 0)),   # emb
                pl.BlockSpec((bb, 1, S), lambda g, lens: (g, 0, 0)),   # ext mask
                full((1, H)), full((1, H)),                            # emb LN g/b
                full((L, H, 3 * H)), full((L, 1, 3 * H)),              # wqkv, bqkv
                full((L, H, H)), full((L, 1, H)),                      # wo, bo
                full((L, 1, H)), full((L, 1, H)),                      # ln1 g/b
                full((L, H, INTERMEDIATE)), full((L, 1, INTERMEDIATE)),# wi, bi
                full((L, INTERMEDIATE, H)), full((L, 1, H)),           # wf, bf
                full((L, 1, H)), full((L, 1, H)),                      # ln2 g/b
                full((H, H)), full((1, H)),                            # pooler w/b
            ],
            out_specs=(
                pl.BlockSpec((bb, S, H), lambda g, lens: (g, 0, 0)),
                pl.BlockSpec((bb, S, L * NHS), lambda g, lens: (g, 0, 0)),
                pl.BlockSpec((bb, 1, H), lambda g, lens: (g, 0, 0)),
            ),
        ),
        compiler_params=pltpu.CompilerParams(
            dimension_semantics=("parallel",)),
    )(lengths, emb, ext_mask,
      params["emb_ln_g"], params["emb_ln_b"],
      params["wqkv"], params["bqkv"], params["wo"], params["bo"],
      params["ln1_g"], params["ln1_b"],
      params["wi"], params["bi"], params["wf"], params["bf"],
      params["ln2_g"], params["ln2_b"],
      params["pool_w"], params["pool_b"])

    # (B, S, L*NH*S) -> tuple of L x (B, NH, S, S)   (free XLA layout glue)
    att = att_flat.reshape(B, S, L, NUM_HEADS, S).transpose(2, 0, 3, 1, 4)
    atts = tuple(att[l] for l in range(L))
    pooled = pooled.reshape(B, H)

    # Old transformers BertModel(output_attentions=True) returns
    # (sequence_output, pooled_output, attentions) which the reference unpacks
    # as (hidden_states, past, att) -> the 'past' slot carries the pooled output.
    # TODO(synk): BertModel here does not produce past_key_values; docstring's
    # 'past' shape has no clean equivalent without use_cache semantics.
    return {"output": out, "past": pooled, "att": atts}


# ---------------- deterministic parameter init ----------------
def init_params(key):
    keys = iter(jax.random.split(key, 64))

    def nrm(shape, scale=0.02):
        return (scale * jax.random.normal(next(keys), shape)).astype(jnp.float32)

    att_scale = 1.0 / float(HEAD_DIM) ** 0.5
    wqkv, bqkv, wo, bo, ln1g, ln1b = [], [], [], [], [], []
    wi, bi, wf, bfin, ln2g, ln2b = [], [], [], [], [], []
    for _ in range(NUM_LAYERS):
        wq, wk, wv = nrm((HIDDEN, HIDDEN)), nrm((HIDDEN, HIDDEN)), nrm((HIDDEN, HIDDEN))
        # Q/K/V fused on the lane axis; 1/sqrt(dH) folded into the Q part.
        wqkv.append(jnp.concatenate([wq * att_scale, wk, wv], axis=1).astype(jnp.bfloat16))
        bqkv.append(jnp.zeros((1, 3 * HIDDEN), jnp.float32))
        wo.append(nrm((HIDDEN, HIDDEN)).astype(jnp.bfloat16))
        bo.append(jnp.zeros((1, HIDDEN), jnp.float32))
        ln1g.append(jnp.ones((1, HIDDEN), jnp.float32))
        ln1b.append(jnp.zeros((1, HIDDEN), jnp.float32))
        wi.append(nrm((HIDDEN, INTERMEDIATE)).astype(jnp.bfloat16))
        bi.append(jnp.zeros((1, INTERMEDIATE), jnp.float32))
        wf.append(nrm((INTERMEDIATE, HIDDEN)).astype(jnp.bfloat16))
        bfin.append(jnp.zeros((1, HIDDEN), jnp.float32))
        ln2g.append(jnp.ones((1, HIDDEN), jnp.float32))
        ln2b.append(jnp.zeros((1, HIDDEN), jnp.float32))

    stack = lambda xs: jnp.stack(xs, axis=0)
    return {
        "word_emb": nrm((VOCAB, HIDDEN)),
        "pos_emb": nrm((MAX_POS, HIDDEN)),
        "type_emb": nrm((TYPE_VOCAB, HIDDEN)),
        "emb_ln_g": jnp.ones((1, HIDDEN), jnp.float32),
        "emb_ln_b": jnp.zeros((1, HIDDEN), jnp.float32),
        "pool_w": nrm((HIDDEN, HIDDEN)).astype(jnp.bfloat16),
        "pool_b": jnp.zeros((1, HIDDEN), jnp.float32),
        "wqkv": stack(wqkv), "bqkv": stack(bqkv),
        "wo": stack(wo), "bo": stack(bo),
        "ln1_g": stack(ln1g), "ln1_b": stack(ln1b),
        "wi": stack(wi), "bi": stack(bi),
        "wf": stack(wf), "bf": stack(bfin),
        "ln2_g": stack(ln2g), "ln2_b": stack(ln2b),
    }


if __name__ == "__main__":
    key = jax.random.PRNGKey(0)
    pkey, ikey = jax.random.split(key)
    params = init_params(pkey)

    B, S = 2, 16
    input_ids = jax.random.randint(ikey, (B, S), 0, VOCAB, dtype=jnp.int32)
    lengths = jnp.array([16, 11], dtype=jnp.int32)
    att_mask = (jnp.arange(S)[None, :] < lengths[:, None]).astype(jnp.int32)

    out = encoder_forward(params, input_ids, lengths, att_mask)
    jax.block_until_ready(out)
    assert out["output"].shape == (B, S, HIDDEN)
    assert out["past"].shape == (B, HIDDEN)
    assert len(out["att"]) == NUM_LAYERS
    assert out["att"][0].shape == (B, NUM_HEADS, S, S)
    # padded positions (>= length) must be zeroed, as in the reference loop
    assert bool(jnp.all(out["output"][1, 11:, :] == 0.0))
    print("KERNEL_OK")
</pallas_src>

<mosaic_0001>
module attributes {stable_mosaic.version = 11 : i64} {
  func.func @_encoder_kernel(%arg0: i32, %arg1: memref<2xi32, #tpu.memory_space<smem>>, %arg2: memref<2x16x128xf32, #tpu.memory_space<vmem>>, %arg3: memref<2x1x16xf32, #tpu.memory_space<vmem>>, %arg4: memref<1x128xf32, #tpu.memory_space<vmem>>, %arg5: memref<1x128xf32, #tpu.memory_space<vmem>>, %arg6: memref<2x128x384xbf16, #tpu.memory_space<vmem>>, %arg7: memref<2x1x384xf32, #tpu.memory_space<vmem>>, %arg8: memref<2x128x128xbf16, #tpu.memory_space<vmem>>, %arg9: memref<2x1x128xf32, #tpu.memory_space<vmem>>, %arg10: memref<2x1x128xf32, #tpu.memory_space<vmem>>, %arg11: memref<2x1x128xf32, #tpu.memory_space<vmem>>, %arg12: memref<2x128x256xbf16, #tpu.memory_space<vmem>>, %arg13: memref<2x1x256xf32, #tpu.memory_space<vmem>>, %arg14: memref<2x256x128xbf16, #tpu.memory_space<vmem>>, %arg15: memref<2x1x128xf32, #tpu.memory_space<vmem>>, %arg16: memref<2x1x128xf32, #tpu.memory_space<vmem>>, %arg17: memref<2x1x128xf32, #tpu.memory_space<vmem>>, %arg18: memref<128x128xbf16, #tpu.memory_space<vmem>>, %arg19: memref<1x128xf32, #tpu.memory_space<vmem>>, %arg20: memref<2x16x128xf32, #tpu.memory_space<vmem>>, %arg21: memref<2x16x128xf32, #tpu.memory_space<vmem>>, %arg22: memref<2x1x128xf32, #tpu.memory_space<vmem>>) attributes {dimension_semantics = [#tpu.dimension_semantics<parallel>], iteration_bounds = array<i64: 1>, scalar_prefetch = 1 : i64, scratch_operands = 0 : i64, tpu.core_type = #tpu.core_type<tc>, window_params = [{transform_indices = @transform_0, window_bounds = array<i64: 2, 16, 128>}, {transform_indices = @transform_1, window_bounds = array<i64: 2, 1, 16>}, {pipeline_mode = #tpu.pipeline_mode<synchronous>, transform_indices = @transform_2, window_bounds = array<i64: 1, 128>}, {pipeline_mode = #tpu.pipeline_mode<synchronous>, transform_indices = @transform_3, window_bounds = array<i64: 1, 128>}, {pipeline_mode = #tpu.pipeline_mode<synchronous>, transform_indices = @transform_4, window_bounds = array<i64: 2, 128, 384>}, {pipeline_mode = #tpu.pipeline_mode<synchronous>, transform_indices = @transform_5, window_bounds = array<i64: 2, 1, 384>}, {pipeline_mode = #tpu.pipeline_mode<synchronous>, transform_indices = @transform_6, window_bounds = array<i64: 2, 128, 128>}, {pipeline_mode = #tpu.pipeline_mode<synchronous>, transform_indices = @transform_7, window_bounds = array<i64: 2, 1, 128>}, {pipeline_mode = #tpu.pipeline_mode<synchronous>, transform_indices = @transform_8, window_bounds = array<i64: 2, 1, 128>}, {pipeline_mode = #tpu.pipeline_mode<synchronous>, transform_indices = @transform_9, window_bounds = array<i64: 2, 1, 128>}, {pipeline_mode = #tpu.pipeline_mode<synchronous>, transform_indices = @transform_10, window_bounds = array<i64: 2, 128, 256>}, {pipeline_mode = #tpu.pipeline_mode<synchronous>, transform_indices = @transform_11, window_bounds = array<i64: 2, 1, 256>}, {pipeline_mode = #tpu.pipeline_mode<synchronous>, transform_indices = @transform_12, window_bounds = array<i64: 2, 256, 128>}, {pipeline_mode = #tpu.pipeline_mode<synchronous>, transform_indices = @transform_13, window_bounds = array<i64: 2, 1, 128>}, {pipeline_mode = #tpu.pipeline_mode<synchronous>, transform_indices = @transform_14, window_bounds = array<i64: 2, 1, 128>}, {pipeline_mode = #tpu.pipeline_mode<synchronous>, transform_indices = @transform_15, window_bounds = array<i64: 2, 1, 128>}, {pipeline_mode = #tpu.pipeline_mode<synchronous>, transform_indices = @transform_16, window_bounds = array<i64: 128, 128>}, {pipeline_mode = #tpu.pipeline_mode<synchronous>, transform_indices = @transform_17, window_bounds = array<i64: 1, 128>}, {transform_indices = @transform_18, window_bounds = array<i64: 2, 16, 128>}, {transform_indices = @transform_19, window_bounds = array<i64: 2, 16, 128>}, {transform_indices = @transform_20, window_bounds = array<i64: 2, 1, 128>}]} {
    %c0 = arith.constant 0 : index
    %c0_0 = arith.constant 0 : index
    %c0_1 = arith.constant 0 : index
    %0 = vector.load %arg2[%c0, %c0_0, %c0_1] : memref<2x16x128xf32, #tpu.memory_space<vmem>>, vector<2x16x128xf32>
    %1 = vector.shape_cast %0 : vector<2x16x128xf32> to vector<32x128xf32>
    %c0_2 = arith.constant 0 : index
    %c0_3 = arith.constant 0 : index
    %2 = vector.load %arg4[%c0_2, %c0_3] : memref<1x128xf32, #tpu.memory_space<vmem>>, vector<1x128xf32>
    %c0_4 = arith.constant 0 : index
    %c0_5 = arith.constant 0 : index
    %3 = vector.load %arg5[%c0_4, %c0_5] : memref<1x128xf32, #tpu.memory_space<vmem>>, vector<1x128xf32>
    %cst = arith.constant dense<0.000000e+00> : vector<32xf32>
    %4 = vector.multi_reduction <add>, %1, %cst [1] : vector<32x128xf32> to vector<32xf32>
    %5 = vector.shape_cast %4 : vector<32xf32> to vector<32x1xf32>
    %cst_6 = arith.constant 1.280000e+02 : f32
    %6 = vector.broadcast %cst_6 : f32 to vector<32x1xf32>
    %7 = arith.divf %5, %6 : vector<32x1xf32>
    %8 = vector.broadcast %7 : vector<32x1xf32> to vector<32x128xf32>
    %9 = arith.subf %1, %8 : vector<32x128xf32>
    %10 = arith.mulf %9, %9 : vector<32x128xf32>
    %cst_7 = arith.constant dense<0.000000e+00> : vector<32xf32>
    %11 = vector.multi_reduction <add>, %10, %cst_7 [1] : vector<32x128xf32> to vector<32xf32>
    %12 = vector.shape_cast %11 : vector<32xf32> to vector<32x1xf32>
    %cst_8 = arith.constant 1.280000e+02 : f32
    %13 = vector.broadcast %cst_8 : f32 to vector<32x1xf32>
    %14 = arith.divf %12, %13 : vector<32x1xf32>
    %cst_9 = arith.constant 9.99999996E-13 : f32
    %15 = vector.broadcast %cst_9 : f32 to vector<32x1xf32>
    %16 = arith.addf %14, %15 : vector<32x1xf32>
    %17 = math.rsqrt %16 : vector<32x1xf32>
    %18 = vector.broadcast %7 : vector<32x1xf32> to vector<32x128xf32>
    %19 = arith.subf %1, %18 : vector<32x128xf32>
    %20 = vector.broadcast %17 : vector<32x1xf32> to vector<32x128xf32>
    %21 = arith.mulf %19, %20 : vector<32x128xf32>
    %22 = vector.broadcast %2 : vector<1x128xf32> to vector<32x128xf32>
    %23 = arith.mulf %21, %22 : vector<32x128xf32>
    %24 = vector.broadcast %3 : vector<1x128xf32> to vector<32x128xf32>
    %25 = arith.addf %23, %24 : vector<32x128xf32>
    %26 = arith.truncf %25 : vector<32x128xf32> to vector<32x128xbf16>
    %c0_10 = arith.constant 0 : index
    %c0_11 = arith.constant 0 : index
    %c0_12 = arith.constant 0 : index
    %27 = vector.load %arg6[%c0_10, %c0_11, %c0_12] : memref<2x128x384xbf16, #tpu.memory_space<vmem>>, vector<1x128x384xbf16>
    %28 = vector.shape_cast %27 : vector<1x128x384xbf16> to vector<128x384xbf16>
    %cst_13 = arith.constant dense<0.000000e+00> : vector<32x384xf32>
    %29 = tpu.matmul %26, %28, %cst_13 {dimension_numbers = #tpu.dot_dimension_numbers<[1], [0], [0], [1], [0, 0, 1, 1], [], []>} : vector<32x128xbf16>, vector<128x384xbf16>, vector<32x384xf32> -> vector<32x384xf32>
    %c0_14 = arith.constant 0 : index
    %c0_15 = arith.constant 0 : index
    %c0_16 = arith.constant 0 : index
    %30 = vector.load %arg7[%c0_14, %c0_15, %c0_16] : memref<2x1x384xf32, #tpu.memory_space<vmem>>, vector<1x1x384xf32>
    %31 = vector.shape_cast %30 : vector<1x1x384xf32> to vector<1x384xf32>
    %32 = vector.broadcast %31 : vector<1x384xf32> to vector<32x384xf32>
    %33 = arith.addf %29, %32 : vector<32x384xf32>
    %34 = vector.extract_strided_slice %33 {offsets = [0, 0], sizes = [16, 384], strides = [1, 1]} : vector<32x384xf32> to vector<16x384xf32>
    %c0_17 = arith.constant 0 : index
    %c0_18 = arith.constant 0 : index
    %c0_19 = arith.constant 0 : index
    %35 = vector.load %arg3[%c0_17, %c0_18, %c0_19] : memref<2x1x16xf32, #tpu.memory_space<vmem>>, vector<1x1x16xf32>
    %36 = vector.shape_cast %35 : vector<1x1x16xf32> to vector<1x16xf32>
    %37 = vector.extract_strided_slice %34 {offsets = [0, 0], sizes = [16, 32], strides = [1, 1]} : vector<16x384xf32> to vector<16x32xf32>
    %38 = vector.extract_strided_slice %34 {offsets = [0, 128], sizes = [16, 32], strides = [1, 1]} : vector<16x384xf32> to vector<16x32xf32>
    %39 = vector.extract_strided_slice %34 {offsets = [0, 256], sizes = [16, 32], strides = [1, 1]} : vector<16x384xf32> to vector<16x32xf32>
    %cst_20 = arith.constant dense<0.000000e+00> : vector<16x16xf32>
    %40 = tpu.matmul %37, %38, %cst_20 {dimension_numbers = #tpu.dot_dimension_numbers<[1], [1], [0], [0], [0, 0, 1, 0], [], []>} : vector<16x32xf32>, vector<16x32xf32>, vector<16x16xf32> -> vector<16x16xf32>
    %41 = vector.broadcast %36 : vector<1x16xf32> to vector<16x16xf32>
    %42 = arith.addf %40, %41 : vector<16x16xf32>
    %cst_21 = arith.constant dense<0xFF800000> : vector<16xf32>
    %43 = vector.multi_reduction <maximumf>, %42, %cst_21 [1] : vector<16x16xf32> to vector<16xf32>
    %44 = vector.shape_cast %43 : vector<16xf32> to vector<16x1xf32>
    %45 = vector.broadcast %44 : vector<16x1xf32> to vector<16x16xf32>
    %46 = arith.subf %42, %45 : vector<16x16xf32>
    %47 = math.exp %46 : vector<16x16xf32>
    %cst_22 = arith.constant dense<0.000000e+00> : vector<16xf32>
    %48 = vector.multi_reduction <add>, %47, %cst_22 [1] : vector<16x16xf32> to vector<16xf32>
    %49 = vector.shape_cast %48 : vector<16xf32> to vector<16x1xf32>
    %50 = tpu.reciprocal %49 {approx = true} : vector<16x1xf32> -> vector<16x1xf32>
    %51 = vector.broadcast %50 : vector<16x1xf32> to vector<16x16xf32>
    %52 = arith.mulf %47, %51 : vector<16x16xf32>
    %cst_23 = arith.constant dense<0.000000e+00> : vector<16x32xf32>
    %53 = tpu.matmul %52, %39, %cst_23 {dimension_numbers = #tpu.dot_dimension_numbers<[1], [0], [0], [1], [0, 0, 1, 1], [], []>} : vector<16x16xf32>, vector<16x32xf32>, vector<16x32xf32> -> vector<16x32xf32>
    %54 = vector.extract_strided_slice %34 {offsets = [0, 32], sizes = [16, 32], strides = [1, 1]} : vector<16x384xf32> to vector<16x32xf32>
    %55 = vector.extract_strided_slice %34 {offsets = [0, 160], sizes = [16, 32], strides = [1, 1]} : vector<16x384xf32> to vector<16x32xf32>
    %56 = vector.extract_strided_slice %34 {offsets = [0, 288], sizes = [16, 32], strides = [1, 1]} : vector<16x384xf32> to vector<16x32xf32>
    %cst_24 = arith.constant dense<0.000000e+00> : vector<16x16xf32>
    %57 = tpu.matmul %54, %55, %cst_24 {dimension_numbers = #tpu.dot_dimension_numbers<[1], [1], [0], [0], [0, 0, 1, 0], [], []>} : vector<16x32xf32>, vector<16x32xf32>, vector<16x16xf32> -> vector<16x16xf32>
    %58 = vector.broadcast %36 : vector<1x16xf32> to vector<16x16xf32>
    %59 = arith.addf %57, %58 : vector<16x16xf32>
    %cst_25 = arith.constant dense<0xFF800000> : vector<16xf32>
    %60 = vector.multi_reduction <maximumf>, %59, %cst_25 [1] : vector<16x16xf32> to vector<16xf32>
    %61 = vector.shape_cast %60 : vector<16xf32> to vector<16x1xf32>
    %62 = vector.broadcast %61 : vector<16x1xf32> to vector<16x16xf32>
    %63 = arith.subf %59, %62 : vector<16x16xf32>
    %64 = math.exp %63 : vector<16x16xf32>
    %cst_26 = arith.constant dense<0.000000e+00> : vector<16xf32>
    %65 = vector.multi_reduction <add>, %64, %cst_26 [1] : vector<16x16xf32> to vector<16xf32>
    %66 = vector.shape_cast %65 : vector<16xf32> to vector<16x1xf32>
    %67 = tpu.reciprocal %66 {approx = true} : vector<16x1xf32> -> vector<16x1xf32>
    %68 = vector.broadcast %67 : vector<16x1xf32> to vector<16x16xf32>
    %69 = arith.mulf %64, %68 : vector<16x16xf32>
    %cst_27 = arith.constant dense<0.000000e+00> : vector<16x32xf32>
    %70 = tpu.matmul %69, %56, %cst_27 {dimension_numbers = #tpu.dot_dimension_numbers<[1], [0], [0], [1], [0, 0, 1, 1], [], []>} : vector<16x16xf32>, vector<16x32xf32>, vector<16x32xf32> -> vector<16x32xf32>
    %71 = vector.extract_strided_slice %34 {offsets = [0, 64], sizes = [16, 32], strides = [1, 1]} : vector<16x384xf32> to vector<16x32xf32>
    %72 = vector.extract_strided_slice %34 {offsets = [0, 192], sizes = [16, 32], strides = [1, 1]} : vector<16x384xf32> to vector<16x32xf32>
    %73 = vector.extract_strided_slice %34 {offsets = [0, 320], sizes = [16, 32], strides = [1, 1]} : vector<16x384xf32> to vector<16x32xf32>
    %cst_28 = arith.constant dense<0.000000e+00> : vector<16x16xf32>
    %74 = tpu.matmul %71, %72, %cst_28 {dimension_numbers = #tpu.dot_dimension_numbers<[1], [1], [0], [0], [0, 0, 1, 0], [], []>} : vector<16x32xf32>, vector<16x32xf32>, vector<16x16xf32> -> vector<16x16xf32>
    %75 = vector.broadcast %36 : vector<1x16xf32> to vector<16x16xf32>
    %76 = arith.addf %74, %75 : vector<16x16xf32>
    %cst_29 = arith.constant dense<0xFF800000> : vector<16xf32>
    %77 = vector.multi_reduction <maximumf>, %76, %cst_29 [1] : vector<16x16xf32> to vector<16xf32>
    %78 = vector.shape_cast %77 : vector<16xf32> to vector<16x1xf32>
    %79 = vector.broadcast %78 : vector<16x1xf32> to vector<16x16xf32>
    %80 = arith.subf %76, %79 : vector<16x16xf32>
    %81 = math.exp %80 : vector<16x16xf32>
    %cst_30 = arith.constant dense<0.000000e+00> : vector<16xf32>
    %82 = vector.multi_reduction <add>, %81, %cst_30 [1] : vector<16x16xf32> to vector<16xf32>
    %83 = vector.shape_cast %82 : vector<16xf32> to vector<16x1xf32>
    %84 = tpu.reciprocal %83 {approx = true} : vector<16x1xf32> -> vector<16x1xf32>
    %85 = vector.broadcast %84 : vector<16x1xf32> to vector<16x16xf32>
    %86 = arith.mulf %81, %85 : vector<16x16xf32>
    %cst_31 = arith.constant dense<0.000000e+00> : vector<16x32xf32>
    %87 = tpu.matmul %86, %73, %cst_31 {dimension_numbers = #tpu.dot_dimension_numbers<[1], [0], [0], [1], [0, 0, 1, 1], [], []>} : vector<16x16xf32>, vector<16x32xf32>, vector<16x32xf32> -> vector<16x32xf32>
    %88 = vector.extract_strided_slice %34 {offsets = [0, 96], sizes = [16, 32], strides = [1, 1]} : vector<16x384xf32> to vector<16x32xf32>
    %89 = vector.extract_strided_slice %34 {offsets = [0, 224], sizes = [16, 32], strides = [1, 1]} : vector<16x384xf32> to vector<16x32xf32>
    %90 = vector.extract_strided_slice %34 {offsets = [0, 352], sizes = [16, 32], strides = [1, 1]} : vector<16x384xf32> to vector<16x32xf32>
    %cst_32 = arith.constant dense<0.000000e+00> : vector<16x16xf32>
    %91 = tpu.matmul %88, %89, %cst_32 {dimension_numbers = #tpu.dot_dimension_numbers<[1], [1], [0], [0], [0, 0, 1, 0], [], []>} : vector<16x32xf32>, vector<16x32xf32>, vector<16x16xf32> -> vector<16x16xf32>
    %92 = vector.broadcast %36 : vector<1x16xf32> to vector<16x16xf32>
    %93 = arith.addf %91, %92 : vector<16x16xf32>
    %cst_33 = arith.constant dense<0xFF800000> : vector<16xf32>
    %94 = vector.multi_reduction <maximumf>, %93, %cst_33 [1] : vector<16x16xf32> to vector<16xf32>
    %95 = vector.shape_cast %94 : vector<16xf32> to vector<16x1xf32>
    %96 = vector.broadcast %95 : vector<16x1xf32> to vector<16x16xf32>
    %97 = arith.subf %93, %96 : vector<16x16xf32>
    %98 = math.exp %97 : vector<16x16xf32>
    %cst_34 = arith.constant dense<0.000000e+00> : vector<16xf32>
    %99 = vector.multi_reduction <add>, %98, %cst_34 [1] : vector<16x16xf32> to vector<16xf32>
    %100 = vector.shape_cast %99 : vector<16xf32> to vector<16x1xf32>
    %101 = tpu.reciprocal %100 {approx = true} : vector<16x1xf32> -> vector<16x1xf32>
    %102 = vector.broadcast %101 : vector<16x1xf32> to vector<16x16xf32>
    %103 = arith.mulf %98, %102 : vector<16x16xf32>
    %cst_35 = arith.constant dense<0.000000e+00> : vector<16x32xf32>
    %104 = tpu.matmul %103, %90, %cst_35 {dimension_numbers = #tpu.dot_dimension_numbers<[1], [0], [0], [1], [0, 0, 1, 1], [], []>} : vector<16x16xf32>, vector<16x32xf32>, vector<16x32xf32> -> vector<16x32xf32>
    %105 = tpu.concatenate %53, %70, %87, %104 in 1 : vector<16x32xf32>, vector<16x32xf32>, vector<16x32xf32>, vector<16x32xf32> -> vector<16x128xf32>
    %106 = vector.extract_strided_slice %33 {offsets = [16, 0], sizes = [16, 384], strides = [1, 1]} : vector<32x384xf32> to vector<16x384xf32>
    %c1 = arith.constant 1 : index
    %c0_36 = arith.constant 0 : index
    %c0_37 = arith.constant 0 : index
    %107 = vector.load %arg3[%c1, %c0_36, %c0_37] : memref<2x1x16xf32, #tpu.memory_space<vmem>>, vector<1x1x16xf32>
    %108 = vector.shape_cast %107 : vector<1x1x16xf32> to vector<1x16xf32>
    %109 = vector.extract_strided_slice %106 {offsets = [0, 0], sizes = [16, 32], strides = [1, 1]} : vector<16x384xf32> to vector<16x32xf32>
    %110 = vector.extract_strided_slice %106 {offsets = [0, 128], sizes = [16, 32], strides = [1, 1]} : vector<16x384xf32> to vector<16x32xf32>
    %111 = vector.extract_strided_slice %106 {offsets = [0, 256], sizes = [16, 32], strides = [1, 1]} : vector<16x384xf32> to vector<16x32xf32>
    %cst_38 = arith.constant dense<0.000000e+00> : vector<16x16xf32>
    %112 = tpu.matmul %109, %110, %cst_38 {dimension_numbers = #tpu.dot_dimension_numbers<[1], [1], [0], [0], [0, 0, 1, 0], [], []>} : vector<16x32xf32>, vector<16x32xf32>, vector<16x16xf32> -> vector<16x16xf32>
    %113 = vector.broadcast %108 : vector<1x16xf32> to vector<16x16xf32>
    %114 = arith.addf %112, %113 : vector<16x16xf32>
    %cst_39 = arith.constant dense<0xFF800000> : vector<16xf32>
    %115 = vector.multi_reduction <maximumf>, %114, %cst_39 [1] : vector<16x16xf32> to vector<16xf32>
    %116 = vector.shape_cast %115 : vector<16xf32> to vector<16x1xf32>
    %117 = vector.broadcast %116 : vector<16x1xf32> to vector<16x16xf32>
    %118 = arith.subf %114, %117 : vector<16x16xf32>
    %119 = math.exp %118 : vector<16x16xf32>
    %cst_40 = arith.constant dense<0.000000e+00> : vector<16xf32>
    %120 = vector.multi_reduction <add>, %119, %cst_40 [1] : vector<16x16xf32> to vector<16xf32>
    %121 = vector.shape_cast %120 : vector<16xf32> to vector<16x1xf32>
    %122 = tpu.reciprocal %121 {approx = true} : vector<16x1xf32> -> vector<16x1xf32>
    %123 = vector.broadcast %122 : vector<16x1xf32> to vector<16x16xf32>
    %124 = arith.mulf %119, %123 : vector<16x16xf32>
    %cst_41 = arith.constant dense<0.000000e+00> : vector<16x32xf32>
    %125 = tpu.matmul %124, %111, %cst_41 {dimension_numbers = #tpu.dot_dimension_numbers<[1], [0], [0], [1], [0, 0, 1, 1], [], []>} : vector<16x16xf32>, vector<16x32xf32>, vector<16x32xf32> -> vector<16x32xf32>
    %126 = vector.extract_strided_slice %106 {offsets = [0, 32], sizes = [16, 32], strides = [1, 1]} : vector<16x384xf32> to vector<16x32xf32>
    %127 = vector.extract_strided_slice %106 {offsets = [0, 160], sizes = [16, 32], strides = [1, 1]} : vector<16x384xf32> to vector<16x32xf32>
    %128 = vector.extract_strided_slice %106 {offsets = [0, 288], sizes = [16, 32], strides = [1, 1]} : vector<16x384xf32> to vector<16x32xf32>
    %cst_42 = arith.constant dense<0.000000e+00> : vector<16x16xf32>
    %129 = tpu.matmul %126, %127, %cst_42 {dimension_numbers = #tpu.dot_dimension_numbers<[1], [1], [0], [0], [0, 0, 1, 0], [], []>} : vector<16x32xf32>, vector<16x32xf32>, vector<16x16xf32> -> vector<16x16xf32>
    %130 = vector.broadcast %108 : vector<1x16xf32> to vector<16x16xf32>
    %131 = arith.addf %129, %130 : vector<16x16xf32>
    %cst_43 = arith.constant dense<0xFF800000> : vector<16xf32>
    %132 = vector.multi_reduction <maximumf>, %131, %cst_43 [1] : vector<16x16xf32> to vector<16xf32>
    %133 = vector.shape_cast %132 : vector<16xf32> to vector<16x1xf32>
    %134 = vector.broadcast %133 : vector<16x1xf32> to vector<16x16xf32>
    %135 = arith.subf %131, %134 : vector<16x16xf32>
    %136 = math.exp %135 : vector<16x16xf32>
    %cst_44 = arith.constant dense<0.000000e+00> : vector<16xf32>
    %137 = vector.multi_reduction <add>, %136, %cst_44 [1] : vector<16x16xf32> to vector<16xf32>
    %138 = vector.shape_cast %137 : vector<16xf32> to vector<16x1xf32>
    %139 = tpu.reciprocal %138 {approx = true} : vector<16x1xf32> -> vector<16x1xf32>
    %140 = vector.broadcast %139 : vector<16x1xf32> to vector<16x16xf32>
    %141 = arith.mulf %136, %140 : vector<16x16xf32>
    %cst_45 = arith.constant dense<0.000000e+00> : vector<16x32xf32>
    %142 = tpu.matmul %141, %128, %cst_45 {dimension_numbers = #tpu.dot_dimension_numbers<[1], [0], [0], [1], [0, 0, 1, 1], [], []>} : vector<16x16xf32>, vector<16x32xf32>, vector<16x32xf32> -> vector<16x32xf32>
    %143 = vector.extract_strided_slice %106 {offsets = [0, 64], sizes = [16, 32], strides = [1, 1]} : vector<16x384xf32> to vector<16x32xf32>
    %144 = vector.extract_strided_slice %106 {offsets = [0, 192], sizes = [16, 32], strides = [1, 1]} : vector<16x384xf32> to vector<16x32xf32>
    %145 = vector.extract_strided_slice %106 {offsets = [0, 320], sizes = [16, 32], strides = [1, 1]} : vector<16x384xf32> to vector<16x32xf32>
    %cst_46 = arith.constant dense<0.000000e+00> : vector<16x16xf32>
    %146 = tpu.matmul %143, %144, %cst_46 {dimension_numbers = #tpu.dot_dimension_numbers<[1], [1], [0], [0], [0, 0, 1, 0], [], []>} : vector<16x32xf32>, vector<16x32xf32>, vector<16x16xf32> -> vector<16x16xf32>
    %147 = vector.broadcast %108 : vector<1x16xf32> to vector<16x16xf32>
    %148 = arith.addf %146, %147 : vector<16x16xf32>
    %cst_47 = arith.constant dense<0xFF800000> : vector<16xf32>
    %149 = vector.multi_reduction <maximumf>, %148, %cst_47 [1] : vector<16x16xf32> to vector<16xf32>
    %150 = vector.shape_cast %149 : vector<16xf32> to vector<16x1xf32>
    %151 = vector.broadcast %150 : vector<16x1xf32> to vector<16x16xf32>
    %152 = arith.subf %148, %151 : vector<16x16xf32>
    %153 = math.exp %152 : vector<16x16xf32>
    %cst_48 = arith.constant dense<0.000000e+00> : vector<16xf32>
    %154 = vector.multi_reduction <add>, %153, %cst_48 [1] : vector<16x16xf32> to vector<16xf32>
    %155 = vector.shape_cast %154 : vector<16xf32> to vector<16x1xf32>
    %156 = tpu.reciprocal %155 {approx = true} : vector<16x1xf32> -> vector<16x1xf32>
    %157 = vector.broadcast %156 : vector<16x1xf32> to vector<16x16xf32>
    %158 = arith.mulf %153, %157 : vector<16x16xf32>
    %cst_49 = arith.constant dense<0.000000e+00> : vector<16x32xf32>
    %159 = tpu.matmul %158, %145, %cst_49 {dimension_numbers = #tpu.dot_dimension_numbers<[1], [0], [0], [1], [0, 0, 1, 1], [], []>} : vector<16x16xf32>, vector<16x32xf32>, vector<16x32xf32> -> vector<16x32xf32>
    %160 = vector.extract_strided_slice %106 {offsets = [0, 96], sizes = [16, 32], strides = [1, 1]} : vector<16x384xf32> to vector<16x32xf32>
    %161 = vector.extract_strided_slice %106 {offsets = [0, 224], sizes = [16, 32], strides = [1, 1]} : vector<16x384xf32> to vector<16x32xf32>
    %162 = vector.extract_strided_slice %106 {offsets = [0, 352], sizes = [16, 32], strides = [1, 1]} : vector<16x384xf32> to vector<16x32xf32>
    %cst_50 = arith.constant dense<0.000000e+00> : vector<16x16xf32>
    %163 = tpu.matmul %160, %161, %cst_50 {dimension_numbers = #tpu.dot_dimension_numbers<[1], [1], [0], [0], [0, 0, 1, 0], [], []>} : vector<16x32xf32>, vector<16x32xf32>, vector<16x16xf32> -> vector<16x16xf32>
    %164 = vector.broadcast %108 : vector<1x16xf32> to vector<16x16xf32>
    %165 = arith.addf %163, %164 : vector<16x16xf32>
    %cst_51 = arith.constant dense<0xFF800000> : vector<16xf32>
    %166 = vector.multi_reduction <maximumf>, %165, %cst_51 [1] : vector<16x16xf32> to vector<16xf32>
    %167 = vector.shape_cast %166 : vector<16xf32> to vector<16x1xf32>
    %168 = vector.broadcast %167 : vector<16x1xf32> to vector<16x16xf32>
    %169 = arith.subf %165, %168 : vector<16x16xf32>
    %170 = math.exp %169 : vector<16x16xf32>
    %cst_52 = arith.constant dense<0.000000e+00> : vector<16xf32>
    %171 = vector.multi_reduction <add>, %170, %cst_52 [1] : vector<16x16xf32> to vector<16xf32>
    %172 = vector.shape_cast %171 : vector<16xf32> to vector<16x1xf32>
    %173 = tpu.reciprocal %172 {approx = true} : vector<16x1xf32> -> vector<16x1xf32>
    %174 = vector.broadcast %173 : vector<16x1xf32> to vector<16x16xf32>
    %175 = arith.mulf %170, %174 : vector<16x16xf32>
    %cst_53 = arith.constant dense<0.000000e+00> : vector<16x32xf32>
    %176 = tpu.matmul %175, %162, %cst_53 {dimension_numbers = #tpu.dot_dimension_numbers<[1], [0], [0], [1], [0, 0, 1, 1], [], []>} : vector<16x16xf32>, vector<16x32xf32>, vector<16x32xf32> -> vector<16x32xf32>
    %177 = tpu.concatenate %125, %142, %159, %176 in 1 : vector<16x32xf32>, vector<16x32xf32>, vector<16x32xf32>, vector<16x32xf32> -> vector<16x128xf32>
    %178 = tpu.concatenate %105, %177 in 0 : vector<16x128xf32>, vector<16x128xf32> -> vector<32x128xf32>
    %179 = arith.truncf %178 : vector<32x128xf32> to vector<32x128xbf16>
    %c0_54 = arith.constant 0 : index
    %c0_55 = arith.constant 0 : index
    %c0_56 = arith.constant 0 : index
    %180 = vector.load %arg8[%c0_54, %c0_55, %c0_56] : memref<2x128x128xbf16, #tpu.memory_space<vmem>>, vector<1x128x128xbf16>
    %181 = vector.shape_cast %180 : vector<1x128x128xbf16> to vector<128x128xbf16>
    %cst_57 = arith.constant dense<0.000000e+00> : vector<32x128xf32>
    %182 = tpu.matmul %179, %181, %cst_57 {dimension_numbers = #tpu.dot_dimension_numbers<[1], [0], [0], [1], [0, 0, 1, 1], [], []>} : vector<32x128xbf16>, vector<128x128xbf16>, vector<32x128xf32> -> vector<32x128xf32>
    %c0_58 = arith.constant 0 : index
    %c0_59 = arith.constant 0 : index
    %c0_60 = arith.constant 0 : index
    %183 = vector.load %arg9[%c0_58, %c0_59, %c0_60] : memref<2x1x128xf32, #tpu.memory_space<vmem>>, vector<1x1x128xf32>
    %184 = vector.shape_cast %183 : vector<1x1x128xf32> to vector<1x128xf32>
    %185 = vector.broadcast %184 : vector<1x128xf32> to vector<32x128xf32>
    %186 = arith.addf %182, %185 : vector<32x128xf32>
    %187 = arith.addf %186, %25 : vector<32x128xf32>
    %c0_61 = arith.constant 0 : index
    %c0_62 = arith.constant 0 : index
    %c0_63 = arith.constant 0 : index
    %188 = vector.load %arg10[%c0_61, %c0_62, %c0_63] : memref<2x1x128xf32, #tpu.memory_space<vmem>>, vector<1x1x128xf32>
    %189 = vector.shape_cast %188 : vector<1x1x128xf32> to vector<1x128xf32>
    %c0_64 = arith.constant 0 : index
    %c0_65 = arith.constant 0 : index
    %c0_66 = arith.constant 0 : index
    %190 = vector.load %arg11[%c0_64, %c0_65, %c0_66] : memref<2x1x128xf32, #tpu.memory_space<vmem>>, vector<1x1x128xf32>
    %191 = vector.shape_cast %190 : vector<1x1x128xf32> to vector<1x128xf32>
    %cst_67 = arith.constant dense<0.000000e+00> : vector<32xf32>
    %192 = vector.multi_reduction <add>, %187, %cst_67 [1] : vector<32x128xf32> to vector<32xf32>
    %193 = vector.shape_cast %192 : vector<32xf32> to vector<32x1xf32>
    %cst_68 = arith.constant 1.280000e+02 : f32
    %194 = vector.broadcast %cst_68 : f32 to vector<32x1xf32>
    %195 = arith.divf %193, %194 : vector<32x1xf32>
    %196 = vector.broadcast %195 : vector<32x1xf32> to vector<32x128xf32>
    %197 = arith.subf %187, %196 : vector<32x128xf32>
    %198 = arith.mulf %197, %197 : vector<32x128xf32>
    %cst_69 = arith.constant dense<0.000000e+00> : vector<32xf32>
    %199 = vector.multi_reduction <add>, %198, %cst_69 [1] : vector<32x128xf32> to vector<32xf32>
    %200 = vector.shape_cast %199 : vector<32xf32> to vector<32x1xf32>
    %cst_70 = arith.constant 1.280000e+02 : f32
    %201 = vector.broadcast %cst_70 : f32 to vector<32x1xf32>
    %202 = arith.divf %200, %201 : vector<32x1xf32>
    %cst_71 = arith.constant 9.99999996E-13 : f32
    %203 = vector.broadcast %cst_71 : f32 to vector<32x1xf32>
    %204 = arith.addf %202, %203 : vector<32x1xf32>
    %205 = math.rsqrt %204 : vector<32x1xf32>
    %206 = vector.broadcast %195 : vector<32x1xf32> to vector<32x128xf32>
    %207 = arith.subf %187, %206 : vector<32x128xf32>
    %208 = vector.broadcast %205 : vector<32x1xf32> to vector<32x128xf32>
    %209 = arith.mulf %207, %208 : vector<32x128xf32>
    %210 = vector.broadcast %189 : vector<1x128xf32> to vector<32x128xf32>
    %211 = arith.mulf %209, %210 : vector<32x128xf32>
    %212 = vector.broadcast %191 : vector<1x128xf32> to vector<32x128xf32>
    %213 = arith.addf %211, %212 : vector<32x128xf32>
    %214 = arith.truncf %213 : vector<32x128xf32> to vector<32x128xbf16>
    %c0_72 = arith.constant 0 : index
    %c0_73 = arith.constant 0 : index
    %c0_74 = arith.constant 0 : index
    %215 = vector.load %arg12[%c0_72, %c0_73, %c0_74] : memref<2x128x256xbf16, #tpu.memory_space<vmem>>, vector<1x128x256xbf16>
    %216 = vector.shape_cast %215 : vector<1x128x256xbf16> to vector<128x256xbf16>
    %cst_75 = arith.constant dense<0.000000e+00> : vector<32x256xf32>
    %217 = tpu.matmul %214, %216, %cst_75 {dimension_numbers = #tpu.dot_dimension_numbers<[1], [0], [0], [1], [0, 0, 1, 1], [], []>} : vector<32x128xbf16>, vector<128x256xbf16>, vector<32x256xf32> -> vector<32x256xf32>
    %c0_76 = arith.constant 0 : index
    %c0_77 = arith.constant 0 : index
    %c0_78 = arith.constant 0 : index
    %218 = vector.load %arg13[%c0_76, %c0_77, %c0_78] : memref<2x1x256xf32, #tpu.memory_space<vmem>>, vector<1x1x256xf32>
    %219 = vector.shape_cast %218 : vector<1x1x256xf32> to vector<1x256xf32>
    %220 = vector.broadcast %219 : vector<1x256xf32> to vector<32x256xf32>
    %221 = arith.addf %217, %220 : vector<32x256xf32>
    %222 = arith.mulf %221, %221 : vector<32x256xf32>
    %223 = arith.mulf %221, %222 : vector<32x256xf32>
    %cst_79 = arith.constant 4.471500e-02 : f32
    %224 = vector.broadcast %cst_79 : f32 to vector<32x256xf32>
    %225 = arith.mulf %224, %223 : vector<32x256xf32>
    %226 = arith.addf %221, %225 : vector<32x256xf32>
    %cst_80 = arith.constant 0.797884583 : f32
    %227 = vector.broadcast %cst_80 : f32 to vector<32x256xf32>
    %228 = arith.mulf %227, %226 : vector<32x256xf32>
    %229 = math.tanh %228 : vector<32x256xf32>
    %cst_81 = arith.constant 1.000000e+00 : f32
    %230 = vector.broadcast %cst_81 : f32 to vector<32x256xf32>
    %231 = arith.addf %230, %229 : vector<32x256xf32>
    %cst_82 = arith.constant 5.000000e-01 : f32
    %232 = vector.broadcast %cst_82 : f32 to vector<32x256xf32>
    %233 = arith.mulf %232, %231 : vector<32x256xf32>
    %234 = arith.mulf %221, %233 : vector<32x256xf32>
    %235 = arith.truncf %234 : vector<32x256xf32> to vector<32x256xbf16>
    %c0_83 = arith.constant 0 : index
    %c0_84 = arith.constant 0 : index
    %c0_85 = arith.constant 0 : index
    %236 = vector.load %arg14[%c0_83, %c0_84, %c0_85] : memref<2x256x128xbf16, #tpu.memory_space<vmem>>, vector<1x256x128xbf16>
    %237 = vector.shape_cast %236 : vector<1x256x128xbf16> to vector<256x128xbf16>
    %cst_86 = arith.constant dense<0.000000e+00> : vector<32x128xf32>
    %238 = tpu.matmul %235, %237, %cst_86 {dimension_numbers = #tpu.dot_dimension_numbers<[1], [0], [0], [1], [0, 0, 1, 1], [], []>} : vector<32x256xbf16>, vector<256x128xbf16>, vector<32x128xf32> -> vector<32x128xf32>
    %c0_87 = arith.constant 0 : index
    %c0_88 = arith.constant 0 : index
    %c0_89 = arith.constant 0 : index
    %239 = vector.load %arg15[%c0_87, %c0_88, %c0_89] : memref<2x1x128xf32, #tpu.memory_space<vmem>>, vector<1x1x128xf32>
    %240 = vector.shape_cast %239 : vector<1x1x128xf32> to vector<1x128xf32>
    %241 = vector.broadcast %240 : vector<1x128xf32> to vector<32x128xf32>
    %242 = arith.addf %238, %241 : vector<32x128xf32>
    %243 = arith.addf %242, %213 : vector<32x128xf32>
    %c0_90 = arith.constant 0 : index
    %c0_91 = arith.constant 0 : index
    %c0_92 = arith.constant 0 : index
    %244 = vector.load %arg16[%c0_90, %c0_91, %c0_92] : memref<2x1x128xf32, #tpu.memory_space<vmem>>, vector<1x1x128xf32>
    %245 = vector.shape_cast %244 : vector<1x1x128xf32> to vector<1x128xf32>
    %c0_93 = arith.constant 0 : index
    %c0_94 = arith.constant 0 : index
    %c0_95 = arith.constant 0 : index
    %246 = vector.load %arg17[%c0_93, %c0_94, %c0_95] : memref<2x1x128xf32, #tpu.memory_space<vmem>>, vector<1x1x128xf32>
    %247 = vector.shape_cast %246 : vector<1x1x128xf32> to vector<1x128xf32>
    %cst_96 = arith.constant dense<0.000000e+00> : vector<32xf32>
    %248 = vector.multi_reduction <add>, %243, %cst_96 [1] : vector<32x128xf32> to vector<32xf32>
    %249 = vector.shape_cast %248 : vector<32xf32> to vector<32x1xf32>
    %cst_97 = arith.constant 1.280000e+02 : f32
    %250 = vector.broadcast %cst_97 : f32 to vector<32x1xf32>
    %251 = arith.divf %249, %250 : vector<32x1xf32>
    %252 = vector.broadcast %251 : vector<32x1xf32> to vector<32x128xf32>
    %253 = arith.subf %243, %252 : vector<32x128xf32>
    %254 = arith.mulf %253, %253 : vector<32x128xf32>
    %cst_98 = arith.constant dense<0.000000e+00> : vector<32xf32>
    %255 = vector.multi_reduction <add>, %254, %cst_98 [1] : vector<32x128xf32> to vector<32xf32>
    %256 = vector.shape_cast %255 : vector<32xf32> to vector<32x1xf32>
    %cst_99 = arith.constant 1.280000e+02 : f32
    %257 = vector.broadcast %cst_99 : f32 to vector<32x1xf32>
    %258 = arith.divf %256, %257 : vector<32x1xf32>
    %cst_100 = arith.constant 9.99999996E-13 : f32
    %259 = vector.broadcast %cst_100 : f32 to vector<32x1xf32>
    %260 = arith.addf %258, %259 : vector<32x1xf32>
    %261 = math.rsqrt %260 : vector<32x1xf32>
    %262 = vector.broadcast %251 : vector<32x1xf32> to vector<32x128xf32>
    %263 = arith.subf %243, %262 : vector<32x128xf32>
    %264 = vector.broadcast %261 : vector<32x1xf32> to vector<32x128xf32>
    %265 = arith.mulf %263, %264 : vector<32x128xf32>
    %266 = vector.broadcast %245 : vector<1x128xf32> to vector<32x128xf32>
    %267 = arith.mulf %265, %266 : vector<32x128xf32>
    %268 = vector.broadcast %247 : vector<1x128xf32> to vector<32x128xf32>
    %269 = arith.addf %267, %268 : vector<32x128xf32>
    %270 = arith.truncf %269 : vector<32x128xf32> to vector<32x128xbf16>
    %c1_101 = arith.constant 1 : index
    %c0_102 = arith.constant 0 : index
    %c0_103 = arith.constant 0 : index
    %271 = vector.load %arg6[%c1_101, %c0_102, %c0_103] : memref<2x128x384xbf16, #tpu.memory_space<vmem>>, vector<1x128x384xbf16>
    %272 = vector.shape_cast %271 : vector<1x128x384xbf16> to vector<128x384xbf16>
    %cst_104 = arith.constant dense<0.000000e+00> : vector<32x384xf32>
    %273 = tpu.matmul %270, %272, %cst_104 {dimension_numbers = #tpu.dot_dimension_numbers<[1], [0], [0], [1], [0, 0, 1, 1], [], []>} : vector<32x128xbf16>, vector<128x384xbf16>, vector<32x384xf32> -> vector<32x384xf32>
    %c1_105 = arith.constant 1 : index
    %c0_106 = arith.constant 0 : index
    %c0_107 = arith.constant 0 : index
    %274 = vector.load %arg7[%c1_105, %c0_106, %c0_107] : memref<2x1x384xf32, #tpu.memory_space<vmem>>, vector<1x1x384xf32>
    %275 = vector.shape_cast %274 : vector<1x1x384xf32> to vector<1x384xf32>
    %276 = vector.broadcast %275 : vector<1x384xf32> to vector<32x384xf32>
    %277 = arith.addf %273, %276 : vector<32x384xf32>
    %278 = vector.extract_strided_slice %277 {offsets = [0, 0], sizes = [16, 384], strides = [1, 1]} : vector<32x384xf32> to vector<16x384xf32>
    %c0_108 = arith.constant 0 : index
    %c0_109 = arith.constant 0 : index
    %c0_110 = arith.constant 0 : index
    %279 = vector.load %arg3[%c0_108, %c0_109, %c0_110] : memref<2x1x16xf32, #tpu.memory_space<vmem>>, vector<1x1x16xf32>
    %280 = vector.shape_cast %279 : vector<1x1x16xf32> to vector<1x16xf32>
    %281 = vector.extract_strided_slice %278 {offsets = [0, 0], sizes = [16, 32], strides = [1, 1]} : vector<16x384xf32> to vector<16x32xf32>
    %282 = vector.extract_strided_slice %278 {offsets = [0, 128], sizes = [16, 32], strides = [1, 1]} : vector<16x384xf32> to vector<16x32xf32>
    %283 = vector.extract_strided_slice %278 {offsets = [0, 256], sizes = [16, 32], strides = [1, 1]} : vector<16x384xf32> to vector<16x32xf32>
    %cst_111 = arith.constant dense<0.000000e+00> : vector<16x16xf32>
    %284 = tpu.matmul %281, %282, %cst_111 {dimension_numbers = #tpu.dot_dimension_numbers<[1], [1], [0], [0], [0, 0, 1, 0], [], []>} : vector<16x32xf32>, vector<16x32xf32>, vector<16x16xf32> -> vector<16x16xf32>
    %285 = vector.broadcast %280 : vector<1x16xf32> to vector<16x16xf32>
    %286 = arith.addf %284, %285 : vector<16x16xf32>
    %cst_112 = arith.constant dense<0xFF800000> : vector<16xf32>
    %287 = vector.multi_reduction <maximumf>, %286, %cst_112 [1] : vector<16x16xf32> to vector<16xf32>
    %288 = vector.shape_cast %287 : vector<16xf32> to vector<16x1xf32>
    %289 = vector.broadcast %288 : vector<16x1xf32> to vector<16x16xf32>
    %290 = arith.subf %286, %289 : vector<16x16xf32>
    %291 = math.exp %290 : vector<16x16xf32>
    %cst_113 = arith.constant dense<0.000000e+00> : vector<16xf32>
    %292 = vector.multi_reduction <add>, %291, %cst_113 [1] : vector<16x16xf32> to vector<16xf32>
    %293 = vector.shape_cast %292 : vector<16xf32> to vector<16x1xf32>
    %294 = tpu.reciprocal %293 {approx = true} : vector<16x1xf32> -> vector<16x1xf32>
    %295 = vector.broadcast %294 : vector<16x1xf32> to vector<16x16xf32>
    %296 = arith.mulf %291, %295 : vector<16x16xf32>
    %cst_114 = arith.constant dense<0.000000e+00> : vector<16x32xf32>
    %297 = tpu.matmul %296, %283, %cst_114 {dimension_numbers = #tpu.dot_dimension_numbers<[1], [0], [0], [1], [0, 0, 1, 1], [], []>} : vector<16x16xf32>, vector<16x32xf32>, vector<16x32xf32> -> vector<16x32xf32>
    %298 = vector.extract_strided_slice %278 {offsets = [0, 32], sizes = [16, 32], strides = [1, 1]} : vector<16x384xf32> to vector<16x32xf32>
    %299 = vector.extract_strided_slice %278 {offsets = [0, 160], sizes = [16, 32], strides = [1, 1]} : vector<16x384xf32> to vector<16x32xf32>
    %300 = vector.extract_strided_slice %278 {offsets = [0, 288], sizes = [16, 32], strides = [1, 1]} : vector<16x384xf32> to vector<16x32xf32>
    %cst_115 = arith.constant dense<0.000000e+00> : vector<16x16xf32>
    %301 = tpu.matmul %298, %299, %cst_115 {dimension_numbers = #tpu.dot_dimension_numbers<[1], [1], [0], [0], [0, 0, 1, 0], [], []>} : vector<16x32xf32>, vector<16x32xf32>, vector<16x16xf32> -> vector<16x16xf32>
    %302 = vector.broadcast %280 : vector<1x16xf32> to vector<16x16xf32>
    %303 = arith.addf %301, %302 : vector<16x16xf32>
    %cst_116 = arith.constant dense<0xFF800000> : vector<16xf32>
    %304 = vector.multi_reduction <maximumf>, %303, %cst_116 [1] : vector<16x16xf32> to vector<16xf32>
    %305 = vector.shape_cast %304 : vector<16xf32> to vector<16x1xf32>
    %306 = vector.broadcast %305 : vector<16x1xf32> to vector<16x16xf32>
    %307 = arith.subf %303, %306 : vector<16x16xf32>
    %308 = math.exp %307 : vector<16x16xf32>
    %cst_117 = arith.constant dense<0.000000e+00> : vector<16xf32>
    %309 = vector.multi_reduction <add>, %308, %cst_117 [1] : vector<16x16xf32> to vector<16xf32>
    %310 = vector.shape_cast %309 : vector<16xf32> to vector<16x1xf32>
    %311 = tpu.reciprocal %310 {approx = true} : vector<16x1xf32> -> vector<16x1xf32>
    %312 = vector.broadcast %311 : vector<16x1xf32> to vector<16x16xf32>
    %313 = arith.mulf %308, %312 : vector<16x16xf32>
    %cst_118 = arith.constant dense<0.000000e+00> : vector<16x32xf32>
    %314 = tpu.matmul %313, %300, %cst_118 {dimension_numbers = #tpu.dot_dimension_numbers<[1], [0], [0], [1], [0, 0, 1, 1], [], []>} : vector<16x16xf32>, vector<16x32xf32>, vector<16x32xf32> -> vector<16x32xf32>
    %315 = vector.extract_strided_slice %278 {offsets = [0, 64], sizes = [16, 32], strides = [1, 1]} : vector<16x384xf32> to vector<16x32xf32>
    %316 = vector.extract_strided_slice %278 {offsets = [0, 192], sizes = [16, 32], strides = [1, 1]} : vector<16x384xf32> to vector<16x32xf32>
    %317 = vector.extract_strided_slice %278 {offsets = [0, 320], sizes = [16, 32], strides = [1, 1]} : vector<16x384xf32> to vector<16x32xf32>
    %cst_119 = arith.constant dense<0.000000e+00> : vector<16x16xf32>
    %318 = tpu.matmul %315, %316, %cst_119 {dimension_numbers = #tpu.dot_dimension_numbers<[1], [1], [0], [0], [0, 0, 1, 0], [], []>} : vector<16x32xf32>, vector<16x32xf32>, vector<16x16xf32> -> vector<16x16xf32>
    %319 = vector.broadcast %280 : vector<1x16xf32> to vector<16x16xf32>
    %320 = arith.addf %318, %319 : vector<16x16xf32>
    %cst_120 = arith.constant dense<0xFF800000> : vector<16xf32>
    %321 = vector.multi_reduction <maximumf>, %320, %cst_120 [1] : vector<16x16xf32> to vector<16xf32>
    %322 = vector.shape_cast %321 : vector<16xf32> to vector<16x1xf32>
    %323 = vector.broadcast %322 : vector<16x1xf32> to vector<16x16xf32>
    %324 = arith.subf %320, %323 : vector<16x16xf32>
    %325 = math.exp %324 : vector<16x16xf32>
    %cst_121 = arith.constant dense<0.000000e+00> : vector<16xf32>
    %326 = vector.multi_reduction <add>, %325, %cst_121 [1] : vector<16x16xf32> to vector<16xf32>
    %327 = vector.shape_cast %326 : vector<16xf32> to vector<16x1xf32>
    %328 = tpu.reciprocal %327 {approx = true} : vector<16x1xf32> -> vector<16x1xf32>
    %329 = vector.broadcast %328 : vector<16x1xf32> to vector<16x16xf32>
    %330 = arith.mulf %325, %329 : vector<16x16xf32>
    %cst_122 = arith.constant dense<0.000000e+00> : vector<16x32xf32>
    %331 = tpu.matmul %330, %317, %cst_122 {dimension_numbers = #tpu.dot_dimension_numbers<[1], [0], [0], [1], [0, 0, 1, 1], [], []>} : vector<16x16xf32>, vector<16x32xf32>, vector<16x32xf32> -> vector<16x32xf32>
    %332 = vector.extract_strided_slice %278 {offsets = [0, 96], sizes = [16, 32], strides = [1, 1]} : vector<16x384xf32> to vector<16x32xf32>
    %333 = vector.extract_strided_slice %278 {offsets = [0, 224], sizes = [16, 32], strides = [1, 1]} : vector<16x384xf32> to vector<16x32xf32>
    %334 = vector.extract_strided_slice %278 {offsets = [0, 352], sizes = [16, 32], strides = [1, 1]} : vector<16x384xf32> to vector<16x32xf32>
    %cst_123 = arith.constant dense<0.000000e+00> : vector<16x16xf32>
    %335 = tpu.matmul %332, %333, %cst_123 {dimension_numbers = #tpu.dot_dimension_numbers<[1], [1], [0], [0], [0, 0, 1, 0], [], []>} : vector<16x32xf32>, vector<16x32xf32>, vector<16x16xf32> -> vector<16x16xf32>
    %336 = vector.broadcast %280 : vector<1x16xf32> to vector<16x16xf32>
    %337 = arith.addf %335, %336 : vector<16x16xf32>
    %cst_124 = arith.constant dense<0xFF800000> : vector<16xf32>
    %338 = vector.multi_reduction <maximumf>, %337, %cst_124 [1] : vector<16x16xf32> to vector<16xf32>
    %339 = vector.shape_cast %338 : vector<16xf32> to vector<16x1xf32>
    %340 = vector.broadcast %339 : vector<16x1xf32> to vector<16x16xf32>
    %341 = arith.subf %337, %340 : vector<16x16xf32>
    %342 = math.exp %341 : vector<16x16xf32>
    %cst_125 = arith.constant dense<0.000000e+00> : vector<16xf32>
    %343 = vector.multi_reduction <add>, %342, %cst_125 [1] : vector<16x16xf32> to vector<16xf32>
    %344 = vector.shape_cast %343 : vector<16xf32> to vector<16x1xf32>
    %345 = tpu.reciprocal %344 {approx = true} : vector<16x1xf32> -> vector<16x1xf32>
    %346 = vector.broadcast %345 : vector<16x1xf32> to vector<16x16xf32>
    %347 = arith.mulf %342, %346 : vector<16x16xf32>
    %cst_126 = arith.constant dense<0.000000e+00> : vector<16x32xf32>
    %348 = tpu.matmul %347, %334, %cst_126 {dimension_numbers = #tpu.dot_dimension_numbers<[1], [0], [0], [1], [0, 0, 1, 1], [], []>} : vector<16x16xf32>, vector<16x32xf32>, vector<16x32xf32> -> vector<16x32xf32>
    %349 = tpu.concatenate %297, %314, %331, %348 in 1 : vector<16x32xf32>, vector<16x32xf32>, vector<16x32xf32>, vector<16x32xf32> -> vector<16x128xf32>
    %350 = vector.extract_strided_slice %277 {offsets = [16, 0], sizes = [16, 384], strides = [1, 1]} : vector<32x384xf32> to vector<16x384xf32>
    %c1_127 = arith.constant 1 : index
    %c0_128 = arith.constant 0 : index
    %c0_129 = arith.constant 0 : index
    %351 = vector.load %arg3[%c1_127, %c0_128, %c0_129] : memref<2x1x16xf32, #tpu.memory_space<vmem>>, vector<1x1x16xf32>
    %352 = vector.shape_cast %351 : vector<1x1x16xf32> to vector<1x16xf32>
    %353 = vector.extract_strided_slice %350 {offsets = [0, 0], sizes = [16, 32], strides = [1, 1]} : vector<16x384xf32> to vector<16x32xf32>
    %354 = vector.extract_strided_slice %350 {offsets = [0, 128], sizes = [16, 32], strides = [1, 1]} : vector<16x384xf32> to vector<16x32xf32>
    %355 = vector.extract_strided_slice %350 {offsets = [0, 256], sizes = [16, 32], strides = [1, 1]} : vector<16x384xf32> to vector<16x32xf32>
    %cst_130 = arith.constant dense<0.000000e+00> : vector<16x16xf32>
    %356 = tpu.matmul %353, %354, %cst_130 {dimension_numbers = #tpu.dot_dimension_numbers<[1], [1], [0], [0], [0, 0, 1, 0], [], []>} : vector<16x32xf32>, vector<16x32xf32>, vector<16x16xf32> -> vector<16x16xf32>
    %357 = vector.broadcast %352 : vector<1x16xf32> to vector<16x16xf32>
    %358 = arith.addf %356, %357 : vector<16x16xf32>
    %cst_131 = arith.constant dense<0xFF800000> : vector<16xf32>
    %359 = vector.multi_reduction <maximumf>, %358, %cst_131 [1] : vector<16x16xf32> to vector<16xf32>
    %360 = vector.shape_cast %359 : vector<16xf32> to vector<16x1xf32>
    %361 = vector.broadcast %360 : vector<16x1xf32> to vector<16x16xf32>
    %362 = arith.subf %358, %361 : vector<16x16xf32>
    %363 = math.exp %362 : vector<16x16xf32>
    %cst_132 = arith.constant dense<0.000000e+00> : vector<16xf32>
    %364 = vector.multi_reduction <add>, %363, %cst_132 [1] : vector<16x16xf32> to vector<16xf32>
    %365 = vector.shape_cast %364 : vector<16xf32> to vector<16x1xf32>
    %366 = tpu.reciprocal %365 {approx = true} : vector<16x1xf32> -> vector<16x1xf32>
    %367 = vector.broadcast %366 : vector<16x1xf32> to vector<16x16xf32>
    %368 = arith.mulf %363, %367 : vector<16x16xf32>
    %cst_133 = arith.constant dense<0.000000e+00> : vector<16x32xf32>
    %369 = tpu.matmul %368, %355, %cst_133 {dimension_numbers = #tpu.dot_dimension_numbers<[1], [0], [0], [1], [0, 0, 1, 1], [], []>} : vector<16x16xf32>, vector<16x32xf32>, vector<16x32xf32> -> vector<16x32xf32>
    %370 = vector.extract_strided_slice %350 {offsets = [0, 32], sizes = [16, 32], strides = [1, 1]} : vector<16x384xf32> to vector<16x32xf32>
    %371 = vector.extract_strided_slice %350 {offsets = [0, 160], sizes = [16, 32], strides = [1, 1]} : vector<16x384xf32> to vector<16x32xf32>
    %372 = vector.extract_strided_slice %350 {offsets = [0, 288], sizes = [16, 32], strides = [1, 1]} : vector<16x384xf32> to vector<16x32xf32>
    %cst_134 = arith.constant dense<0.000000e+00> : vector<16x16xf32>
    %373 = tpu.matmul %370, %371, %cst_134 {dimension_numbers = #tpu.dot_dimension_numbers<[1], [1], [0], [0], [0, 0, 1, 0], [], []>} : vector<16x32xf32>, vector<16x32xf32>, vector<16x16xf32> -> vector<16x16xf32>
    %374 = vector.broadcast %352 : vector<1x16xf32> to vector<16x16xf32>
    %375 = arith.addf %373, %374 : vector<16x16xf32>
    %cst_135 = arith.constant dense<0xFF800000> : vector<16xf32>
    %376 = vector.multi_reduction <maximumf>, %375, %cst_135 [1] : vector<16x16xf32> to vector<16xf32>
    %377 = vector.shape_cast %376 : vector<16xf32> to vector<16x1xf32>
    %378 = vector.broadcast %377 : vector<16x1xf32> to vector<16x16xf32>
    %379 = arith.subf %375, %378 : vector<16x16xf32>
    %380 = math.exp %379 : vector<16x16xf32>
    %cst_136 = arith.constant dense<0.000000e+00> : vector<16xf32>
    %381 = vector.multi_reduction <add>, %380, %cst_136 [1] : vector<16x16xf32> to vector<16xf32>
    %382 = vector.shape_cast %381 : vector<16xf32> to vector<16x1xf32>
    %383 = tpu.reciprocal %382 {approx = true} : vector<16x1xf32> -> vector<16x1xf32>
    %384 = vector.broadcast %383 : vector<16x1xf32> to vector<16x16xf32>
    %385 = arith.mulf %380, %384 : vector<16x16xf32>
    %cst_137 = arith.constant dense<0.000000e+00> : vector<16x32xf32>
    %386 = tpu.matmul %385, %372, %cst_137 {dimension_numbers = #tpu.dot_dimension_numbers<[1], [0], [0], [1], [0, 0, 1, 1], [], []>} : vector<16x16xf32>, vector<16x32xf32>, vector<16x32xf32> -> vector<16x32xf32>
    %387 = vector.extract_strided_slice %350 {offsets = [0, 64], sizes = [16, 32], strides = [1, 1]} : vector<16x384xf32> to vector<16x32xf32>
    %388 = vector.extract_strided_slice %350 {offsets = [0, 192], sizes = [16, 32], strides = [1, 1]} : vector<16x384xf32> to vector<16x32xf32>
    %389 = vector.extract_strided_slice %350 {offsets = [0, 320], sizes = [16, 32], strides = [1, 1]} : vector<16x384xf32> to vector<16x32xf32>
    %cst_138 = arith.constant dense<0.000000e+00> : vector<16x16xf32>
    %390 = tpu.matmul %387, %388, %cst_138 {dimension_numbers = #tpu.dot_dimension_numbers<[1], [1], [0], [0], [0, 0, 1, 0], [], []>} : vector<16x32xf32>, vector<16x32xf32>, vector<16x16xf32> -> vector<16x16xf32>
    %391 = vector.broadcast %352 : vector<1x16xf32> to vector<16x16xf32>
    %392 = arith.addf %390, %391 : vector<16x16xf32>
    %cst_139 = arith.constant dense<0xFF800000> : vector<16xf32>
    %393 = vector.multi_reduction <maximumf>, %392, %cst_139 [1] : vector<16x16xf32> to vector<16xf32>
    %394 = vector.shape_cast %393 : vector<16xf32> to vector<16x1xf32>
    %395 = vector.broadcast %394 : vector<16x1xf32> to vector<16x16xf32>
    %396 = arith.subf %392, %395 : vector<16x16xf32>
    %397 = math.exp %396 : vector<16x16xf32>
    %cst_140 = arith.constant dense<0.000000e+00> : vector<16xf32>
    %398 = vector.multi_reduction <add>, %397, %cst_140 [1] : vector<16x16xf32> to vector<16xf32>
    %399 = vector.shape_cast %398 : vector<16xf32> to vector<16x1xf32>
    %400 = tpu.reciprocal %399 {approx = true} : vector<16x1xf32> -> vector<16x1xf32>
    %401 = vector.broadcast %400 : vector<16x1xf32> to vector<16x16xf32>
    %402 = arith.mulf %397, %401 : vector<16x16xf32>
    %cst_141 = arith.constant dense<0.000000e+00> : vector<16x32xf32>
    %403 = tpu.matmul %402, %389, %cst_141 {dimension_numbers = #tpu.dot_dimension_numbers<[1], [0], [0], [1], [0, 0, 1, 1], [], []>} : vector<16x16xf32>, vector<16x32xf32>, vector<16x32xf32> -> vector<16x32xf32>
    %404 = vector.extract_strided_slice %350 {offsets = [0, 96], sizes = [16, 32], strides = [1, 1]} : vector<16x384xf32> to vector<16x32xf32>
    %405 = vector.extract_strided_slice %350 {offsets = [0, 224], sizes = [16, 32], strides = [1, 1]} : vector<16x384xf32> to vector<16x32xf32>
    %406 = vector.extract_strided_slice %350 {offsets = [0, 352], sizes = [16, 32], strides = [1, 1]} : vector<16x384xf32> to vector<16x32xf32>
    %cst_142 = arith.constant dense<0.000000e+00> : vector<16x16xf32>
    %407 = tpu.matmul %404, %405, %cst_142 {dimension_numbers = #tpu.dot_dimension_numbers<[1], [1], [0], [0], [0, 0, 1, 0], [], []>} : vector<16x32xf32>, vector<16x32xf32>, vector<16x16xf32> -> vector<16x16xf32>
    %408 = vector.broadcast %352 : vector<1x16xf32> to vector<16x16xf32>
    %409 = arith.addf %407, %408 : vector<16x16xf32>
    %cst_143 = arith.constant dense<0xFF800000> : vector<16xf32>
    %410 = vector.multi_reduction <maximumf>, %409, %cst_143 [1] : vector<16x16xf32> to vector<16xf32>
    %411 = vector.shape_cast %410 : vector<16xf32> to vector<16x1xf32>
    %412 = vector.broadcast %411 : vector<16x1xf32> to vector<16x16xf32>
    %413 = arith.subf %409, %412 : vector<16x16xf32>
    %414 = math.exp %413 : vector<16x16xf32>
    %cst_144 = arith.constant dense<0.000000e+00> : vector<16xf32>
    %415 = vector.multi_reduction <add>, %414, %cst_144 [1] : vector<16x16xf32> to vector<16xf32>
    %416 = vector.shape_cast %415 : vector<16xf32> to vector<16x1xf32>
    %417 = tpu.reciprocal %416 {approx = true} : vector<16x1xf32> -> vector<16x1xf32>
    %418 = vector.broadcast %417 : vector<16x1xf32> to vector<16x16xf32>
    %419 = arith.mulf %414, %418 : vector<16x16xf32>
    %cst_145 = arith.constant dense<0.000000e+00> : vector<16x32xf32>
    %420 = tpu.matmul %419, %406, %cst_145 {dimension_numbers = #tpu.dot_dimension_numbers<[1], [0], [0], [1], [0, 0, 1, 1], [], []>} : vector<16x16xf32>, vector<16x32xf32>, vector<16x32xf32> -> vector<16x32xf32>
    %421 = tpu.concatenate %369, %386, %403, %420 in 1 : vector<16x32xf32>, vector<16x32xf32>, vector<16x32xf32>, vector<16x32xf32> -> vector<16x128xf32>
    %422 = tpu.concatenate %349, %421 in 0 : vector<16x128xf32>, vector<16x128xf32> -> vector<32x128xf32>
    %423 = arith.truncf %422 : vector<32x128xf32> to vector<32x128xbf16>
    %c1_146 = arith.constant 1 : index
    %c0_147 = arith.constant 0 : index
    %c0_148 = arith.constant 0 : index
    %424 = vector.load %arg8[%c1_146, %c0_147, %c0_148] : memref<2x128x128xbf16, #tpu.memory_space<vmem>>, vector<1x128x128xbf16>
    %425 = vector.shape_cast %424 : vector<1x128x128xbf16> to vector<128x128xbf16>
    %cst_149 = arith.constant dense<0.000000e+00> : vector<32x128xf32>
    %426 = tpu.matmul %423, %425, %cst_149 {dimension_numbers = #tpu.dot_dimension_numbers<[1], [0], [0], [1], [0, 0, 1, 1], [], []>} : vector<32x128xbf16>, vector<128x128xbf16>, vector<32x128xf32> -> vector<32x128xf32>
    %c1_150 = arith.constant 1 : index
    %c0_151 = arith.constant 0 : index
    %c0_152 = arith.constant 0 : index
    %427 = vector.load %arg9[%c1_150, %c0_151, %c0_152] : memref<2x1x128xf32, #tpu.memory_space<vmem>>, vector<1x1x128xf32>
    %428 = vector.shape_cast %427 : vector<1x1x128xf32> to vector<1x128xf32>
    %429 = vector.broadcast %428 : vector<1x128xf32> to vector<32x128xf32>
    %430 = arith.addf %426, %429 : vector<32x128xf32>
    %431 = arith.addf %430, %269 : vector<32x128xf32>
    %c1_153 = arith.constant 1 : index
    %c0_154 = arith.constant 0 : index
    %c0_155 = arith.constant 0 : index
    %432 = vector.load %arg10[%c1_153, %c0_154, %c0_155] : memref<2x1x128xf32, #tpu.memory_space<vmem>>, vector<1x1x128xf32>
    %433 = vector.shape_cast %432 : vector<1x1x128xf32> to vector<1x128xf32>
    %c1_156 = arith.constant 1 : index
    %c0_157 = arith.constant 0 : index
    %c0_158 = arith.constant 0 : index
    %434 = vector.load %arg11[%c1_156, %c0_157, %c0_158] : memref<2x1x128xf32, #tpu.memory_space<vmem>>, vector<1x1x128xf32>
    %435 = vector.shape_cast %434 : vector<1x1x128xf32> to vector<1x128xf32>
    %cst_159 = arith.constant dense<0.000000e+00> : vector<32xf32>
    %436 = vector.multi_reduction <add>, %431, %cst_159 [1] : vector<32x128xf32> to vector<32xf32>
    %437 = vector.shape_cast %436 : vector<32xf32> to vector<32x1xf32>
    %cst_160 = arith.constant 1.280000e+02 : f32
    %438 = vector.broadcast %cst_160 : f32 to vector<32x1xf32>
    %439 = arith.divf %437, %438 : vector<32x1xf32>
    %440 = vector.broadcast %439 : vector<32x1xf32> to vector<32x128xf32>
    %441 = arith.subf %431, %440 : vector<32x128xf32>
    %442 = arith.mulf %441, %441 : vector<32x128xf32>
    %cst_161 = arith.constant dense<0.000000e+00> : vector<32xf32>
    %443 = vector.multi_reduction <add>, %442, %cst_161 [1] : vector<32x128xf32> to vector<32xf32>
    %444 = vector.shape_cast %443 : vector<32xf32> to vector<32x1xf32>
    %cst_162 = arith.constant 1.280000e+02 : f32
    %445 = vector.broadcast %cst_162 : f32 to vector<32x1xf32>
    %446 = arith.divf %444, %445 : vector<32x1xf32>
    %cst_163 = arith.constant 9.99999996E-13 : f32
    %447 = vector.broadcast %cst_163 : f32 to vector<32x1xf32>
    %448 = arith.addf %446, %447 : vector<32x1xf32>
    %449 = math.rsqrt %448 : vector<32x1xf32>
    %450 = vector.broadcast %439 : vector<32x1xf32> to vector<32x128xf32>
    %451 = arith.subf %431, %450 : vector<32x128xf32>
    %452 = vector.broadcast %449 : vector<32x1xf32> to vector<32x128xf32>
    %453 = arith.mulf %451, %452 : vector<32x128xf32>
    %454 = vector.broadcast %433 : vector<1x128xf32> to vector<32x128xf32>
    %455 = arith.mulf %453, %454 : vector<32x128xf32>
    %456 = vector.broadcast %435 : vector<1x128xf32> to vector<32x128xf32>
    %457 = arith.addf %455, %456 : vector<32x128xf32>
    %458 = arith.truncf %457 : vector<32x128xf32> to vector<32x128xbf16>
    %c1_164 = arith.constant 1 : index
    %c0_165 = arith.constant 0 : index
    %c0_166 = arith.constant 0 : index
    %459 = vector.load %arg12[%c1_164, %c0_165, %c0_166] : memref<2x128x256xbf16, #tpu.memory_space<vmem>>, vector<1x128x256xbf16>
    %460 = vector.shape_cast %459 : vector<1x128x256xbf16> to vector<128x256xbf16>
    %cst_167 = arith.constant dense<0.000000e+00> : vector<32x256xf32>
    %461 = tpu.matmul %458, %460, %cst_167 {dimension_numbers = #tpu.dot_dimension_numbers<[1], [0], [0], [1], [0, 0, 1, 1], [], []>} : vector<32x128xbf16>, vector<128x256xbf16>, vector<32x256xf32> -> vector<32x256xf32>
    %c1_168 = arith.constant 1 : index
    %c0_169 = arith.constant 0 : index
    %c0_170 = arith.constant 0 : index
    %462 = vector.load %arg13[%c1_168, %c0_169, %c0_170] : memref<2x1x256xf32, #tpu.memory_space<vmem>>, vector<1x1x256xf32>
    %463 = vector.shape_cast %462 : vector<1x1x256xf32> to vector<1x256xf32>
    %464 = vector.broadcast %463 : vector<1x256xf32> to vector<32x256xf32>
    %465 = arith.addf %461, %464 : vector<32x256xf32>
    %466 = arith.mulf %465, %465 : vector<32x256xf32>
    %467 = arith.mulf %465, %466 : vector<32x256xf32>
    %cst_171 = arith.constant 4.471500e-02 : f32
    %468 = vector.broadcast %cst_171 : f32 to vector<32x256xf32>
    %469 = arith.mulf %468, %467 : vector<32x256xf32>
    %470 = arith.addf %465, %469 : vector<32x256xf32>
    %cst_172 = arith.constant 0.797884583 : f32
    %471 = vector.broadcast %cst_172 : f32 to vector<32x256xf32>
    %472 = arith.mulf %471, %470 : vector<32x256xf32>
    %473 = math.tanh %472 : vector<32x256xf32>
    %cst_173 = arith.constant 1.000000e+00 : f32
    %474 = vector.broadcast %cst_173 : f32 to vector<32x256xf32>
    %475 = arith.addf %474, %473 : vector<32x256xf32>
    %cst_174 = arith.constant 5.000000e-01 : f32
    %476 = vector.broadcast %cst_174 : f32 to vector<32x256xf32>
    %477 = arith.mulf %476, %475 : vector<32x256xf32>
    %478 = arith.mulf %465, %477 : vector<32x256xf32>
    %479 = arith.truncf %478 : vector<32x256xf32> to vector<32x256xbf16>
    %c1_175 = arith.constant 1 : index
    %c0_176 = arith.constant 0 : index
    %c0_177 = arith.constant 0 : index
    %480 = vector.load %arg14[%c1_175, %c0_176, %c0_177] : memref<2x256x128xbf16, #tpu.memory_space<vmem>>, vector<1x256x128xbf16>
    %481 = vector.shape_cast %480 : vector<1x256x128xbf16> to vector<256x128xbf16>
    %cst_178 = arith.constant dense<0.000000e+00> : vector<32x128xf32>
    %482 = tpu.matmul %479, %481, %cst_178 {dimension_numbers = #tpu.dot_dimension_numbers<[1], [0], [0], [1], [0, 0, 1, 1], [], []>} : vector<32x256xbf16>, vector<256x128xbf16>, vector<32x128xf32> -> vector<32x128xf32>
    %c1_179 = arith.constant 1 : index
    %c0_180 = arith.constant 0 : index
    %c0_181 = arith.constant 0 : index
    %483 = vector.load %arg15[%c1_179, %c0_180, %c0_181] : memref<2x1x128xf32, #tpu.memory_space<vmem>>, vector<1x1x128xf32>
    %484 = vector.shape_cast %483 : vector<1x1x128xf32> to vector<1x128xf32>
    %485 = vector.broadcast %484 : vector<1x128xf32> to vector<32x128xf32>
    %486 = arith.addf %482, %485 : vector<32x128xf32>
    %487 = arith.addf %486, %457 : vector<32x128xf32>
    %c1_182 = arith.constant 1 : index
    %c0_183 = arith.constant 0 : index
    %c0_184 = arith.constant 0 : index
    %488 = vector.load %arg16[%c1_182, %c0_183, %c0_184] : memref<2x1x128xf32, #tpu.memory_space<vmem>>, vector<1x1x128xf32>
    %489 = vector.shape_cast %488 : vector<1x1x128xf32> to vector<1x128xf32>
    %c1_185 = arith.constant 1 : index
    %c0_186 = arith.constant 0 : index
    %c0_187 = arith.constant 0 : index
    %490 = vector.load %arg17[%c1_185, %c0_186, %c0_187] : memref<2x1x128xf32, #tpu.memory_space<vmem>>, vector<1x1x128xf32>
    %491 = vector.shape_cast %490 : vector<1x1x128xf32> to vector<1x128xf32>
    %cst_188 = arith.constant dense<0.000000e+00> : vector<32xf32>
    %492 = vector.multi_reduction <add>, %487, %cst_188 [1] : vector<32x128xf32> to vector<32xf32>
    %493 = vector.shape_cast %492 : vector<32xf32> to vector<32x1xf32>
    %cst_189 = arith.constant 1.280000e+02 : f32
    %494 = vector.broadcast %cst_189 : f32 to vector<32x1xf32>
    %495 = arith.divf %493, %494 : vector<32x1xf32>
    %496 = vector.broadcast %495 : vector<32x1xf32> to vector<32x128xf32>
    %497 = arith.subf %487, %496 : vector<32x128xf32>
    %498 = arith.mulf %497, %497 : vector<32x128xf32>
    %cst_190 = arith.constant dense<0.000000e+00> : vector<32xf32>
    %499 = vector.multi_reduction <add>, %498, %cst_190 [1] : vector<32x128xf32> to vector<32xf32>
    %500 = vector.shape_cast %499 : vector<32xf32> to vector<32x1xf32>
    %cst_191 = arith.constant 1.280000e+02 : f32
    %501 = vector.broadcast %cst_191 : f32 to vector<32x1xf32>
    %502 = arith.divf %500, %501 : vector<32x1xf32>
    %cst_192 = arith.constant 9.99999996E-13 : f32
    %503 = vector.broadcast %cst_192 : f32 to vector<32x1xf32>
    %504 = arith.addf %502, %503 : vector<32x1xf32>
    %505 = math.rsqrt %504 : vector<32x1xf32>
    %506 = vector.broadcast %495 : vector<32x1xf32> to vector<32x128xf32>
    %507 = arith.subf %487, %506 : vector<32x128xf32>
    %508 = vector.broadcast %505 : vector<32x1xf32> to vector<32x128xf32>
    %509 = arith.mulf %507, %508 : vector<32x128xf32>
    %510 = vector.broadcast %489 : vector<1x128xf32> to vector<32x128xf32>
    %511 = arith.mulf %509, %510 : vector<32x128xf32>
    %512 = vector.broadcast %491 : vector<1x128xf32> to vector<32x128xf32>
    %513 = arith.addf %511, %512 : vector<32x128xf32>
    %514 = vector.extract_strided_slice %513 {offsets = [0, 0], sizes = [1, 128], strides = [1, 1]} : vector<32x128xf32> to vector<1x128xf32>
    %515 = vector.extract_strided_slice %513 {offsets = [16, 0], sizes = [1, 128], strides = [1, 1]} : vector<32x128xf32> to vector<1x128xf32>
    %516 = tpu.concatenate %514, %515 in 0 : vector<1x128xf32>, vector<1x128xf32> -> vector<2x128xf32>
    %517 = arith.truncf %516 : vector<2x128xf32> to vector<2x128xbf16>
    %c0_193 = arith.constant 0 : index
    %c0_194 = arith.constant 0 : index
    %518 = vector.load %arg18[%c0_193, %c0_194] : memref<128x128xbf16, #tpu.memory_space<vmem>>, vector<128x128xbf16>
    %cst_195 = arith.constant dense<0.000000e+00> : vector<2x128xf32>
    %519 = tpu.matmul %517, %518, %cst_195 {dimension_numbers = #tpu.dot_dimension_numbers<[1], [0], [0], [1], [0, 0, 1, 1], [], []>} : vector<2x128xbf16>, vector<128x128xbf16>, vector<2x128xf32> -> vector<2x128xf32>
    %c0_196 = arith.constant 0 : index
    %c0_197 = arith.constant 0 : index
    %520 = vector.load %arg19[%c0_196, %c0_197] : memref<1x128xf32, #tpu.memory_space<vmem>>, vector<1x128xf32>
    %521 = vector.broadcast %520 : vector<1x128xf32> to vector<2x128xf32>
    %522 = arith.addf %519, %521 : vector<2x128xf32>
    %523 = math.tanh %522 : vector<2x128xf32>
    %524 = vector.shape_cast %523 : vector<2x128xf32> to vector<2x1x128xf32>
    %c0_198 = arith.constant 0 : index
    %c0_199 = arith.constant 0 : index
    %c0_200 = arith.constant 0 : index
    %525 = vector.load %arg22[%c0_198, %c0_199, %c0_200] : memref<2x1x128xf32, #tpu.memory_space<vmem>>, vector<2x1x128xf32>
    tpu.vector_store %arg22[%c0_198, %c0_199, %c0_200], %524 {strides = array<i32>} : memref<2x1x128xf32, #tpu.memory_space<vmem>>, vector<2x1x128xf32>,
    %526 = tpu.iota {dimensions = array<i32: 0>} : vector<16x128xi32>
    %c2_i32 = arith.constant 2 : i32
    %527 = arith.muli %arg0, %c2_i32 : i32
    %c0_i32 = arith.constant 0 : i32
    %528 = arith.addi %527, %c0_i32 : i32
    %529 = arith.index_cast %528 : i32 to index
    %530 = memref.load %arg1[%529] : memref<2xi32, #tpu.memory_space<smem>>
    %531 = vector.extract_strided_slice %513 {offsets = [0, 0], sizes = [16, 128], strides = [1, 1]} : vector<32x128xf32> to vector<16x128xf32>
    %532 = vector.broadcast %530 : i32 to vector<16x128xi32>
    %533 = arith.cmpi slt, %526, %532 : vector<16x128xi32>
    %cst_201 = arith.constant 0.000000e+00 : f32
    %534 = vector.broadcast %cst_201 : f32 to vector<16x128xf32>
    %535 = arith.select %533, %531, %534 : vector<16x128xi1>, vector<16x128xf32>
    %c0_202 = arith.constant 0 : index
    %c0_203 = arith.constant 0 : index
    %c0_204 = arith.constant 0 : index
    %536 = vector.load %arg20[%c0_202, %c0_203, %c0_204] : memref<2x16x128xf32, #tpu.memory_space<vmem>>, vector<1x16x128xf32>
    %537 = vector.shape_cast %536 : vector<1x16x128xf32> to vector<16x128xf32>
    %538 = vector.shape_cast %535 : vector<16x128xf32> to vector<1x16x128xf32>
    tpu.vector_store %arg20[%c0_202, %c0_203, %c0_204], %538 {strides = array<i32>} : memref<2x16x128xf32, #tpu.memory_space<vmem>>, vector<1x16x128xf32>,
    %539 = tpu.concatenate %52, %69, %86, %103, %296, %313, %330, %347 in 1 : vector<16x16xf32>, vector<16x16xf32>, vector<16x16xf32>, vector<16x16xf32>, vector<16x16xf32>, vector<16x16xf32>, vector<16x16xf32>, vector<16x16xf32> -> vector<16x128xf32>
    %c0_205 = arith.constant 0 : index
    %c0_206 = arith.constant 0 : index
    %c0_207 = arith.constant 0 : index
    %540 = vector.load %arg21[%c0_205, %c0_206, %c0_207] : memref<2x16x128xf32, #tpu.memory_space<vmem>>, vector<1x16x128xf32>
    %541 = vector.shape_cast %540 : vector<1x16x128xf32> to vector<16x128xf32>
    %542 = vector.shape_cast %539 : vector<16x128xf32> to vector<1x16x128xf32>
    tpu.vector_store %arg21[%c0_205, %c0_206, %c0_207], %542 {strides = array<i32>} : memref<2x16x128xf32, #tpu.memory_space<vmem>>, vector<1x16x128xf32>,
    %c2_i32_208 = arith.constant 2 : i32
    %543 = arith.muli %arg0, %c2_i32_208 : i32
    %c1_i32 = arith.constant 1 : i32
    %544 = arith.addi %543, %c1_i32 : i32
    %545 = arith.index_cast %544 : i32 to index
    %546 = memref.load %arg1[%545] : memref<2xi32, #tpu.memory_space<smem>>
    %547 = vector.extract_strided_slice %513 {offsets = [16, 0], sizes = [16, 128], strides = [1, 1]} : vector<32x128xf32> to vector<16x128xf32>
    %548 = vector.broadcast %546 : i32 to vector<16x128xi32>
    %549 = arith.cmpi slt, %526, %548 : vector<16x128xi32>
    %cst_209 = arith.constant 0.000000e+00 : f32
    %550 = vector.broadcast %cst_209 : f32 to vector<16x128xf32>
    %551 = arith.select %549, %547, %550 : vector<16x128xi1>, vector<16x128xf32>
    %c1_210 = arith.constant 1 : index
    %c0_211 = arith.constant 0 : index
    %c0_212 = arith.constant 0 : index
    %552 = vector.load %arg20[%c1_210, %c0_211, %c0_212] : memref<2x16x128xf32, #tpu.memory_space<vmem>>, vector<1x16x128xf32>
    %553 = vector.shape_cast %552 : vector<1x16x128xf32> to vector<16x128xf32>
    %554 = vector.shape_cast %551 : vector<16x128xf32> to vector<1x16x128xf32>
    tpu.vector_store %arg20[%c1_210, %c0_211, %c0_212], %554 {strides = array<i32>} : memref<2x16x128xf32, #tpu.memory_space<vmem>>, vector<1x16x128xf32>,
    %555 = tpu.concatenate %124, %141, %158, %175, %368, %385, %402, %419 in 1 : vector<16x16xf32>, vector<16x16xf32>, vector<16x16xf32>, vector<16x16xf32>, vector<16x16xf32>, vector<16x16xf32>, vector<16x16xf32>, vector<16x16xf32> -> vector<16x128xf32>
    %c1_213 = arith.constant 1 : index
    %c0_214 = arith.constant 0 : index
    %c0_215 = arith.constant 0 : index
    %556 = vector.load %arg21[%c1_213, %c0_214, %c0_215] : memref<2x16x128xf32, #tpu.memory_space<vmem>>, vector<1x16x128xf32>
    %557 = vector.shape_cast %556 : vector<1x16x128xf32> to vector<16x128xf32>
    %558 = vector.shape_cast %555 : vector<16x128xf32> to vector<1x16x128xf32>
    tpu.vector_store %arg21[%c1_213, %c0_214, %c0_215], %558 {strides = array<i32>} : memref<2x16x128xf32, #tpu.memory_space<vmem>>, vector<1x16x128xf32>,
    return
  }
  func.func @transform_0(%arg0: i32, %arg1: memref<2xi32, #tpu.memory_space<smem>>) -> (i32, i32, i32) {
    %c0_i32 = arith.constant 0 : i32
    %c0_i32_0 = arith.constant 0 : i32
    %c0_i32_1 = arith.constant 0 : i32
    return %arg0, %c0_i32, %c0_i32_0 : i32, i32, i32
  }
  func.func @transform_1(%arg0: i32, %arg1: memref<2xi32, #tpu.memory_space<smem>>) -> (i32, i32, i32) {
    %c0_i32 = arith.constant 0 : i32
    %c0_i32_0 = arith.constant 0 : i32
    %c0_i32_1 = arith.constant 0 : i32
    return %arg0, %c0_i32, %c0_i32_0 : i32, i32, i32
  }
  func.func @transform_2(%arg0: i32, %arg1: memref<2xi32, #tpu.memory_space<smem>>) -> (i32, i32) {
    %c0_i32 = arith.constant 0 : i32
    %c0_i32_0 = arith.constant 0 : i32
    %c0_i32_1 = arith.constant 0 : i32
    return %c0_i32, %c0_i32_0 : i32, i32
  }
  func.func @transform_3(%arg0: i32, %arg1: memref<2xi32, #tpu.memory_space<smem>>) -> (i32, i32) {
    %c0_i32 = arith.constant 0 : i32
    %c0_i32_0 = arith.constant 0 : i32
    %c0_i32_1 = arith.constant 0 : i32
    return %c0_i32, %c0_i32_0 : i32, i32
  }
  func.func @transform_4(%arg0: i32, %arg1: memref<2xi32, #tpu.memory_space<smem>>) -> (i32, i32, i32) {
    %c0_i32 = arith.constant 0 : i32
    %c0_i32_0 = arith.constant 0 : i32
    %c0_i32_1 = arith.constant 0 : i32
    %c0_i32_2 = arith.constant 0 : i32
    return %c0_i32, %c0_i32_0, %c0_i32_1 : i32, i32, i32
  }
  func.func @transform_5(%arg0: i32, %arg1: memref<2xi32, #tpu.memory_space<smem>>) -> (i32, i32, i32) {
    %c0_i32 = arith.constant 0 : i32
    %c0_i32_0 = arith.constant 0 : i32
    %c0_i32_1 = arith.constant 0 : i32
    %c0_i32_2 = arith.constant 0 : i32
    return %c0_i32, %c0_i32_0, %c0_i32_1 : i32, i32, i32
  }
  func.func @transform_6(%arg0: i32, %arg1: memref<2xi32, #tpu.memory_space<smem>>) -> (i32, i32, i32) {
    %c0_i32 = arith.constant 0 : i32
    %c0_i32_0 = arith.constant 0 : i32
    %c0_i32_1 = arith.constant 0 : i32
    %c0_i32_2 = arith.constant 0 : i32
    return %c0_i32, %c0_i32_0, %c0_i32_1 : i32, i32, i32
  }
  func.func @transform_7(%arg0: i32, %arg1: memref<2xi32, #tpu.memory_space<smem>>) -> (i32, i32, i32) {
    %c0_i32 = arith.constant 0 : i32
    %c0_i32_0 = arith.constant 0 : i32
    %c0_i32_1 = arith.constant 0 : i32
    %c0_i32_2 = arith.constant 0 : i32
    return %c0_i32, %c0_i32_0, %c0_i32_1 : i32, i32, i32
  }
  func.func @transform_8(%arg0: i32, %arg1: memref<2xi32, #tpu.memory_space<smem>>) -> (i32, i32, i32) {
    %c0_i32 = arith.constant 0 : i32
    %c0_i32_0 = arith.constant 0 : i32
    %c0_i32_1 = arith.constant 0 : i32
    %c0_i32_2 = arith.constant 0 : i32
    return %c0_i32, %c0_i32_0, %c0_i32_1 : i32, i32, i32
  }
  func.func @transform_9(%arg0: i32, %arg1: memref<2xi32, #tpu.memory_space<smem>>) -> (i32, i32, i32) {
    %c0_i32 = arith.constant 0 : i32
    %c0_i32_0 = arith.constant 0 : i32
    %c0_i32_1 = arith.constant 0 : i32
    %c0_i32_2 = arith.constant 0 : i32
    return %c0_i32, %c0_i32_0, %c0_i32_1 : i32, i32, i32
  }
  func.func @transform_10(%arg0: i32, %arg1: memref<2xi32, #tpu.memory_space<smem>>) -> (i32, i32, i32) {
    %c0_i32 = arith.constant 0 : i32
    %c0_i32_0 = arith.constant 0 : i32
    %c0_i32_1 = arith.constant 0 : i32
    %c0_i32_2 = arith.constant 0 : i32
    return %c0_i32, %c0_i32_0, %c0_i32_1 : i32, i32, i32
  }
  func.func @transform_11(%arg0: i32, %arg1: memref<2xi32, #tpu.memory_space<smem>>) -> (i32, i32, i32) {
    %c0_i32 = arith.constant 0 : i32
    %c0_i32_0 = arith.constant 0 : i32
    %c0_i32_1 = arith.constant 0 : i32
    %c0_i32_2 = arith.constant 0 : i32
    return %c0_i32, %c0_i32_0, %c0_i32_1 : i32, i32, i32
  }
  func.func @transform_12(%arg0: i32, %arg1: memref<2xi32, #tpu.memory_space<smem>>) -> (i32, i32, i32) {
    %c0_i32 = arith.constant 0 : i32
    %c0_i32_0 = arith.constant 0 : i32
    %c0_i32_1 = arith.constant 0 : i32
    %c0_i32_2 = arith.constant 0 : i32
    return %c0_i32, %c0_i32_0, %c0_i32_1 : i32, i32, i32
  }
  func.func @transform_13(%arg0: i32, %arg1: memref<2xi32, #tpu.memory_space<smem>>) -> (i32, i32, i32) {
    %c0_i32 = arith.constant 0 : i32
    %c0_i32_0 = arith.constant 0 : i32
    %c0_i32_1 = arith.constant 0 : i32
    %c0_i32_2 = arith.constant 0 : i32
    return %c0_i32, %c0_i32_0, %c0_i32_1 : i32, i32, i32
  }
  func.func @transform_14(%arg0: i32, %arg1: memref<2xi32, #tpu.memory_space<smem>>) -> (i32, i32, i32) {
    %c0_i32 = arith.constant 0 : i32
    %c0_i32_0 = arith.constant 0 : i32
    %c0_i32_1 = arith.constant 0 : i32
    %c0_i32_2 = arith.constant 0 : i32
    return %c0_i32, %c0_i32_0, %c0_i32_1 : i32, i32, i32
  }
  func.func @transform_15(%arg0: i32, %arg1: memref<2xi32, #tpu.memory_space<smem>>) -> (i32, i32, i32) {
    %c0_i32 = arith.constant 0 : i32
    %c0_i32_0 = arith.constant 0 : i32
    %c0_i32_1 = arith.constant 0 : i32
    %c0_i32_2 = arith.constant 0 : i32
    return %c0_i32, %c0_i32_0, %c0_i32_1 : i32, i32, i32
  }
  func.func @transform_16(%arg0: i32, %arg1: memref<2xi32, #tpu.memory_space<smem>>) -> (i32, i32) {
    %c0_i32 = arith.constant 0 : i32
    %c0_i32_0 = arith.constant 0 : i32
    %c0_i32_1 = arith.constant 0 : i32
    return %c0_i32, %c0_i32_0 : i32, i32
  }
  func.func @transform_17(%arg0: i32, %arg1: memref<2xi32, #tpu.memory_space<smem>>) -> (i32, i32) {
    %c0_i32 = arith.constant 0 : i32
    %c0_i32_0 = arith.constant 0 : i32
    %c0_i32_1 = arith.constant 0 : i32
    return %c0_i32, %c0_i32_0 : i32, i32
  }
  func.func @transform_18(%arg0: i32, %arg1: memref<2xi32, #tpu.memory_space<smem>>) -> (i32, i32, i32) {
    %c0_i32 = arith.constant 0 : i32
    %c0_i32_0 = arith.constant 0 : i32
    %c0_i32_1 = arith.constant 0 : i32
    return %arg0, %c0_i32, %c0_i32_0 : i32, i32, i32
  }
  func.func @transform_19(%arg0: i32, %arg1: memref<2xi32, #tpu.memory_space<smem>>) -> (i32, i32, i32) {
    %c0_i32 = arith.constant 0 : i32
    %c0_i32_0 = arith.constant 0 : i32
    %c0_i32_1 = arith.constant 0 : i32
    return %arg0, %c0_i32, %c0_i32_0 : i32, i32, i32
  }
  func.func @transform_20(%arg0: i32, %arg1: memref<2xi32, #tpu.memory_space<smem>>) -> (i32, i32, i32) {
    %c0_i32 = arith.constant 0 : i32
    %c0_i32_0 = arith.constant 0 : i32
    %c0_i32_1 = arith.constant 0 : i32
    return %arg0, %c0_i32, %c0_i32_0 : i32, i32, i32
  }
}

</mosaic_0001>

<bundles_post_ra>
// kernel: tpu_custom_call.1
= control target key start
LH: loop header
LB: loop body
LE: loop exit
PB: predicated region body
PF: predicated region fallthrough
CT: control target
= control target key end

     0   :  { %s9398_s0 = inlined_call_operand.hbm [shape: s32[2], index: 0, kind: input, shape index: {}]   ;;  %s9399_s1 = inlined_call_operand.hbm [shape: f32[2,16,128], index: 1, kind: input, shape index: {}]   ;;  %s9400_s2 = inlined_call_operand.hbm [shape: f32[2,1,16], index: 2, kind: input, shape index: {}]   ;;  %s9401_s3 = inlined_call_operand.hbm [shape: f32[1,128], index: 3, kind: input, shape index: {}]   ;;  %s9402_s4 = inlined_call_operand.hbm [shape: f32[1,128], index: 4, kind: input, shape index: {}]   ;;  %s9403_s5 = inlined_call_operand.hbm [shape: bf16[2,128,384], index: 5, kind: input, shape index: {}]   ;;  %s9404_s6 = inlined_call_operand.hbm [shape: f32[2,1,384], index: 6, kind: input, shape index: {}]   ;;  %s9405_s7 = inlined_call_operand.hbm [shape: bf16[2,128,128], index: 7, kind: input, shape index: {}]   ;;  %s9406_s8 = inlined_call_operand.hbm [shape: f32[2,1,128], index: 8, kind: input, shape index: {}]   ;;  %s9407_s9 = inlined_call_operand.hbm [shape: f32[2,1,128], index: 9, kind: input, shape index: {}]   ;;  %s9408_s10 = inlined_call_operand.hbm [shape: f32[2,1,128], index: 10, kind: input, shape index: {}]   ;;  %s9409_s11 = inlined_call_operand.hbm [shape: bf16[2,128,256], index: 11, kind: input, shape index: {}]   ;;  %s9410_s12 = inlined_call_operand.hbm [shape: f32[2,1,256], index: 12, kind: input, shape index: {}]   ;;  %s9411_s13 = inlined_call_operand.hbm [shape: bf16[2,256,128], index: 13, kind: input, shape index: {}]   ;;  %s9412_s14 = inlined_call_operand.hbm [shape: f32[2,1,128], index: 14, kind: input, shape index: {}]   ;;  %s9413_s15 = inlined_call_operand.hbm [shape: f32[2,1,128], index: 15, kind: input, shape index: {}]   ;;  %s9414_s16 = inlined_call_operand.hbm [shape: f32[2,1,128], index: 16, kind: input, shape index: {}]   ;;  %s9415_s17 = inlined_call_operand.vmem [shape: bf16[128,128], index: 17, kind: input, shape index: {}]   ;;  %s9416_s18 = inlined_call_operand.vmem [shape: f32[1,128], index: 18, kind: input, shape index: {}]   ;;  %s9417_s19 = inlined_call_operand.hbm [shape: f32[2,16,128], index: 19, kind: output, shape index: {0}]   ;;  %s9418_s20 = inlined_call_operand.hbm [shape: f32[2,16,128], index: 20, kind: output, shape index: {1}]   ;;  %s9419_s21 = inlined_call_operand.hbm [shape: f32[2,1,128], index: 21, kind: output, shape index: {2}]  }
   0x1   :  { %9433 = sst [smem:[#allocation49_spill]] %s9398_s0 }
   0x2   :  { %9434 = sst [smem:[#allocation50_spill]] %s9399_s1  ;;  %s9442_s26 = sld [smem:[#allocation49_spill]] }
   0x3   :  { %9435 = sst [smem:[#allocation51_spill]] %s9400_s2 }
   0x4   :  { %9436 = sst [smem:[#allocation52_spill]] %s9401_s3 }
   0x5   :  { %9437 = sst [smem:[#allocation53_spill]] %s9402_s4 }
   0x6   :  { %9438 = sst [smem:[#allocation54_spill]] %s9403_s5 }
   0x7   :  { %9439 = sst [smem:[#allocation55_spill]] %s9413_s15 }
   0x8   :  { %9440 = sst [smem:[#allocation56_spill]] %s9416_s18  ;;  %s7508_s15 = scalar_lea.hbm %s9442_s26, 16 }
   0x9   :  { %9441 = sst [smem:[#allocation57_spill]] %s9419_s21  ;;  %p7509_p0 = scmp.ne.s32.totalorder %s9442_s26, %s7508_s15 }
   0xa   :  { %p7512_p1 = scmp.lt.u32.totalorder %s7508_s15, %s9442_s26 }
   0xc   :  { %p7514_p2 = pnand %p7512_p1, %p7509_p0 }
   0xe   :  { %7517 = shalt.err (!%p7514_p2)  }
   0xf   :  { %s7960_s0 = smov [#allocation3]  }
  0x10   :  { %28 = dma.hbm_to_smem %s9442_s26, 16, %s7960_s0, [#allocation2] }
  0x11   :  { %7936 = dma.done.wait [#allocation2], 16 }
  0x12   :  { %7937 = vsyncadd [#allocation2], 4294967280 }
  0x13   :  { %30 = sfence }
  0x14   :  { %31 = vsyncpa [#allocation5], 0 }
  0x15   :  { %32 = vsyncpa [#allocation8], 0 }
  0x16   :  { %33 = vsyncpa [#allocation11], 0 }
  0x17   :  { %34 = vsyncpa [#allocation14], 0 }
  0x18   :  { %35 = vsyncpa [#allocation17], 0 }
  0x19   :  { %36 = vsyncpa [#allocation20], 0 }
  0x1a   :  { %37 = vsyncpa [#allocation23], 0 }
  0x1b   :  { %38 = vsyncpa [#allocation26], 0 }
  0x1c   :  { %39 = vsyncpa [#allocation29], 0 }
  0x1d   :  { %40 = vsyncpa [#allocation6], 0 }
  0x1e   :  { %41 = vsyncpa [#allocation32], 0  ;;  %s7961_s15 = smov [#allocation7]   ;;  %s9443_s1 = sld [smem:[#allocation51_spill]] }
  0x1f   :  { %s59_s5 = sshll.u32 %s7961_s15, 4  ;;  %s60_s5 = int_to_ptr.vmem [resolvable:$true] %s59_s5 }
  0x24   :  { %s7518_s24 = scalar_lea.hbm %s9443_s1, 32 }
  0x25   :  { %p7519_p3 = scmp.ne.s32.totalorder %s9443_s1, %s7518_s24  ;;  %p7522_p4 = scmp.lt.u32.totalorder %s7518_s24, %s9443_s1 }
  0x27   :  { %p7524_p5 = pnand %p7522_p4, %p7519_p3 }
  0x29   :  { %7527 = shalt.err (!%p7524_p5)
}
  0x2a   :  { %s7528_s3 = scalar_lea.vmem %s60_s5, 32  ;;  %p7533_p7 = scmp.lt.s32.totalorder %s60_s5, %s60_s5 }
  0x2b   :  { %p7529_p6 = scmp.ne.s32.totalorder %s60_s5, %s7528_s3  ;;  %p7534_p8 = scmp.lt.s32.totalorder %s7528_s3, %s7528_s3 }
  0x2d   :  { %p7535_p9 = por %p7534_p8, %p7533_p7 }
  0x2f   :  { %p7536_p10 = pnand %p7535_p9, %p7529_p6 }
  0x31   :  { %7539 = shalt.err (!%p7536_p10)
}
  0x32   :  { %s7962_s28 = smov 16   ;;  %s7963_s29 = smov 1  }
  0x33   :  { %65 = dma.hbm_to_vmem [thread:$0]  %s9443_s1, 32, %s60_s5, [#allocation8], %s7962_s28, %s7962_s28, %s7963_s29  }
  0x34   :  { %s7964_s30 = smov [#allocation10]   ;;  %s7965_s22 = smov [#allocation13]  }
  0x35   :  { %s82_s15 = sshll.u32 %s7964_s30, 4  ;;  %s103_s23 = sshll.u32 %s7965_s22, 4  ;;  %s83_s15 = int_to_ptr.vmem [resolvable:$true] %s82_s15  ;;  %s104_s23 = int_to_ptr.vmem [resolvable:$true] %s103_s23 }
  0x36   :  { %s9444_s25 = sld [smem:[#allocation53_spill]] }
  0x3c   :  { %s7540_s26 = scalar_lea.hbm %s9444_s25, 16 }
  0x3d   :  { %p7541_p11 = scmp.ne.s32.totalorder %s9444_s25, %s7540_s26  ;;  %p7544_p12 = scmp.lt.u32.totalorder %s7540_s26, %s9444_s25 }
  0x3f   :  { %p7546_p13 = pnand %p7544_p12, %p7541_p11 }
  0x41   :  { %7549 = shalt.err (!%p7546_p13)
}
  0x42   :  { %s7550_s5 = scalar_lea.vmem %s83_s15, 16  ;;  %s7554_s1 = scalar_lea.vmem %s83_s15, 32 }
  0x43   :  { %p7551_p0 = scmp.ne.s32.totalorder %s83_s15, %s7550_s5  ;;  %p7555_p1 = scmp.lt.s32.totalorder %s83_s15, %s83_s15 }
  0x44   :  { %p7556_p2 = scmp.lt.s32.totalorder %s7554_s1, %s7550_s5 }
  0x46   :  { %p7557_p3 = por %p7556_p2, %p7555_p1 }
  0x48   :  { %p7558_p4 = pnand %p7557_p3, %p7551_p0 }
  0x4a   :  { %7561 = shalt.err (!%p7558_p4)
}
  0x4b   :  { %85 = dma.hbm_to_vmem [thread:$0]  %s9444_s25, 16, %s83_s15, [#allocation11]  }
  0x4c   :  { %s7562_s18 = scalar_lea.hbm %s9404_s6, 96 }
  0x4d   :  { %p7563_p5 = scmp.ne.s32.totalorder %s9404_s6, %s7562_s18  ;;  %p7566_p6 = scmp.lt.u32.totalorder %s7562_s18, %s9404_s6 }
  0x4f   :  { %p7568_p7 = pnand %p7566_p6, %p7563_p5 }
  0x51   :  { %7571 = shalt.err (!%p7568_p7)
}
  0x52   :  { %s7572_s27 = scalar_lea.vmem %s104_s23, 96  ;;  %p7577_p9 = scmp.lt.s32.totalorder %s104_s23, %s104_s23 }
  0x53   :  { %p7573_p8 = scmp.ne.s32.totalorder %s104_s23, %s7572_s27  ;;  %p7578_p10 = scmp.lt.s32.totalorder %s7572_s27, %s7572_s27 }
  0x55   :  { %p7579_p11 = por %p7578_p10, %p7577_p9 }
  0x57   :  { %p7580_p12 = pnand %p7579_p11, %p7573_p8 }
  0x59   :  { %7583 = shalt.err (!%p7580_p12)
}
  0x5a   :  { %s7966_s15 = smov 48   ;;  %s7967_s25 = smov 3  }
  0x5b   :  { %109 = dma.hbm_to_vmem [thread:$0]  %s9404_s6, 96, %s104_s23, [#allocation14], %s7966_s15, %s7966_s15, %s7967_s25  }
  0x5c   :  { %s7968_s1 = smov [#allocation16]   ;;  %s7969_s4 = smov [#allocation19]  }
  0x5d   :  { %s127_s0 = sshll.u32 %s7968_s1, 4  ;;  %s151_s30 = sshll.u32 %s7969_s4, 4  ;;  %s128_s0 = int_to_ptr.vmem [resolvable:$true] %s127_s0  ;;  %s152_s30 = int_to_ptr.vmem [resolvable:$true] %s151_s30 }
  0x5e   :  { %s7584_s21 = scalar_lea.hbm %s9406_s8, 32 }
  0x5f   :  { %p7585_p13 = scmp.ne.s32.totalorder %s9406_s8, %s7584_s21  ;;  %p7588_p0 = scmp.lt.u32.totalorder %s7584_s21, %s9406_s8 }
  0x61   :  { %p7590_p1 = pnand %p7588_p0, %p7585_p13 }
  0x63   :  { %7593 = shalt.err (!%p7590_p1)
}
  0x64   :  { %s7594_s6 = scalar_lea.vmem %s128_s0, 32  ;;  %p7599_p3 = scmp.lt.s32.totalorder %s128_s0, %s128_s0 }
  0x65   :  { %p7595_p2 = scmp.ne.s32.totalorder %s128_s0, %s7594_s6  ;;  %p7600_p4 = scmp.lt.s32.totalorder %s7594_s6, %s7594_s6 }
  0x67   :  { %p7601_p5 = por %p7600_p4, %p7599_p3 }
  0x69   :  { %p7602_p6 = pnand %p7601_p5, %p7595_p2 }
  0x6b   :  { %7605 = shalt.err (!%p7602_p6)
}
  0x6c   :  { %133 = dma.hbm_to_vmem [thread:$0]  %s9406_s8, 32, %s128_s0, [#allocation17], %s7962_s28, %s7962_s28, %s7963_s29  }
  0x6d   :  { %s7606_s1 = scalar_lea.hbm %s9408_s10, 32 }
  0x6e   :  { %p7607_p7 = scmp.ne.s32.totalorder %s9408_s10, %s7606_s1  ;;  %p7610_p8 = scmp.lt.u32.totalorder %s7606_s1, %s9408_s10 }
  0x70   :  { %p7612_p9 = pnand %p7610_p8, %p7607_p7 }
  0x72   :  { %7615 = shalt.err (!%p7612_p9)
}
  0x73   :  { %s7616_s24 = scalar_lea.vmem %s152_s30, 32  ;;  %p7621_p11 = scmp.lt.s32.totalorder %s152_s30, %s152_s30 }
  0x74   :  { %p7617_p10 = scmp.ne.s32.totalorder %s152_s30, %s7616_s24  ;;  %p7622_p12 = scmp.lt.s32.totalorder %s7616_s24, %s7616_s24 }
  0x76   :  { %p7623_p13 = por %p7622_p12, %p7621_p11 }
  0x78   :  { %p7624_p0 = pnand %p7623_p13, %p7617_p10 }
  0x7a   :  { %7627 = shalt.err (!%p7624_p0)
}
  0x7b   :  { %157 = dma.hbm_to_vmem [thread:$0]  %s9408_s10, 32, %s152_s30, [#allocation20], %s7962_s28, %s7962_s28, %s7963_s29  }
  0x7c   :  { %s7970_s2 = smov [#allocation22]   ;;  %s7628_s23 = scalar_lea.hbm %s9410_s12, 64 }
  0x7d   :  { %s175_s26 = sshll.u32 %s7970_s2, 4  ;;  %p7629_p1 = scmp.ne.s32.totalorder %s9410_s12, %s7628_s23  ;;  %s176_s26 = int_to_ptr.vmem [resolvable:$true] %s175_s26 }
  0x7e   :  { %p7632_p2 = scmp.lt.u32.totalorder %s7628_s23, %s9410_s12 }
  0x80   :  { %p7634_p3 = pnand %p7632_p2, %p7629_p1 }
  0x82   :  { %7637 = shalt.err (!%p7634_p3)
}
  0x83   :  { %s7638_s4 = scalar_lea.vmem %s176_s26, 64  ;;  %p7643_p5 = scmp.lt.s32.totalorder %s176_s26, %s176_s26 }
  0x84   :  { %p7639_p4 = scmp.ne.s32.totalorder %s176_s26, %s7638_s4  ;;  %p7644_p6 = scmp.lt.s32.totalorder %s7638_s4, %s7638_s4 }
  0x86   :  { %p7645_p7 = por %p7644_p6, %p7643_p5 }
  0x88   :  { %p7646_p8 = pnand %p7645_p7, %p7639_p4 }
  0x8a   :  { %7649 = shalt.err (!%p7646_p8)
}
  0x8b   :  { %s7971_s10 = smov 32   ;;  %s7972_s30 = smov 2  }
  0x8c   :  { %181 = dma.hbm_to_vmem [thread:$0]  %s9410_s12, 64, %s176_s26, [#allocation23], %s7971_s10, %s7971_s10, %s7972_s30  }
  0x8d   :  { %s7973_s21 = smov [#allocation25]   ;;  %s7974_s8 = smov [#allocation4]  }
  0x8e   :  { %s199_s24 = sshll.u32 %s7973_s21, 4  ;;  %s47_s0 = sshll.u32 %s7974_s8, 4  ;;  %s200_s24 = int_to_ptr.vmem [resolvable:$true] %s199_s24  ;;  %s8206_s0 = int_to_ptr.vmem [resolvable:$true] %s47_s0 }
  0x8f   :  { %s7650_s6 = scalar_lea.hbm %s9412_s14, 32 }
  0x90   :  { %p7651_p9 = scmp.ne.s32.totalorder %s9412_s14, %s7650_s6  ;;  %p7654_p10 = scmp.lt.u32.totalorder %s7650_s6, %s9412_s14 }
  0x92   :  { %p7656_p11 = pnand %p7654_p10, %p7651_p9 }
  0x94   :  { %7659 = shalt.err (!%p7656_p11)
}
  0x95   :  { %s7660_s12 = scalar_lea.vmem %s200_s24, 32  ;;  %p7665_p13 = scmp.lt.s32.totalorder %s200_s24, %s200_s24 }
  0x96   :  { %p7661_p12 = scmp.ne.s32.totalorder %s200_s24, %s7660_s12  ;;  %p7666_p0 = scmp.lt.s32.totalorder %s7660_s12, %s7660_s12 }
  0x98   :  { %p7667_p1 = por %p7666_p0, %p7665_p13 }
  0x9a   :  { %p7668_p2 = pnand %p7667_p1, %p7661_p12 }
  0x9c   :  { %7671 = shalt.err (!%p7668_p2)
}
  0x9d   :  { %205 = dma.hbm_to_vmem [thread:$0]  %s9412_s14, 32, %s200_s24, [#allocation26], %s7962_s28, %s7962_s28, %s7963_s29  }
  0x9e   :  { %s9445_s22 = sld [smem:[#allocation50_spill]] }
  0xa4   :  { %s7672_s18 = scalar_lea.hbm %s9445_s22, 512 }
  0xa5   :  { %p7673_p3 = scmp.ne.s32.totalorder %s9445_s22, %s7672_s18  ;;  %p7676_p4 = scmp.lt.u32.totalorder %s7672_s18, %s9445_s22 }
  0xa7   :  { %p7678_p5 = pnand %p7676_p4, %p7673_p3 }
  0xa9   :  { %7681 = shalt.err (!%p7678_p5)
}
  0xaa   :  { %s7682_s6 = scalar_lea.vmem %s8206_s0, 512  ;;  %p7687_p7 = scmp.lt.s32.totalorder %s8206_s0, %s8206_s0 }
  0xab   :  { %p7683_p6 = scmp.ne.s32.totalorder %s8206_s0, %s7682_s6  ;;  %p7688_p8 = scmp.lt.s32.totalorder %s7682_s6, %s7682_s6 }
  0xad   :  { %p7689_p9 = por %p7688_p8, %p7687_p7 }
  0xaf   :  { %p7690_p10 = pnand %p7689_p9, %p7683_p6 }
  0xb1   :  { %7693 = shalt.err (!%p7690_p10)
}
  0xb2   :  { %s7975_s14 = smov 128   ;;  %s7976_s24 = smov 8  }
  0xb3   :  { %53 = dma.hbm_to_vmem [thread:$0]  %s9445_s22, 512, %s8206_s0, [#allocation5], %s7975_s14, %s7975_s14, %s7976_s24  }
  0xb4   :  { %s7977_s3 = smov [#allocation9]   ;;  %s7978_s12 = smov [#allocation12]  }
  0xb5   :  { %s72_s5 = sshll.u32 %s7977_s3, 4  ;;  %s91_s26 = sshll.u32 %s7978_s12, 4  ;;  %s73_s5 = int_to_ptr.vmem [resolvable:$true] %s72_s5  ;;  %s8243_s26 = int_to_ptr.vmem [resolvable:$true] %s91_s26 }
  0xb6   :  { %s9446_s30 = sld [smem:[#allocation52_spill]] }
  0xbc   :  { %s7694_s18 = scalar_lea.hbm %s9446_s30, 16 }
  0xbd   :  { %p7695_p11 = scmp.ne.s32.totalorder %s9446_s30, %s7694_s18  ;;  %p7698_p12 = scmp.lt.u32.totalorder %s7694_s18, %s9446_s30 }
  0xbf   :  { %p7700_p13 = pnand %p7698_p12, %p7695_p11 }
  0xc1   :  { %7703 = shalt.err (!%p7700_p13)
}
  0xc2   :  { %s7704_s0 = scalar_lea.vmem %s73_s5, 16  ;;  %s7708_s22 = scalar_lea.vmem %s73_s5, 32 }
  0xc3   :  { %p7705_p0 = scmp.ne.s32.totalorder %s73_s5, %s7704_s0  ;;  %p7709_p1 = scmp.lt.s32.totalorder %s73_s5, %s73_s5 }
  0xc4   :  { %p7710_p2 = scmp.lt.s32.totalorder %s7708_s22, %s7704_s0 }
  0xc6   :  { %p7711_p3 = por %p7710_p2, %p7709_p1 }
  0xc8   :  { %p7712_p4 = pnand %p7711_p3, %p7705_p0 }
  0xca   :  { %7715 = shalt.err (!%p7712_p4)
}
  0xcb   :  { %75 = dma.hbm_to_vmem [thread:$0]  %s9446_s30, 16, %s73_s5, [#allocation8]  }
  0xcc   :  { %s9447_s12 = sld [smem:[#allocation54_spill]] }
  0xd2   :  { %s7716_s1 = scalar_lea.hbm %s9447_s12, 6144 }
  0xd3   :  { %p7717_p5 = scmp.ne.s32.totalorder %s9447_s12, %s7716_s1  ;;  %p7720_p6 = scmp.lt.u32.totalorder %s7716_s1, %s9447_s12 }
  0xd5   :  { %p7722_p7 = pnand %p7720_p6, %p7717_p5 }
  0xd7   :  { %7725 = shalt.err (!%p7722_p7)
}
  0xd8   :  { %s7726_s2 = scalar_lea.vmem %s8243_s26, 6144  ;;  %p7731_p9 = scmp.lt.s32.totalorder %s8243_s26, %s8243_s26 }
  0xd9   :  { %p7727_p8 = scmp.ne.s32.totalorder %s8243_s26, %s7726_s2  ;;  %p7732_p10 = scmp.lt.s32.totalorder %s7726_s2, %s7726_s2 }
  0xdb   :  { %p7733_p11 = por %p7732_p10, %p7731_p9 }
  0xdd   :  { %p7734_p12 = pnand %p7733_p11, %p7727_p8 }
  0xdf   :  { %7737 = shalt.err (!%p7734_p12)
}
  0xe0   :  { %s7979_s5 = smov 192   ;;  %s7980_s30 = smov 12  }
  0xe1   :  { %97 = dma.hbm_to_vmem [thread:$0]  %s9447_s12, 6144, %s8243_s26, [#allocation11], %s7979_s5, %s7979_s5, %s7980_s30  }
  0xe2   :  { %s7981_s22 = smov [#allocation15]   ;;  %s7738_s3 = scalar_lea.hbm %s9405_s7, 2048 }
  0xe3   :  { %s115_s6 = sshll.u32 %s7981_s22, 4  ;;  %p7739_p13 = scmp.ne.s32.totalorder %s9405_s7, %s7738_s3  ;;  %s116_s6 = int_to_ptr.vmem [resolvable:$true] %s115_s6 }
  0xe4   :  { %p7742_p0 = scmp.lt.u32.totalorder %s7738_s3, %s9405_s7 }
  0xe6   :  { %p7744_p1 = pnand %p7742_p0, %p7739_p13 }
  0xe8   :  { %7747 = shalt.err (!%p7744_p1)
}
  0xe9   :  { %s7748_s8 = scalar_lea.vmem %s116_s6, 2048  ;;  %p7753_p3 = scmp.lt.s32.totalorder %s116_s6, %s116_s6 }
  0xea   :  { %p7749_p2 = scmp.ne.s32.totalorder %s116_s6, %s7748_s8  ;;  %p7754_p4 = scmp.lt.s32.totalorder %s7748_s8, %s7748_s8 }
  0xec   :  { %p7755_p5 = por %p7754_p4, %p7753_p3 }
  0xee   :  { %p7756_p6 = pnand %p7755_p5, %p7749_p2 }
  0xf0   :  { %7759 = shalt.err (!%p7756_p6)
}
  0xf1   :  { %s7982_s26 = smov 64   ;;  %s7983_s12 = smov 4  }
  0xf2   :  { %121 = dma.hbm_to_vmem [thread:$0]  %s9405_s7, 2048, %s116_s6, [#allocation14], %s7982_s26, %s7982_s26, %s7983_s12  }
  0xf3   :  { %s7984_s30 = smov [#allocation18]   ;;  %s7985_s0 = smov [#allocation21]  }
  0xf4   :  { %s139_s27 = sshll.u32 %s7984_s30, 4  ;;  %s163_s22 = sshll.u32 %s7985_s0, 4  ;;  %s140_s27 = int_to_ptr.vmem [resolvable:$true] %s139_s27  ;;  %s164_s22 = int_to_ptr.vmem [resolvable:$true] %s163_s22 }
  0xf5   :  { %s7760_s3 = scalar_lea.hbm %s9407_s9, 32 }
  0xf6   :  { %p7761_p7 = scmp.ne.s32.totalorder %s9407_s9, %s7760_s3  ;;  %p7764_p8 = scmp.lt.u32.totalorder %s7760_s3, %s9407_s9 }
  0xf8   :  { %p7766_p9 = pnand %p7764_p8, %p7761_p7 }
  0xfa   :  { %7769 = shalt.err (!%p7766_p9)
}
  0xfb   :  { %s7770_s7 = scalar_lea.vmem %s140_s27, 32  ;;  %p7775_p11 = scmp.lt.s32.totalorder %s140_s27, %s140_s27 }
  0xfc   :  { %p7771_p10 = scmp.ne.s32.totalorder %s140_s27, %s7770_s7  ;;  %p7776_p12 = scmp.lt.s32.totalorder %s7770_s7, %s7770_s7 }
  0xfe   :  { %p7777_p13 = por %p7776_p12, %p7775_p11 }
 0x100   :  { %p7778_p0 = pnand %p7777_p13, %p7771_p10 }
 0x102   :  { %7781 = shalt.err (!%p7778_p0)
}
 0x103   :  { %145 = dma.hbm_to_vmem [thread:$0]  %s9407_s9, 32, %s140_s27, [#allocation17], %s7962_s28, %s7962_s28, %s7963_s29  }
 0x104   :  { %s7782_s30 = scalar_lea.hbm %s9409_s11, 4096 }
 0x105   :  { %p7783_p1 = scmp.ne.s32.totalorder %s9409_s11, %s7782_s30  ;;  %p7786_p2 = scmp.lt.u32.totalorder %s7782_s30, %s9409_s11 }
 0x107   :  { %p7788_p3 = pnand %p7786_p2, %p7783_p1 }
 0x109   :  { %7791 = shalt.err (!%p7788_p3)
}
 0x10a   :  { %s7792_s1 = scalar_lea.vmem %s164_s22, 4096  ;;  %p7797_p5 = scmp.lt.s32.totalorder %s164_s22, %s164_s22 }
 0x10b   :  { %p7793_p4 = scmp.ne.s32.totalorder %s164_s22, %s7792_s1  ;;  %p7798_p6 = scmp.lt.s32.totalorder %s7792_s1, %s7792_s1 }
 0x10d   :  { %p7799_p7 = por %p7798_p6, %p7797_p5 }
 0x10f   :  { %p7800_p8 = pnand %p7799_p7, %p7793_p4 }
 0x111   :  { %7803 = shalt.err (!%p7800_p8)
}
 0x112   :  { %169 = dma.hbm_to_vmem [thread:$0]  %s9409_s11, 4096, %s164_s22, [#allocation20], %s7975_s14, %s7975_s14, %s7976_s24  }
 0x113   :  { %s7986_s4 = smov [#allocation24]   ;;  %s7987_s21 = smov [#allocation27]  }
 0x114   :  { %s187_s18 = sshll.u32 %s7986_s4, 4  ;;  %s211_s7 = sshll.u32 %s7987_s21, 4  ;;  %s188_s18 = int_to_ptr.vmem [resolvable:$true] %s187_s18  ;;  %s212_s7 = int_to_ptr.vmem [resolvable:$true] %s211_s7 }
 0x115   :  { %s7804_s2 = scalar_lea.hbm %s9411_s13, 4096 }
 0x116   :  { %p7805_p9 = scmp.ne.s32.totalorder %s9411_s13, %s7804_s2  ;;  %p7808_p10 = scmp.lt.u32.totalorder %s7804_s2, %s9411_s13 }
 0x118   :  { %p7810_p11 = pnand %p7808_p10, %p7805_p9 }
 0x11a   :  { %7813 = shalt.err (!%p7810_p11)
}
 0x11b   :  { %s7814_s11 = scalar_lea.vmem %s188_s18, 4096  ;;  %p7819_p13 = scmp.lt.s32.totalorder %s188_s18, %s188_s18 }
 0x11c   :  { %p7815_p12 = scmp.ne.s32.totalorder %s188_s18, %s7814_s11  ;;  %p7820_p0 = scmp.lt.s32.totalorder %s7814_s11, %s7814_s11 }
 0x11e   :  { %p7821_p1 = por %p7820_p0, %p7819_p13 }
 0x120   :  { %p7822_p2 = pnand %p7821_p1, %p7815_p12 }
 0x122   :  { %7825 = shalt.err (!%p7822_p2)
}
 0x123   :  { %193 = dma.hbm_to_vmem [thread:$0]  %s9411_s13, 4096, %s188_s18, [#allocation23], %s7982_s26, %s7982_s26, %s7983_s12  }
 0x124   :  { %s9448_s9 = sld [smem:[#allocation55_spill]] }
 0x12a   :  { %s7826_s27 = scalar_lea.hbm %s9448_s9, 32 }
 0x12b   :  { %p7827_p3 = scmp.ne.s32.totalorder %s9448_s9, %s7826_s27  ;;  %p7830_p4 = scmp.lt.u32.totalorder %s7826_s27, %s9448_s9 }
 0x12d   :  { %p7832_p5 = pnand %p7830_p4, %p7827_p3 }
 0x12f   :  { %7835 = shalt.err (!%p7832_p5)
}
 0x130   :  { %s7836_s2 = scalar_lea.vmem %s212_s7, 32  ;;  %p7841_p7 = scmp.lt.s32.totalorder %s212_s7, %s212_s7 }
 0x131   :  { %p7837_p6 = scmp.ne.s32.totalorder %s212_s7, %s7836_s2  ;;  %p7842_p8 = scmp.lt.s32.totalorder %s7836_s2, %s7836_s2 }
 0x133   :  { %p7843_p9 = por %p7842_p8, %p7841_p7 }
 0x135   :  { %p7844_p10 = pnand %p7843_p9, %p7837_p6 }
 0x137   :  { %7847 = shalt.err (!%p7844_p10)
}
 0x138   :  { %217 = dma.hbm_to_vmem [thread:$0]  %s9448_s9, 32, %s212_s7, [#allocation26], %s7962_s28, %s7962_s28, %s7963_s29  }
 0x139   :  { %s7988_s18 = smov [#allocation28]   ;;  %s7848_s23 = scalar_lea.hbm %s9414_s16, 32 }
 0x13a   :  { %s223_s5 = sshll.u32 %s7988_s18, 4  ;;  %p7849_p11 = scmp.ne.s32.totalorder %s9414_s16, %s7848_s23  ;;  %s224_s5 = int_to_ptr.vmem [resolvable:$true] %s223_s5 }
 0x13b   :  { %p7852_p12 = scmp.lt.u32.totalorder %s7848_s23, %s9414_s16 }
 0x13d   :  { %p7854_p13 = pnand %p7852_p12, %p7849_p11 }
 0x13f   :  { %7857 = shalt.err (!%p7854_p13)
}
 0x140   :  { %s7858_s1 = scalar_lea.vmem %s224_s5, 32  ;;  %p7863_p1 = scmp.lt.s32.totalorder %s224_s5, %s224_s5 }
 0x141   :  { %p7859_p0 = scmp.ne.s32.totalorder %s224_s5, %s7858_s1  ;;  %p7864_p2 = scmp.lt.s32.totalorder %s7858_s1, %s7858_s1 }
 0x143   :  { %p7865_p3 = por %p7864_p2, %p7863_p1 }
 0x145   :  { %p7866_p4 = pnand %p7865_p3, %p7859_p0 }
 0x147   :  { %7869 = shalt.err (!%p7866_p4)
}
 0x148   :  { %229 = dma.hbm_to_vmem [thread:$0]  %s9414_s16, 32, %s224_s5, [#allocation29], %s7962_s28, %s7962_s28, %s7963_s29  }
 0x149   :  { %7938 = dma.done.wait [#allocation5], 512  }
 0x14a   :  { %7939 = vsyncadd [#allocation5], 4294966784 }
 0x14b   :  { %7940 = dma.done.wait [#allocation8], 48  }
 0x14c   :  { %7941 = vsyncadd [#allocation8], 4294967248 }
 0x14d   :  { %7942 = dma.done.wait [#allocation11], 6160  }
 0x14e   :  { %7943 = vsyncadd [#allocation11], 4294961136 }
 0x14f   :  { %7944 = dma.done.wait [#allocation14], 2144  }
 0x150   :  { %7945 = vsyncadd [#allocation14], 4294965152 }
 0x151   :  { %7946 = dma.done.wait [#allocation17], 64  }
 0x152   :  { %7947 = vsyncadd [#allocation17], 4294967232 }
 0x153   :  { %7948 = dma.done.wait [#allocation20], 4128  }
 0x154   :  { %7949 = vsyncadd [#allocation20], 4294963168 }
 0x155   :  { %7950 = dma.done.wait [#allocation23], 4160  }
 0x156   :  { %7951 = vsyncadd [#allocation23], 4294963136 }
 0x157   :  { %7952 = dma.done.wait [#allocation26], 64  }
 0x158   :  { %7953 = vsyncadd [#allocation26], 4294967232 }
 0x159   :  { %7954 = dma.done.wait [#allocation29], 32  }
 0x15a   :  { %7955 = vsyncadd [#allocation29], 4294967264  ;;  %v283_v0 = vld [vmem:[#allocation4] sm:$0xff]  ;;  %v284_v1 = vld [vmem:[#allocation4 + $0x8] sm:$0xff]  ;;  %v9428_v28 = vmov 0   ;;  %vm642_vm0 = vcmask 261120  }
 0x15b   :  { %289 = vadd.xlane.f32.xlu0 %v283_v0  ;;  %v285_v2 = vld [vmem:[#allocation4 + $0x10] sm:$0xff]  ;;  %v286_v14 = vld [vmem:[#allocation4 + $0x18] sm:$0xff]  ;;  %565 = vmatprep.mubr.bf16.mxu0 %v9428_v28  ;;  %v5948_v45 = vld [vmem:[#allocation9] ss:$0 sm:$0xff]  ;;  %s7990_s16 = smov 96   ;;  %vm730_vm2 = vcmask 130048  }
 0x15c   :  { %v7136_v3 = vld [vmem:[#allocation12 + $0x4] ss:$12 sps:$4 sm:$0xff]   ;;  %v7138_v4 = vld [vmem:[#allocation12] ss:$12 sps:$4 sm:$0xff]   ;;  %v7139_v5 = vld [vmem:[#allocation12 + $0x1c] ss:$12 sps:$4 sm:$0xff]  }
 0x15d   :  { %533 = vmatprep.subr.bf16.mxu0 %v7136_v3  ;;  %v7141_v15 = vld [vmem:[#allocation12 + $0x18] ss:$12 sps:$4 sm:$0xff]   ;;  %v7142_v16 = vld [vmem:[#allocation12 + $0x34] ss:$12 sps:$4 sm:$0xff]   ;;  %v7144_v17 = vld [vmem:[#allocation12 + $0x30] ss:$12 sps:$4 sm:$0xff]  }
 0x15e   :  { %534 = vmatpush1.bf16.msra.mxu0 %v7138_v4  ;;  %v7145_v18 = vld [vmem:[#allocation12 + $0x4c] ss:$12 sps:$4 sm:$0xff]   ;;  %v7147_v19 = vld [vmem:[#allocation12 + $0x48] ss:$12 sps:$4 sm:$0xff]   ;;  %v7148_v20 = vld [vmem:[#allocation12 + $0x64] ss:$12 sps:$4 sm:$0xff]  }
 0x15f   :  { %291 = vadd.xlane.f32.xlu0 %v284_v1  ;;  %535 = vmatprep.subr.bf16.mxu0 %v7139_v5  ;;  %v7150_v21 = vld [vmem:[#allocation12 + $0x60] ss:$12 sps:$4 sm:$0xff]   ;;  %v7151_v23 = vld [vmem:[#allocation12 + $0x7c] ss:$12 sps:$4 sm:$0xff]   ;;  %v7153_v25 = vld [vmem:[#allocation12 + $0x78] ss:$12 sps:$4 sm:$0xff]  }
 0x160   :  { %v7154_v26 = vld [vmem:[#allocation12 + $0x94] ss:$12 sps:$4 sm:$0xff]   ;;  %v7156_v29 = vld [vmem:[#allocation12 + $0x90] ss:$12 sps:$4 sm:$0xff]   ;;  %v7157_v31 = vld [vmem:[#allocation12 + $0xac] ss:$12 sps:$4 sm:$0xff]  }
 0x161   :  { %v7159_v32 = vld [vmem:[#allocation12 + $0xa8] ss:$12 sps:$4 sm:$0xff]   ;;  %v5949_v49 = vld [vmem:[#allocation10] ss:$0 sm:$0xff]  ;;  %v7161_v55 = vld [vmem:[#allocation12 + $0x20] ss:$12 sps:$4 sm:$0xff]  }
 0x162   :  { %536 = vmatpush1.bf16.msra.mxu0 %v7141_v15  ;;  %v7160_v54 = vld [vmem:[#allocation12 + $0x8] ss:$12 sps:$4 sm:$0xff]   ;;  %v7162_v56 = vld [vmem:[#allocation12 + $0x38] ss:$12 sps:$4 sm:$0xff]   ;;  %v7163_v57 = vld [vmem:[#allocation12 + $0x50] ss:$12 sps:$4 sm:$0xff]  }
 0x163   :  { %293 = vadd.xlane.f32.xlu0 %v285_v2  ;;  %537 = vmatprep.subr.bf16.mxu0 %v7142_v16  ;;  %v7164_v58 = vld [vmem:[#allocation12 + $0x68] ss:$12 sps:$4 sm:$0xff]   ;;  %v7165_v59 = vld [vmem:[#allocation12 + $0x80] ss:$12 sps:$4 sm:$0xff]   ;;  %v7166_v60 = vld [vmem:[#allocation12 + $0x98] ss:$12 sps:$4 sm:$0xff]  }
 0x164   :  { %6433 = vmatprep.subr.bf16.mxu1 %v7160_v54  ;;  %v7167_v61 = vld [vmem:[#allocation12 + $0xb0] ss:$12 sps:$4 sm:$0xff]   ;;  %v388_v16 = vld [vmem:[#allocation13] sm:$0x7]  ;;  %vm8404_vm1 = vmpackc.low %vm642_vm0, %vm642_vm0  ;;  %vm1462_vm3 = vcmask 523264   ;;  %vm1465_vm4 = vcmask 785408  }
 0x165   :  { %6434 = vmatpush3.bf16.msra.mxu1 %v7160_v54  ;;  %s7992_s22 = smov 80   ;;  %vm7993_vm5 = vmmov 0   ;;  %s7994_s1 = smov 112   ;;  %vm5608_vm8 = vcmask 1040384   ;;  %vm5808_vm9 = vcmask 392192   ;;  %vm5813_vm10 = vcmask 654336  }
 0x166   :  { %538 = vmatpush1.bf16.msra.mxu0 %v7144_v17  ;;  %6435 = vmatprep.subr.bf16.mxu1 %v7161_v55  ;;  %s9259_s7 = sld [smem:[#allocation3 + $0x1]]  ;;  %vm5818_vm11 = vcmask 916480  }
 0x167   :  { %539 = vmatprep.subr.bf16.mxu0 %v7145_v18 }
 0x169   :  { %6436 = vmatpush3.bf16.msra.mxu1 %v7161_v55 }
 0x16a   :  { %540 = vmatpush1.bf16.msra.mxu0 %v7147_v19  ;;  %6437 = vmatprep.subr.bf16.mxu1 %v7162_v56 }
 0x16b   :  { %541 = vmatprep.subr.bf16.mxu0 %v7148_v20 }
 0x16d   :  { %6438 = vmatpush3.bf16.msra.mxu1 %v7162_v56 }
 0x16e   :  { %542 = vmatpush1.bf16.msra.mxu0 %v7150_v21  ;;  %6439 = vmatprep.subr.bf16.mxu1 %v7163_v57 }
 0x16f   :  { %543 = vmatprep.subr.bf16.mxu0 %v7151_v23 }
 0x171   :  { %6440 = vmatpush3.bf16.msra.mxu1 %v7163_v57 }
 0x172   :  { %544 = vmatpush1.bf16.msra.mxu0 %v7153_v25  ;;  %6441 = vmatprep.subr.bf16.mxu1 %v7164_v58 }
 0x173   :  { %545 = vmatprep.subr.bf16.mxu0 %v7154_v26 }
 0x175   :  { %6442 = vmatpush3.bf16.msra.mxu1 %v7164_v58 }
 0x176   :  { %546 = vmatpush1.bf16.msra.mxu0 %v7156_v29  ;;  %6443 = vmatprep.subr.bf16.mxu1 %v7165_v59 }
 0x177   :  { %547 = vmatprep.subr.bf16.mxu0 %v7157_v31 }
 0x179   :  { %6444 = vmatpush3.bf16.msra.mxu1 %v7165_v59 }
 0x17a   :  { %548 = vmatpush1.bf16.msra.mxu0 %v7159_v32  ;;  %6445 = vmatprep.subr.bf16.mxu1 %v7166_v60 }
 0x17d   :  { %6446 = vmatpush3.bf16.msra.mxu1 %v7166_v60 }
 0x17e   :  { %6447 = vmatprep.subr.bf16.mxu1 %v7167_v61 }
 0x181   :  { %6448 = vmatpush3.bf16.msra.mxu1 %v7167_v61 }
 0x1e8   :  { %v290_v6 = vpop.xlane.xlu0 %289 }
 0x1e9   :  { %v298_v7 = vmul.f32 0.0078125, %v290_v6 }
 0x1eb   :  { %v302_v8 = vsub.f32 %v283_v0, %v298_v7 }
 0x1ec   :  { %v292_v9 = vpop.xlane.xlu0 %291 }
 0x1ed   :  { %v299_v10 = vmul.f32 0.0078125, %v292_v9  ;;  %v306_v11 = vmul.f32 %v302_v8, %v302_v8 }
 0x1ef   :  { %310 = vadd.xlane.f32.xlu1 %v306_v11  ;;  %v303_v12 = vsub.f32 %v284_v1, %v299_v10 }
 0x1f0   :  { %v294_v22 = vpop.xlane.xlu0 %293 }
 0x1f1   :  { %v307_v13 = vmul.f32 %v303_v12, %v303_v12  ;;  %v300_v24 = vmul.f32 0.0078125, %v294_v22 }
 0x1f3   :  { %312 = vadd.xlane.f32.xlu1 %v307_v13  ;;  %v8364_v27 = vsub.f32 %v285_v2, %v300_v24  ;;  %v390_v13 = vlaneseq }
 0x1f5   :  { %v308_v30 = vmul.f32 %v8364_v27, %v8364_v27 }
 0x1f7   :  { %295 = vadd.xlane.f32.xlu1 %v286_v14  ;;  %314 = vadd.xlane.f32.xlu0 %v308_v30 }
 0x27c   :  { %v311_v33 = vpop.xlane.xlu1 %310 }
 0x27d   :  { %v318_v34 = vmul.f32 0.0078125, %v311_v33 }
 0x27f   :  { %v322_v35 = vadd.f32 1e-12, %v318_v34 }
 0x280   :  { %v313_v36 = vpop.xlane.xlu1 %312 }
 0x281   :  { %7304 = vrsqrt.f32 %v322_v35  ;;  %v319_v37 = vmul.f32 0.0078125, %v313_v36 }
 0x283   :  { %v323_v38 = vadd.f32 1e-12, %v319_v37 }
 0x284   :  { %v296_v39 = vpop.xlane.xlu1 %295  ;;  %v315_v62 = vpop.xlane.xlu0 %314 }
 0x285   :  { %7306 = vrsqrt.f32 %v323_v38  ;;  %v301_v40 = vmul.f32 0.0078125, %v296_v39  ;;  %v320_v63 = vmul.f32 0.0078125, %v315_v62 }
 0x287   :  { %v305_v41 = vsub.f32 %v286_v14, %v301_v40  ;;  %v324_v0 = vadd.f32 1e-12, %v320_v63  ;;  %v8383_v14 = vshrl.u32 %v390_v13, 7 }
 0x289   :  { %v309_v42 = vmul.f32 %v305_v41, %v305_v41  ;;  %7308 = vrsqrt.f32 %v324_v0  ;;  %v8386_v15 = vsub.s32 0, %v8383_v14  ;;  %v8389_v17 = vsub.s32 1, %v8383_v14 }
 0x28b   :  { %v7305_v43 = vpop.eup %7304  ;;  %316 = vadd.xlane.f32.xlu1 %v309_v42  ;;  %v8392_v18 = vrot.slane %v388_v16, %v8386_v15  ;;  %v397_v20 = vrot.slane %v388_v16, %v8389_v17 }
 0x28c   :  { %v330_v44 = vmul.f32 %v7305_v43, %v302_v8 }
 0x28e   :  { %v340_v48 = vmul.f32 %v5948_v45, %v330_v44  ;;  %v400_v44 = vsub.s32 2, %v8383_v14 }
 0x28f   :  { %v7307_v46 = vpop.eup %7306 }
 0x290   :  { %v331_v47 = vmul.f32 %v7307_v46, %v303_v12  ;;  %v8369_v51 = vadd.f32 %v5949_v49, %v340_v48 }
 0x292   :  { %v341_v50 = vmul.f32 %v5948_v45, %v331_v47 }
 0x293   :  { %v7309_v4 = vpop.eup %7308 }
 0x294   :  { %v8371_v52 = vadd.f32 %v5949_v49, %v341_v50  ;;  %v332_v5 = vmul.f32 %v7309_v4, %v8364_v27 }
 0x296   :  { %v354_v53 = vpack.c.bf16 %v8371_v52, %v8369_v51  ;;  %v342_v6 = vmul.f32 %v5948_v45, %v332_v5 }
 0x298   :  { %566 = vmatmul.mubr.bf16.vlgmr.msra.gmra.mrb[0].mxu0 %v354_v53  ;;  %6449 = vmatprep.mubr.bf16.mxu1 %v354_v53  ;;  %v8377_v10 = vadd.f32 %v5949_v49, %v342_v6  ;;  %v8466_v6 = vld [vmem:[#allocation7] ss:$0 sm:$0xff] }
 0x299   :  { %575 = vmatprep.mubr.bf16.mxu0 %v9428_v28 }
 0x318   :  { %v317_v1 = vpop.xlane.xlu1 %316 }
 0x319   :  { %v321_v2 = vmul.f32 0.0078125, %v317_v1 }
 0x31b   :  { %v325_v3 = vadd.f32 1e-12, %v321_v2 }
 0x31d   :  { %7310 = vrsqrt.f32 %v325_v3 }
 0x327   :  { %v7311_v7 = vpop.eup %7310 }
 0x328   :  { %v333_v8 = vmul.f32 %v7311_v7, %v305_v41 }
 0x32a   :  { %v343_v9 = vmul.f32 %v5948_v45, %v333_v8  ;;  %v401_v45 = vrot.slane %v388_v16, %v400_v44 }
 0x32c   :  { %v8379_v11 = vadd.f32 %v5949_v49, %v343_v9 }
 0x32e   :  { %v355_v12 = vpack.c.bf16 %v8379_v11, %v8377_v10 }
 0x330   :  { %576 = vmatmul.mubr.bf16.gmra.mrb[4].mxu0 %v355_v12  ;;  %6450 = vmatmul.mubr.bf16.vlgmr.msra.gmra.mrb[0].mxu1 %v355_v12 }
 0x36b   :  { %v567_v19 = vpop.f32.mrb[0].mxu0 }
 0x36c   :  { %v8396_v21 = vadd.f32 %v567_v19, %v8392_v18  ;;  %v569_v22 = vpop.f32.mrb[1].mxu0 }
 0x36d   :  { %v571_v23 = vpop.f32.mrb[2].mxu0  ;;  %v570_v25 = vadd.f32 %v569_v22, %v397_v20 }
 0x36e   :  { %v573_v24 = vpop.f32.mrb[3].mxu0  ;;  %834 = vrot.lane.b32.xlu1 %v8396_v21, %s7990_s16  ;;  %6457 = vmatprep.mubr.msk.f32.mxu1 %vm642_vm0, %v8396_v21  ;;  %v8419_v31 = vadd.f32 %v571_v23, %v8392_v18 }
 0x36f   :  { %v574_v26 = vadd.f32 %v573_v24, %v397_v20 }
 0x371   :  { %v6757_v29 = vpack.c.bf16 %v574_v26, %v570_v25  ;;  %v8408_v30 = vpack.i.bf16 %v574_v26, %v570_v25 }
 0x373   :  { %6759 = vmatprep.subr.msk.bf16.mxu1 %vm8404_vm1, %v6757_v29  ;;  %6962 = vrot.lane.b32.xlu1 %v8408_v30, %s7982_s26 }
 0x374   :  { %6957 = vrot.lane.b32.xlu0 %v8408_v30, %s7990_s16  ;;  %6762 = vmatpush3.bf16.xpose.msk.msra.mxu1 %vm8404_vm1, %v6757_v29 }
 0x377   :  { %836 = vrot.lane.b32.xlu1 %v8419_v31, %s7990_s16 }
 0x378   :  { %1036 = vrot.lane.b32.xlu0 %v8396_v21, %s7982_s26 }
 0x37b   :  { %1038 = vrot.lane.b32.xlu1 %v8419_v31, %s7982_s26  ;;  %6458 = vmatmul.mubr.msk.f32.vlgmr.msra.gmra.mrb[4].mxu1 %vm642_vm0, %v8419_v31 }
 0x3e0   :  { %v835_v32 = vpop.permute.xlu1 %834 }
 0x3e1   :  { %6471 = vmatprep.mubr.msk.f32.mxu0 %vm642_vm0, %v835_v32 }
 0x3e5   :  { %v6963_v33 = vpop.permute.xlu1 %6962 }
 0x3e6   :  { %v6958_v34 = vpop.permute.xlu0 %6957  ;;  %v6965_v35 = vunpack.i.h.bf16 %v6963_v33  ;;  %v6964_v36 = vunpack.i.l.bf16 %v6963_v33 }
 0x3e7   :  { %v6960_v37 = vunpack.i.h.bf16 %v6958_v34  ;;  %v6959_v38 = vunpack.i.l.bf16 %v6958_v34 }
 0x3e8   :  { %v6777_v40 = vpack.c.bf16 %v6965_v35, %v6964_v36 }
 0x3e9   :  { %v6767_v39 = vpack.c.bf16 %v6960_v37, %v6959_v38  ;;  %v837_v41 = vpop.permute.xlu1 %836 }
 0x3ea   :  { %v1037_v42 = vpop.permute.xlu0 %1036 }
 0x3eb   :  { %6769 = vmatprep.subr.msk.bf16.mxu0 %vm8404_vm1, %v6767_v39 }
 0x3ec   :  { %6772 = vmatpush3.bf16.xpose.msk.msra.mxu0 %vm8404_vm1, %v6767_v39 }
 0x3ed   :  { %6779 = vmatprep.subr.msk.bf16.mxu0 %vm8404_vm1, %v6777_v40  ;;  %v1039_v43 = vpop.permute.xlu1 %1038 }
 0x3f3   :  { %6472 = vmatmul.mubr.msk.f32.vlgmr.msra.gmra.mrb[8].mxu0 %vm642_vm0, %v837_v41 }
 0x3f4   :  { %6782 = vmatpush3.bf16.xpose.msk.msra.mxu0 %vm8404_vm1, %v6777_v40  ;;  %6485 = vmatprep.mubr.msk.f32.mxu0 %vm642_vm0, %v1037_v42 }
 0x3fb   :  { %6486 = vmatmul.mubr.msk.f32.vlgmr.msra.gmra.mrb[10].mxu0 %vm642_vm0, %v1039_v43 }
 0x403   :  { %v577_v46 = vpop.f32.mrb[4].mxu0  ;;  %v6451_v47 = vpop.f32.mrb[0].mxu1 }
 0x404   :  { %v8445_v48 = vadd.f32 %v577_v46, %v8392_v18  ;;  %v579_v49 = vpop.f32.mrb[5].mxu0  ;;  %v629_v50 = vadd.f32 %v6451_v47, %v401_v45  ;;  %v620_v53 = vpop.f32.mrb[1].mxu1 }
 0x405   :  { %v580_v54 = vadd.f32 %v579_v49, %v397_v20  ;;  %v581_v55 = vpop.f32.mrb[6].mxu0  ;;  %v621_v56 = vadd.f32 %v620_v53, %v401_v45  ;;  %v6452_v57 = vpop.f32.mrb[2].mxu1 }
 0x406   :  { %v583_v58 = vpop.f32.mrb[7].mxu0  ;;  %v632_v59 = vadd.f32 %v6452_v57, %v401_v45  ;;  %v623_v60 = vpop.f32.mrb[3].mxu1  ;;  %6513 = vmatprep.mubr.msk.f32.mxu0 %vm642_vm0, %v8445_v48  ;;  %v8462_v5 = vadd.f32 %v581_v55, %v8392_v18 }
 0x407   :  { %v584_v61 = vadd.f32 %v583_v58, %v397_v20  ;;  %v624_v62 = vadd.f32 %v623_v60, %v401_v45 }
 0x408   :  { %v8449_v63 = vpack.c.bf16 %v632_v59, %v629_v50  ;;  %v8451_v0 = vpack.i.bf16 %v632_v59, %v629_v50 }
 0x409   :  { %v6797_v1 = vpack.c.bf16 %v584_v61, %v580_v54  ;;  %v6763_v2 = vpack.c.bf16 %v624_v62, %v621_v56  ;;  %v8453_v3 = vpack.i.bf16 %v624_v62, %v621_v56  ;;  %v8455_v4 = vpack.i.bf16 %v584_v61, %v580_v54 }
 0x40b   :  { %6799 = vmatprep.subr.msk.bf16.mxu0 %vm8404_vm1, %v6797_v1  ;;  %6764 = vmatprep.subr.bf16.mxu1 %v6763_v2 }
 0x40c   :  { %6802 = vmatpush3.bf16.xpose.msk.msra.mxu0 %vm8404_vm1, %v6797_v1  ;;  %6766 = vmatpush3.bf16.msra.mxu1 %v6763_v2 }
 0x413   :  { %6514 = vmatmul.mubr.msk.f32.vlgmr.msra.gmra.mrb[12].mxu0 %vm642_vm0, %v8462_v5 }
 0x44e   :  { %v6459_v7 = vpop.f32.mrb[4].mxu1 }
 0x44f   :  { %v727_v8 = vadd.f32 %v6459_v7, %v8466_v6  ;;  %v721_v9 = vpop.f32.mrb[5].mxu1 }
 0x450   :  { %v722_v12 = vadd.f32 %v8466_v6, %v721_v9 }
 0x451   :  { %v734_v13 = vsel %vm730_vm2, %v727_v8, -inf }
 0x452   :  { %735 = vmax.xlane.f32.xlu1 %v734_v13  ;;  %v731_v16 = vsel %vm730_vm2, %v722_v12, -inf }
 0x453   :  { %732 = vmax.xlane.f32.xlu0 %v731_v16 }
 0x4c6   :  { %v6473_v18 = vpop.f32.mrb[8].mxu0 }
 0x4c7   :  { %v916_v19 = vpop.f32.mrb[9].mxu0  ;;  %v922_v22 = vadd.f32 %v6473_v18, %v8466_v6 }
 0x4c8   :  { %v917_v20 = vadd.f32 %v8466_v6, %v916_v19 }
 0x4c9   :  { %v928_v25 = vsel %vm730_vm2, %v922_v22, -inf }
 0x4ca   :  { %v925_v23 = vsel %vm730_vm2, %v917_v20, -inf }
 0x4cb   :  { %926 = vmax.xlane.f32.xlu0 %v925_v23 }
 0x4ce   :  { %v6487_v24 = vpop.f32.mrb[10].mxu0 }
 0x4cf   :  { %v1124_v26 = vadd.f32 %v6487_v24, %v8466_v6  ;;  %v1118_v29 = vpop.f32.mrb[11].mxu0  ;;  %929 = vmax.xlane.f32.xlu0 %v928_v25 }
 0x4d0   :  { %v1119_v32 = vadd.f32 %v8466_v6, %v1118_v29 }
 0x4d1   :  { %v1130_v33 = vsel %vm730_vm2, %v1124_v26, -inf }
 0x4d2   :  { %1131 = vmax.xlane.f32.xlu1 %v1130_v33  ;;  %v1127_v34 = vsel %vm730_vm2, %v1119_v32, -inf }
 0x4d3   :  { %1128 = vmax.xlane.f32.xlu0 %v1127_v34 }
 0x4df   :  { %v736_v35 = vpop.xlane.xlu1 %735 }
 0x4e0   :  { %v738_v36 = vsub.f32 %v727_v8, %v736_v35  ;;  %v733_v37 = vpop.xlane.xlu0 %732 }
 0x4e1   :  { %v737_v38 = vsub.f32 %v722_v12, %v733_v37 }
 0x4e2   :  { %v741_v39 = vmul.f32 1.442695, %v738_v36 }
 0x4e3   :  { %v739_v40 = vmul.f32 1.442695, %v737_v38 }
 0x4e4   :  { %7312 = vpow2.f32 %v741_v39 }
 0x4e5   :  { %7314 = vpow2.f32 %v739_v40 }
 0x4e6   :  { %v8480_v41 = vpop.f32.mrb[12].mxu0 }
 0x4e7   :  { %v8482_v42 = vpop.f32.mrb[13].mxu0 }
 0x4ee   :  { %v7313_v43 = vpop.eup %7312 }
 0x4ef   :  { %v7315_v45 = vpop.eup %7314  ;;  %v746_v46 = vsel %vm730_vm2, %v7313_v43, 0.0 }
 0x4f0   :  { %747 = vadd.xlane.f32.xlu1 %v746_v46  ;;  %v743_v47 = vsel %vm730_vm2, %v7315_v45, 0.0 }
 0x4f1   :  { %744 = vadd.xlane.f32.xlu0 %v743_v47 }
 0x558   :  { %v927_v49 = vpop.xlane.xlu0 %926 }
 0x559   :  { %v931_v50 = vsub.f32 %v917_v20, %v927_v49 }
 0x55b   :  { %v933_v53 = vmul.f32 1.442695, %v931_v50 }
 0x55c   :  { %v930_v54 = vpop.xlane.xlu0 %929 }
 0x55d   :  { %7316 = vpow2.f32 %v933_v53  ;;  %v932_v55 = vsub.f32 %v922_v22, %v930_v54 }
 0x55f   :  { %v935_v56 = vmul.f32 1.442695, %v932_v55  ;;  %v1132_v57 = vpop.xlane.xlu1 %1131 }
 0x560   :  { %v1134_v58 = vsub.f32 %v1124_v26, %v1132_v57  ;;  %v1129_v59 = vpop.xlane.xlu0 %1128 }
 0x561   :  { %7318 = vpow2.f32 %v935_v56  ;;  %v1133_v60 = vsub.f32 %v1119_v32, %v1129_v59 }
 0x562   :  { %v1137_v61 = vmul.f32 1.442695, %v1134_v58 }
 0x563   :  { %v1135_v62 = vmul.f32 1.442695, %v1133_v60 }
 0x564   :  { %7320 = vpow2.f32 %v1137_v61 }
 0x565   :  { %7322 = vpow2.f32 %v1135_v62 }
 0x567   :  { %v7317_v1 = vpop.eup %7316 }
 0x568   :  { %v937_v2 = vsel %vm730_vm2, %v7317_v1, 0.0 }
 0x569   :  { %938 = vadd.xlane.f32.xlu0 %v937_v2 }
 0x56b   :  { %v7319_v7 = vpop.eup %7318 }
 0x56c   :  { %v940_v8 = vsel %vm730_vm2, %v7319_v7, 0.0 }
 0x56d   :  { %941 = vadd.xlane.f32.xlu1 %v940_v8  ;;  %v8546_v8 = vld [vmem:[#allocation7 + $0x1] ss:$0 sm:$0xff] }
 0x56e   :  { %v7321_v9 = vpop.eup %7320 }
 0x56f   :  { %v7323_v12 = vpop.eup %7322  ;;  %v1142_v13 = vsel %vm730_vm2, %v7321_v9, 0.0 }
 0x570   :  { %v1139_v16 = vsel %vm730_vm2, %v7323_v12, 0.0 }
 0x571   :  { %1143 = vadd.xlane.f32.xlu1 %v1142_v13  ;;  %1140 = vadd.xlane.f32.xlu0 %v1139_v16 }
 0x57d   :  { %v748_v18 = vpop.xlane.xlu1 %747 }
 0x57e   :  { %7324 = vrcp.f32 %v748_v18  ;;  %v745_v19 = vpop.xlane.xlu0 %744  ;;  %v1555_v18 = vadd.f32 %v8546_v8, %v8482_v42 }
 0x57f   :  { %7326 = vrcp.f32 %v745_v19 }
 0x582   :  { %6972 = vrot.lane.b32.xlu1 %v8453_v3, %s7982_s26 }
 0x586   :  { %6977 = vrot.lane.b32.xlu1 %v8408_v30, %s7971_s10 }
 0x587   :  { %6967 = vrot.lane.b32.xlu0 %v8453_v3, %s7990_s16 }
 0x588   :  { %v7325_v20 = vpop.eup %7324 }
 0x589   :  { %v7327_v22 = vpop.eup %7326  ;;  %v8502_v24 = vmul.f32 %v7325_v20, %v7313_v43 }
 0x58a   :  { %1236 = vrot.lane.b32.xlu1 %v8396_v21, %s7971_s10  ;;  %v8498_v23 = vmul.f32 %v7327_v22, %v7315_v45  ;;  %v1560_v22 = vadd.f32 %v8480_v41, %v8546_v8 }
 0x58b   :  { %1238 = vrot.lane.b32.xlu0 %v8419_v31, %s7971_s10 }
 0x58c   :  { %9451 = vst [vmem:[#allocation46_spill] sm:$0xff] %v8498_v23  ;;  %6464 = vmatprep.mubr.msk.f32.mxu1 %vm730_vm2, %v8498_v23 }
 0x58d   :  { %6465 = vmatmul.mubr.msk.f32.vlgmr.msra.gmra.mrb[6].mxu1 %vm730_vm2, %v8502_v24 }
 0x5f6   :  { %v939_v30 = vpop.xlane.xlu0 %938 }
 0x5f7   :  { %7328 = vrcp.f32 %v939_v30  ;;  %v1563_v30 = vsel %vm730_vm2, %v1555_v18, -inf }
 0x5fa   :  { %v942_v25 = vpop.xlane.xlu1 %941 }
 0x5fb   :  { %7330 = vrcp.f32 %v942_v25  ;;  %v1566_v25 = vsel %vm730_vm2, %v1560_v22, -inf }
 0x5fe   :  { %v1144_v26 = vpop.xlane.xlu1 %1143  ;;  %v1141_v29 = vpop.xlane.xlu0 %1140 }
 0x5ff   :  { %7332 = vrcp.f32 %v1144_v26 }
 0x600   :  { %7334 = vrcp.f32 %v1141_v29 }
 0x601   :  { %v7329_v21 = vpop.eup %7328 }
 0x602   :  { %v6973_v32 = vpop.permute.xlu1 %6972  ;;  %v6968_v33 = vpop.permute.xlu0 %6967  ;;  %v8508_v31 = vmul.f32 %v7329_v21, %v7317_v1 }
 0x603   :  { %v6975_v34 = vunpack.i.h.bf16 %v6973_v32  ;;  %v6974_v35 = vunpack.i.l.bf16 %v6973_v32  ;;  %v6970_v36 = vunpack.i.h.bf16 %v6968_v33  ;;  %v6969_v37 = vunpack.i.l.bf16 %v6968_v33 }
 0x604   :  { %6478 = vmatprep.mubr.msk.f32.mxu1 %vm730_vm2, %v8508_v31 }
 0x605   :  { %v6773_v38 = vpack.c.bf16 %v6970_v36, %v6969_v37  ;;  %v7331_v39 = vpop.eup %7330  ;;  %v6783_v46 = vpack.c.bf16 %v6975_v34, %v6974_v35 }
 0x606   :  { %v6978_v40 = vpop.permute.xlu1 %6977  ;;  %v8512_v49 = vmul.f32 %v7331_v39, %v7319_v7  ;;  %v1239_v57 = vpop.permute.xlu0 %1238 }
 0x607   :  { %v6980_v43 = vunpack.i.h.bf16 %v6978_v40  ;;  %v6979_v45 = vunpack.i.l.bf16 %v6978_v40  ;;  %6774 = vmatprep.subr.bf16.mxu1 %v6773_v38 }
 0x608   :  { %6776 = vmatpush3.bf16.msra.mxu1 %v6773_v38 }
 0x609   :  { %v7333_v47 = vpop.eup %7332  ;;  %6784 = vmatprep.subr.bf16.mxu1 %v6783_v46  ;;  %v6787_v53 = vpack.c.bf16 %v6980_v43, %v6979_v45 }
 0x60a   :  { %v7335_v50 = vpop.eup %7334  ;;  %v8522_v55 = vmul.f32 %v7333_v47, %v7321_v9  ;;  %v1237_v56 = vpop.permute.xlu1 %1236 }
 0x60b   :  { %6479 = vmatmul.mubr.msk.f32.vlgmr.msra.gmra.mrb[8].mxu1 %vm730_vm2, %v8512_v49  ;;  %v8516_v54 = vmul.f32 %v7335_v50, %v7323_v12 }
 0x60c   :  { %6786 = vmatpush3.bf16.msra.mxu1 %v6783_v46 }
 0x60d   :  { %6492 = vmatprep.mubr.msk.f32.mxu1 %vm730_vm2, %v8516_v54  ;;  %6789 = vmatprep.subr.msk.bf16.mxu1 %vm8404_vm1, %v6787_v53 }
 0x60f   :  { %6493 = vmatmul.mubr.msk.f32.vlgmr.msra.gmra.mrb[10].mxu1 %vm730_vm2, %v8522_v55 }
 0x610   :  { %6499 = vmatprep.mubr.msk.f32.mxu1 %vm642_vm0, %v1237_v56 }
 0x615   :  { %6792 = vmatpush3.bf16.xpose.msk.msra.mxu1 %vm8404_vm1, %v6787_v53 }
 0x61c   :  { %6500 = vmatmul.mubr.msk.f32.vlgmr.msra.gmra.mrb[12].mxu1 %vm642_vm0, %v1239_v57 }
 0x660   :  { %v8530_v58 = vpop.f32.mrb[6].mxu1 }
 0x661   :  { %v8532_v59 = vpop.f32.mrb[7].mxu1 }
 0x6de   :  { %v8534_v60 = vpop.f32.mrb[8].mxu1 }
 0x6df   :  { %v8536_v61 = vpop.f32.mrb[9].mxu1 }
 0x6e0   :  { %v7016_v62 = vpack.i.bf16 %v8534_v60, %v8536_v61 }
 0x6e2   :  { %v8540_v1 = vpop.f32.mrb[10].mxu1 }
 0x6e3   :  { %v8542_v2 = vpop.f32.mrb[11].mxu1 }
 0x6e4   :  { %v7021_v7 = vpack.i.bf16 %v8540_v1, %v8542_v2 }
 0x6ef   :  { %v6501_v9 = vpop.f32.mrb[12].mxu1 }
 0x6f0   :  { %v1324_v12 = vadd.f32 %v6501_v9, %v8466_v6  ;;  %v1318_v13 = vpop.f32.mrb[13].mxu1 }
 0x6f1   :  { %v1319_v16 = vadd.f32 %v8466_v6, %v1318_v13 }
 0x6f2   :  { %v1330_v19 = vsel %vm730_vm2, %v1324_v12, -inf }
 0x6f3   :  { %1331 = vmax.xlane.f32.xlu0 %v1330_v19  ;;  %v1327_v20 = vsel %vm730_vm2, %v1319_v16, -inf }
 0x6f4   :  { %1328 = vmax.xlane.f32.xlu1 %v1327_v20 }
 0x6f7   :  { %1564 = vmax.xlane.f32.xlu0 %v1563_v30 }
 0x6fb   :  { %1567 = vmax.xlane.f32.xlu0 %v1566_v25 }
 0x780   :  { %v1332_v26 = vpop.xlane.xlu0 %1331 }
 0x781   :  { %v1334_v6 = vsub.f32 %v1324_v12, %v1332_v26  ;;  %v1329_v29 = vpop.xlane.xlu1 %1328 }
 0x782   :  { %v1333_v42 = vsub.f32 %v1319_v16, %v1329_v29 }
 0x783   :  { %v1337_v21 = vmul.f32 1.442695, %v1334_v6 }
 0x784   :  { %v1565_v32 = vpop.xlane.xlu0 %1564  ;;  %v1335_v34 = vmul.f32 1.442695, %v1333_v42 }
 0x785   :  { %7336 = vpow2.f32 %v1337_v21  ;;  %v1569_v33 = vsub.f32 %v1555_v18, %v1565_v32 }
 0x787   :  { %v1571_v35 = vmul.f32 1.442695, %v1569_v33 }
 0x788   :  { %v1568_v36 = vpop.xlane.xlu0 %1567 }
 0x789   :  { %7338 = vpow2.f32 %v1571_v35  ;;  %v1570_v37 = vsub.f32 %v1560_v22, %v1568_v36 }
 0x78a   :  { %7340 = vpow2.f32 %v1335_v34 }
 0x78b   :  { %v1573_v41 = vmul.f32 1.442695, %v1570_v37 }
 0x78d   :  { %7342 = vpow2.f32 %v1573_v41 }
 0x78f   :  { %v7337_v38 = vpop.eup %7336 }
 0x790   :  { %v1342_v39 = vsel %vm730_vm2, %v7337_v38, 0.0 }
 0x791   :  { %1343 = vadd.xlane.f32.xlu0 %v1342_v39 }
 0x793   :  { %v7339_v40 = vpop.eup %7338 }
 0x794   :  { %v1575_v43 = vsel %vm730_vm2, %v7339_v40, 0.0  ;;  %v7341_v45 = vpop.eup %7340 }
 0x795   :  { %1576 = vadd.xlane.f32.xlu1 %v1575_v43  ;;  %v1339_v50 = vsel %vm730_vm2, %v7341_v45, 0.0 }
 0x797   :  { %v7343_v46 = vpop.eup %7342 }
 0x798   :  { %v1578_v47 = vsel %vm730_vm2, %v7343_v46, 0.0 }
 0x799   :  { %1579 = vadd.xlane.f32.xlu0 %v1578_v47  ;;  %1340 = vadd.xlane.f32.xlu1 %v1339_v50 }
 0x7aa   :  { %6982 = vrot.lane.b32.xlu1 %v8453_v3, %s7971_s10 }
 0x7ae   :  { %1666 = vrot.lane.b32.xlu1 %v8445_v48, %s7990_s16 }
 0x7af   :  { %6987 = vrot.lane.b32.xlu0 %v8455_v4, %s7990_s16 }
 0x7b2   :  { %1668 = vrot.lane.b32.xlu1 %v8462_v5, %s7990_s16 }
 0x81e   :  { %v1344_v56 = vpop.xlane.xlu0 %1343 }
 0x81f   :  { %7344 = vrcp.f32 %v1344_v56 }
 0x822   :  { %v1577_v53 = vpop.xlane.xlu1 %1576 }
 0x823   :  { %7346 = vrcp.f32 %v1577_v53 }
 0x826   :  { %v1341_v57 = vpop.xlane.xlu1 %1340  ;;  %v1580_v9 = vpop.xlane.xlu0 %1579 }
 0x827   :  { %7348 = vrcp.f32 %v1341_v57 }
 0x828   :  { %7350 = vrcp.f32 %v1580_v9 }
 0x829   :  { %v7345_v19 = vpop.eup %7344 }
 0x82a   :  { %v6983_v12 = vpop.permute.xlu1 %6982  ;;  %v6988_v18 = vpop.permute.xlu0 %6987  ;;  %v8573_v6 = vmul.f32 %v7345_v19, %v7337_v38 }
 0x82b   :  { %v6985_v13 = vunpack.i.h.bf16 %v6983_v12  ;;  %v6984_v3 = vunpack.i.l.bf16 %v6983_v12  ;;  %v6990_v30 = vunpack.i.h.bf16 %v6988_v18  ;;  %v6989_v25 = vunpack.i.l.bf16 %v6988_v18 }
 0x82d   :  { %v6793_v16 = vpack.c.bf16 %v6985_v13, %v6984_v3  ;;  %v7347_v20 = vpop.eup %7346  ;;  %v6807_v42 = vpack.c.bf16 %v6990_v30, %v6989_v25 }
 0x82e   :  { %v8577_v21 = vmul.f32 %v7347_v20, %v7339_v40  ;;  %v1667_v33 = vpop.permute.xlu1 %1666 }
 0x82f   :  { %6794 = vmatprep.subr.bf16.mxu1 %v6793_v16 }
 0x830   :  { %6796 = vmatpush3.bf16.msra.mxu1 %v6793_v16  ;;  %9452 = vst [vmem:[#allocation47_spill] sm:$0xff] %v8577_v21 }
 0x831   :  { %6804 = vmatprep.subr.bf16.mxu1 %v8449_v63  ;;  %v7349_v22 = vpop.eup %7348 }
 0x832   :  { %v8571_v26 = vmul.f32 %v7349_v22, %v7341_v45  ;;  %v7351_v29 = vpop.eup %7350  ;;  %v1669_v34 = vpop.permute.xlu1 %1668 }
 0x833   :  { %v8586_v32 = vmul.f32 %v7351_v29, %v7343_v46 }
 0x834   :  { %6506 = vmatprep.mubr.msk.f32.mxu1 %vm730_vm2, %v8571_v26 }
 0x835   :  { %6507 = vmatmul.mubr.msk.f32.vlgmr.msra.gmra.mrb[14].mxu1 %vm730_vm2, %v8573_v6  ;;  %9453 = vst [vmem:[#allocation48_spill] sm:$0xff] %v8586_v32 }
 0x836   :  { %6806 = vmatpush3.bf16.msra.mxu1 %v8449_v63  ;;  %6520 = vmatprep.mubr.msk.f32.mxu1 %vm730_vm2, %v8577_v21 }
 0x837   :  { %6809 = vmatprep.subr.msk.bf16.mxu1 %vm8404_vm1, %v6807_v42 }
 0x839   :  { %6521 = vmatmul.mubr.msk.f32.vlgmr.msra.gmra.mrb[16].mxu1 %vm730_vm2, %v8586_v32 }
 0x83a   :  { %6527 = vmatprep.mubr.msk.f32.mxu1 %vm642_vm0, %v1667_v33 }
 0x83f   :  { %6812 = vmatpush3.bf16.xpose.msk.msra.mxu1 %vm8404_vm1, %v6807_v42 }
 0x846   :  { %6528 = vmatmul.mubr.msk.f32.vlgmr.msra.gmra.mrb[18].mxu1 %vm642_vm0, %v1669_v34 }
 0x908   :  { %v8594_v63 = vpop.f32.mrb[14].mxu1 }
 0x909   :  { %v8596_v35 = vpop.f32.mrb[15].mxu1 }
 0x90a   :  { %v7031_v36 = vpack.i.bf16 %v8594_v63, %v8596_v35 }
 0x90c   :  { %v8600_v37 = vpop.f32.mrb[16].mxu1 }
 0x90d   :  { %v8602_v41 = vpop.f32.mrb[17].mxu1 }
 0x919   :  { %v6529_v38 = vpop.f32.mrb[18].mxu1 }
 0x91a   :  { %v1754_v39 = vadd.f32 %v6529_v38, %v8546_v8  ;;  %v1748_v40 = vpop.f32.mrb[19].mxu1 }
 0x91b   :  { %v1749_v43 = vadd.f32 %v8546_v8, %v1748_v40 }
 0x91c   :  { %v1760_v45 = vsel %vm730_vm2, %v1754_v39, -inf }
 0x91d   :  { %1761 = vmax.xlane.f32.xlu0 %v1760_v45  ;;  %v1757_v46 = vsel %vm730_vm2, %v1749_v43, -inf }
 0x91e   :  { %1758 = vmax.xlane.f32.xlu1 %v1757_v46 }
 0x92f   :  { %6992 = vrot.lane.b32.xlu1 %v8451_v0, %s7990_s16 }
 0x933   :  { %1868 = vrot.lane.b32.xlu1 %v8445_v48, %s7982_s26 }
 0x937   :  { %1870 = vrot.lane.b32.xlu1 %v8462_v5, %s7982_s26 }
 0x9aa   :  { %v1762_v47 = vpop.xlane.xlu0 %1761 }
 0x9ab   :  { %v1764_v50 = vsub.f32 %v1754_v39, %v1762_v47  ;;  %v1759_v53 = vpop.xlane.xlu1 %1758 }
 0x9ac   :  { %v1763_v56 = vsub.f32 %v1749_v43, %v1759_v53 }
 0x9ad   :  { %v1767_v57 = vmul.f32 1.442695, %v1764_v50 }
 0x9ae   :  { %v1765_v9 = vmul.f32 1.442695, %v1763_v56 }
 0x9af   :  { %7352 = vpow2.f32 %v1767_v57  ;;  %v6993_v12 = vpop.permute.xlu1 %6992 }
 0x9b0   :  { %v6995_v13 = vunpack.i.h.bf16 %v6993_v12  ;;  %v6994_v3 = vunpack.i.l.bf16 %v6993_v12  ;;  %7354 = vpow2.f32 %v1765_v9 }
 0x9b2   :  { %v6813_v16 = vpack.c.bf16 %v6995_v13, %v6994_v3 }
 0x9b3   :  { %v1869_v45 = vpop.permute.xlu1 %1868 }
 0x9b4   :  { %6814 = vmatprep.subr.bf16.mxu0 %v6813_v16 }
 0x9b5   :  { %6816 = vmatpush3.bf16.msra.mxu0 %v6813_v16 }
 0x9b7   :  { %v1871_v46 = vpop.permute.xlu1 %1870 }
 0x9b9   :  { %v7353_v18 = vpop.eup %7352 }
 0x9ba   :  { %v1772_v19 = vsel %vm730_vm2, %v7353_v18, 0.0  ;;  %v7355_v20 = vpop.eup %7354 }
 0x9bb   :  { %1773 = vadd.xlane.f32.xlu0 %v1772_v19  ;;  %v1769_v22 = vsel %vm730_vm2, %v7355_v20, 0.0 }
 0x9bf   :  { %1770 = vadd.xlane.f32.xlu0 %v1769_v22 }
 0x9d5   :  { %6997 = vrot.lane.b32.xlu0 %v8455_v4, %s7982_s26 }
 0xa48   :  { %v1774_v30 = vpop.xlane.xlu0 %1773 }
 0xa49   :  { %7356 = vrcp.f32 %v1774_v30 }
 0xa4c   :  { %v1771_v25 = vpop.xlane.xlu0 %1770 }
 0xa4d   :  { %7358 = vrcp.f32 %v1771_v25 }
 0xa50   :  { %v6998_v29 = vpop.permute.xlu0 %6997 }
 0xa51   :  { %v7000_v42 = vunpack.i.h.bf16 %v6998_v29  ;;  %v6999_v33 = vunpack.i.l.bf16 %v6998_v29 }
 0xa53   :  { %v6817_v34 = vpack.c.bf16 %v7000_v42, %v6999_v33  ;;  %v7357_v38 = vpop.eup %7356 }
 0xa54   :  { %v8622_v43 = vmul.f32 %v7357_v38, %v7353_v18 }
 0xa55   :  { %6819 = vmatprep.subr.msk.bf16.mxu0 %vm8404_vm1, %v6817_v34 }
 0xa57   :  { %v7359_v39 = vpop.eup %7358 }
 0xa58   :  { %v8620_v40 = vmul.f32 %v7359_v39, %v7355_v20 }
 0xa5a   :  { %6534 = vmatprep.mubr.msk.f32.mxu0 %vm730_vm2, %v8620_v40 }
 0xa5b   :  { %6535 = vmatmul.mubr.msk.f32.vlgmr.msra.gmra.mrb[14].mxu0 %vm730_vm2, %v8622_v43 }
 0xa5c   :  { %6822 = vmatpush3.bf16.xpose.msk.msra.mxu0 %vm8404_vm1, %v6817_v34  ;;  %6541 = vmatprep.mubr.msk.f32.mxu0 %vm642_vm0, %v1869_v45 }
 0xa63   :  { %6542 = vmatmul.mubr.msk.f32.vlgmr.msra.gmra.mrb[16].mxu0 %vm642_vm0, %v1871_v46 }
 0xb2e   :  { %v8632_v47 = vpop.f32.mrb[14].mxu0 }
 0xb2f   :  { %v8634_v50 = vpop.f32.mrb[15].mxu0 }
 0xb30   :  { %v7026_v53 = vpack.i.bf16 %v8632_v47, %v8634_v50 }
 0xb36   :  { %v6543_v56 = vpop.f32.mrb[16].mxu0 }
 0xb37   :  { %v1956_v57 = vadd.f32 %v6543_v56, %v8546_v8  ;;  %v1950_v9 = vpop.f32.mrb[17].mxu0 }
 0xb38   :  { %v1951_v12 = vadd.f32 %v8546_v8, %v1950_v9 }
 0xb39   :  { %v1962_v13 = vsel %vm730_vm2, %v1956_v57, -inf }
 0xb3a   :  { %1963 = vmax.xlane.f32.xlu0 %v1962_v13  ;;  %v1959_v3 = vsel %vm730_vm2, %v1951_v12, -inf }
 0xb3b   :  { %1960 = vmax.xlane.f32.xlu1 %v1959_v3 }
 0xb4c   :  { %7002 = vrot.lane.b32.xlu1 %v8451_v0, %s7982_s26 }
 0xb50   :  { %2068 = vrot.lane.b32.xlu1 %v8445_v48, %s7971_s10 }
 0xb54   :  { %2070 = vrot.lane.b32.xlu1 %v8462_v5, %s7971_s10 }
 0xbc7   :  { %v1964_v16 = vpop.xlane.xlu0 %1963 }
 0xbc8   :  { %v1966_v18 = vsub.f32 %v1956_v57, %v1964_v16  ;;  %v1961_v19 = vpop.xlane.xlu1 %1960 }
 0xbc9   :  { %v1965_v20 = vsub.f32 %v1951_v12, %v1961_v19 }
 0xbca   :  { %v1969_v22 = vmul.f32 1.442695, %v1966_v18 }
 0xbcb   :  { %v1967_v30 = vmul.f32 1.442695, %v1965_v20 }
 0xbcc   :  { %7360 = vpow2.f32 %v1969_v22  ;;  %v7003_v25 = vpop.permute.xlu1 %7002 }
 0xbcd   :  { %v7005_v29 = vunpack.i.h.bf16 %v7003_v25  ;;  %v7004_v42 = vunpack.i.l.bf16 %v7003_v25  ;;  %7362 = vpow2.f32 %v1967_v30 }
 0xbcf   :  { %v6823_v33 = vpack.c.bf16 %v7005_v29, %v7004_v42 }
 0xbd1   :  { %6824 = vmatprep.subr.bf16.mxu1 %v6823_v33 }
 0xbd2   :  { %6826 = vmatpush3.bf16.msra.mxu1 %v6823_v33 }
 0xbd6   :  { %v7361_v34 = vpop.eup %7360 }
 0xbd7   :  { %v1974_v48 = vsel %vm730_vm2, %v7361_v34, 0.0  ;;  %v7363_v38 = vpop.eup %7362 }
 0xbd8   :  { %1975 = vadd.xlane.f32.xlu0 %v1974_v48  ;;  %v1971_v5 = vsel %vm730_vm2, %v7363_v38, 0.0 }
 0xbdc   :  { %1972 = vadd.xlane.f32.xlu0 %v1971_v5 }
 0xbf2   :  { %7007 = vrot.lane.b32.xlu0 %v8455_v4, %s7971_s10  ;;  %v2069_v4 = vpop.permute.xlu1 %2068 }
 0xbf6   :  { %v2071_v18 = vpop.permute.xlu1 %2070 }
 0xc65   :  { %v1976_v39 = vpop.xlane.xlu0 %1975 }
 0xc66   :  { %7364 = vrcp.f32 %v1976_v39 }
 0xc69   :  { %v1973_v45 = vpop.xlane.xlu0 %1972 }
 0xc6a   :  { %7366 = vrcp.f32 %v1973_v45 }
 0xc6d   :  { %v7008_v46 = vpop.permute.xlu0 %7007 }
 0xc6e   :  { %v7010_v56 = vunpack.i.h.bf16 %v7008_v46  ;;  %v7009_v57 = vunpack.i.l.bf16 %v7008_v46 }
 0xc70   :  { %v6827_v9 = vpack.c.bf16 %v7010_v56, %v7009_v57  ;;  %v7365_v12 = vpop.eup %7364 }
 0xc71   :  { %v8656_v16 = vmul.f32 %v7365_v12, %v7361_v34 }
 0xc72   :  { %6829 = vmatprep.subr.msk.bf16.mxu1 %vm8404_vm1, %v6827_v9 }
 0xc74   :  { %v7367_v13 = vpop.eup %7366 }
 0xc75   :  { %v8654_v3 = vmul.f32 %v7367_v13, %v7363_v38 }
 0xc77   :  { %6548 = vmatprep.mubr.msk.f32.mxu1 %vm730_vm2, %v8654_v3 }
 0xc78   :  { %6549 = vmatmul.mubr.msk.f32.vlgmr.msra.gmra.mrb[20].mxu1 %vm730_vm2, %v8656_v16 }
 0xc79   :  { %6832 = vmatpush3.bf16.xpose.msk.msra.mxu1 %vm8404_vm1, %v6827_v9  ;;  %6555 = vmatprep.mubr.msk.f32.mxu1 %vm642_vm0, %v2069_v4 }
 0xc80   :  { %6556 = vmatmul.mubr.msk.f32.vlgmr.msra.gmra.mrb[22].mxu1 %vm642_vm0, %v2071_v18 }
 0xc81   :  { %2632 = vmatprep.mubr.bf16.mxu1 %v9428_v28 }
 0xd4b   :  { %v6550_v19 = vpop.f32.mrb[20].mxu1 }
 0xd4c   :  { %v2059_v20 = vpop.f32.mrb[21].mxu1 }
 0xd4d   :  { %v7036_v22 = vpack.i.bf16 %v6550_v19, %v2059_v20 }
 0xd53   :  { %v6557_v30 = vpop.f32.mrb[22].mxu1 }
 0xd54   :  { %v2156_v25 = vadd.f32 %v6557_v30, %v8546_v8  ;;  %v2150_v29 = vpop.f32.mrb[23].mxu1 }
 0xd55   :  { %v2151_v42 = vadd.f32 %v8546_v8, %v2150_v29 }
 0xd56   :  { %v2162_v33 = vsel %vm730_vm2, %v2156_v25, -inf }
 0xd57   :  { %2163 = vmax.xlane.f32.xlu0 %v2162_v33  ;;  %v2159_v34 = vsel %vm730_vm2, %v2151_v42, -inf }
 0xd58   :  { %2160 = vmax.xlane.f32.xlu1 %v2159_v34 }
 0xd69   :  { %7012 = vrot.lane.b32.xlu1 %v8451_v0, %s7971_s10 }
 0xd6d   :  { %7022 = vrot.lane.b32.xlu1 %v7021_v7, %s7982_s26 }
 0xd71   :  { %7027 = vrot.lane.b32.xlu1 %v7026_v53, %s7971_s10 }
 0xd75   :  { %7032 = vrot.lane.b32.xlu1 %v7031_v36, %s7990_s16 }
 0xde4   :  { %v2164_v8 = vpop.xlane.xlu0 %2163 }
 0xde5   :  { %v2166_v48 = vsub.f32 %v2156_v25, %v2164_v8  ;;  %v2161_v38 = vpop.xlane.xlu1 %2160 }
 0xde6   :  { %v2165_v5 = vsub.f32 %v2151_v42, %v2161_v38  ;;  %v7171_v38 = vld [vmem:[#allocation15 + $0x18] sm:$0xff]  }
 0xde7   :  { %v2169_v0 = vmul.f32 1.442695, %v2166_v48  ;;  %v7170_v48 = vld [vmem:[#allocation15 + $0x10] sm:$0xff]  }
 0xde8   :  { %v2167_v39 = vmul.f32 1.442695, %v2165_v5  ;;  %v7172_v5 = vld [vmem:[#allocation15 + $0x20] sm:$0xff]  }
 0xde9   :  { %v7013_v45 = vpop.permute.xlu1 %7012 }
 0xdea   :  { %7368 = vpow2.f32 %v2167_v39  ;;  %v7015_v1 = vunpack.i.h.bf16 %v7013_v45  ;;  %v7014_v2 = vunpack.i.l.bf16 %v7013_v45  ;;  %v7174_v39 = vld [vmem:[#allocation15 + $0x30] sm:$0xff]   ;;  %v7175_v45 = vld [vmem:[#allocation15 + $0x38] sm:$0xff]  }
 0xdeb   :  { %7370 = vpow2.f32 %v2169_v0  ;;  %v7173_v0 = vld [vmem:[#allocation15 + $0x28] sm:$0xff]  }
 0xdec   :  { %v6833_v7 = vpack.c.bf16 %v7015_v1, %v7014_v2 }
 0xded   :  { %v7023_v35 = vpop.permute.xlu1 %7022 }
 0xdee   :  { %6834 = vmatprep.subr.bf16.mxu0 %v6833_v7  ;;  %v7025_v4 = vunpack.i.h.bf16 %v7023_v35  ;;  %v7024_v18 = vunpack.i.l.bf16 %v7023_v35 }
 0xdef   :  { %6836 = vmatpush3.bf16.msra.mxu0 %v6833_v7 }
 0xdf1   :  { %v8692_v46 = vpop.permute.xlu1 %7027 }
 0xdf4   :  { %v7369_v47 = vpop.eup %7368 }
 0xdf5   :  { %v2171_v50 = vsel %vm730_vm2, %v7369_v47, 0.0  ;;  %v7371_v53 = vpop.eup %7370  ;;  %v7033_v57 = vpop.permute.xlu1 %7032 }
 0xdf6   :  { %2172 = vadd.xlane.f32.xlu0 %v2171_v50  ;;  %v2174_v63 = vsel %vm730_vm2, %v7371_v53, 0.0  ;;  %v7035_v60 = vunpack.i.h.bf16 %v7033_v57  ;;  %v7034_v61 = vunpack.i.l.bf16 %v7033_v57  ;;  %v7030_v50 = vunpack.i.h.bf16 %v8692_v46 }
 0xdfa   :  { %2175 = vadd.xlane.f32.xlu0 %v2174_v63 }
 0xe10   :  { %7017 = vrot.lane.b32.xlu0 %v7016_v62, %s7971_s10 }
 0xe14   :  { %7037 = vrot.lane.b32.xlu0 %v7036_v22, %s7982_s26 }
 0xe83   :  { %v2173_v36 = vpop.xlane.xlu0 %2172 }
 0xe84   :  { %7372 = vrcp.f32 %v2173_v36 }
 0xe87   :  { %v2176_v56 = vpop.xlane.xlu0 %2175 }
 0xe88   :  { %7374 = vrcp.f32 %v2176_v56  ;;  %v2293_v56 = vsel %vm642_vm0, %v8600_v37, %v7030_v50 }
 0xe8b   :  { %v7018_v9 = vpop.permute.xlu0 %7017 }
 0xe8c   :  { %v7020_v12 = vunpack.i.h.bf16 %v7018_v9  ;;  %v7019_v13 = vunpack.i.l.bf16 %v7018_v9 }
 0xe8e   :  { %v7373_v19 = vpop.eup %7372  ;;  %v1461_v62 = vsel %vm642_vm0, %v8530_v58, %v7020_v12  ;;  %v1460_v20 = vsel %vm642_vm0, %v8532_v59, %v7019_v13  ;;  %v7168_v58 = vld [vmem:[#allocation15] sm:$0xff]   ;;  %v7169_v59 = vld [vmem:[#allocation15 + $0x8] sm:$0xff]  }
 0xe8f   :  { %v8698_v22 = vmul.f32 %v7373_v19, %v7369_v47  ;;  %v1463_v30 = vsel %vm1462_vm3, %v1460_v20, %v7024_v18  ;;  %v1464_v25 = vsel %vm1462_vm3, %v1461_v62, %v7025_v4  ;;  %6565 = vmatprep.subr.bf16.mxu0 %v7168_v58  ;;  %v7038_v47 = vpop.permute.xlu0 %7037 }
 0xe90   :  { %v1466_v29 = vsel %vm1465_vm4, %v1463_v30, %v7034_v61  ;;  %v1467_v42 = vsel %vm1465_vm4, %v1464_v25, %v7035_v60  ;;  %v7040_v63 = vunpack.i.h.bf16 %v7038_v47  ;;  %v7039_v35 = vunpack.i.l.bf16 %v7038_v47  ;;  %v6024_v60 = vld [vmem:[#allocation16] ss:$0 sm:$0xff] }
 0xe91   :  { %6562 = vmatprep.mubr.msk.f32.mxu0 %vm730_vm2, %v8698_v22  ;;  %v2298_v33 = vpack.c.bf16 %v1467_v42, %v1466_v29 }
 0xe92   :  { %v7375_v34 = vpop.eup %7374  ;;  %v2295_v4 = vsel %vm1462_vm3, %v2293_v56, %v7040_v63  ;;  %v7184_v63 = vld [vmem:[#allocation21 + $0x24] ss:$8 sps:$4 sm:$0xff]   ;;  %v7185_v56 = vld [vmem:[#allocation21 + $0x30] ss:$8 sps:$4 sm:$0xff]  }
 0xe93   :  { %v8706_v8 = vmul.f32 %v7375_v34, %v7371_v53  ;;  %v7029_v53 = vunpack.i.l.bf16 %v8692_v46 }
 0xe95   :  { %6563 = vmatmul.mubr.msk.f32.vlgmr.msra.gmra.mrb[18].mxu0 %vm730_vm2, %v8706_v8  ;;  %v2292_v57 = vsel %vm642_vm0, %v8602_v41, %v7029_v53 }
 0xe96   :  { %6581 = vmatprep.mubr.bf16.mxu0 %v2298_v33  ;;  %6566 = vmatpush3.bf16.msra.mxu0 %v7168_v58  ;;  %v2294_v13 = vsel %vm1462_vm3, %v2292_v57, %v7039_v35  ;;  %v7176_v58 = vld [vmem:[#allocation21] ss:$8 sps:$4 sm:$0xff]   ;;  %v7190_v57 = vld [vmem:[#allocation21 + $0x44] ss:$8 sps:$4 sm:$0xff]  }
 0xe97   :  { %6567 = vmatprep.subr.bf16.mxu0 %v7169_v59  ;;  %v7182_v35 = vld [vmem:[#allocation21 + $0x20] ss:$8 sps:$4 sm:$0xff]  }
 0xe9a   :  { %6568 = vmatpush3.bf16.msra.mxu0 %v7169_v59  ;;  %v7178_v59 = vld [vmem:[#allocation21 + $0x4] ss:$8 sps:$4 sm:$0xff]  }
 0xe9b   :  { %6569 = vmatprep.subr.bf16.mxu0 %v7170_v48  ;;  %2600 = vmatprep.subr.bf16.mxu1 %v7178_v59 }
 0xe9c   :  { %2601 = vmatpush1.bf16.msra.mxu1 %v7176_v58 }
 0xe9e   :  { %6570 = vmatpush3.bf16.msra.mxu0 %v7170_v48  ;;  %v7181_v48 = vld [vmem:[#allocation21 + $0x14] ss:$8 sps:$4 sm:$0xff]  }
 0xe9f   :  { %6571 = vmatprep.subr.bf16.mxu0 %v7171_v38  ;;  %2602 = vmatprep.subr.bf16.mxu1 %v7181_v48 }
 0xea2   :  { %6572 = vmatpush3.bf16.msra.mxu0 %v7171_v38  ;;  %v7179_v38 = vld [vmem:[#allocation21 + $0x10] ss:$8 sps:$4 sm:$0xff]  }
 0xea3   :  { %6573 = vmatprep.subr.bf16.mxu0 %v7172_v5  ;;  %2603 = vmatpush1.bf16.msra.mxu1 %v7179_v38  ;;  %v6034_v38 = vld [vmem:[#allocation19] ss:$0 sm:$0xff] }
 0xea4   :  { %2604 = vmatprep.subr.bf16.mxu1 %v7184_v63  ;;  %v7208_v63 = vld [vmem:[#allocation24 + $0x60] sm:$0xff]  }
 0xea6   :  { %6574 = vmatpush3.bf16.msra.mxu0 %v7172_v5 }
 0xea7   :  { %6575 = vmatprep.subr.bf16.mxu0 %v7173_v0  ;;  %2605 = vmatpush1.bf16.msra.mxu1 %v7182_v35  ;;  %v7209_v35 = vld [vmem:[#allocation24 + $0x20] sm:$0xff]  }
 0xeaa   :  { %6576 = vmatpush3.bf16.msra.mxu0 %v7173_v0 }
 0xeab   :  { %6577 = vmatprep.subr.bf16.mxu0 %v7174_v39 }
 0xeae   :  { %6578 = vmatpush3.bf16.msra.mxu0 %v7174_v39 }
 0xeaf   :  { %6579 = vmatprep.subr.bf16.mxu0 %v7175_v45 }
 0xeb2   :  { %6580 = vmatpush3.bf16.msra.mxu0 %v7175_v45 }
 0xf68   :  { %v6564_v1 = vpop.f32.mrb[18].mxu0 }
 0xf69   :  { %v2259_v2 = vpop.f32.mrb[19].mxu0 }
 0xf6a   :  { %v7041_v7 = vpack.i.bf16 %v6564_v1, %v2259_v2 }
 0xf6c   :  { %7042 = vrot.lane.b32.xlu1 %v7041_v7, %s7990_s16 }
 0xfde   :  { %v7043_v36 = vpop.permute.xlu1 %7042 }
 0xfdf   :  { %v7045_v9 = vunpack.i.h.bf16 %v7043_v36  ;;  %v7044_v12 = vunpack.i.l.bf16 %v7043_v36  ;;  %v7187_v36 = vld [vmem:[#allocation21 + $0x34] ss:$8 sps:$4 sm:$0xff]  }
 0xfe0   :  { %2606 = vmatprep.subr.bf16.mxu1 %v7187_v36  ;;  %v7210_v36 = vld [vmem:[#allocation24 + $0x68] sm:$0xff]  }
 0xfe1   :  { %v2297_v18 = vsel %vm1465_vm4, %v2295_v4, %v7045_v9  ;;  %v2296_v19 = vsel %vm1465_vm4, %v2294_v13, %v7044_v12  ;;  %2607 = vmatpush1.bf16.msra.mxu1 %v7185_v56  ;;  %v7188_v9 = vld [vmem:[#allocation21 + $0x40] ss:$8 sps:$4 sm:$0xff]   ;;  %v7193_v12 = vld [vmem:[#allocation21 + $0x54] ss:$8 sps:$4 sm:$0xff]   ;;  %v7191_v13 = vld [vmem:[#allocation21 + $0x50] ss:$8 sps:$4 sm:$0xff]  }
 0xfe2   :  { %v2299_v46 = vpack.c.bf16 %v2297_v18, %v2296_v19  ;;  %2608 = vmatprep.subr.bf16.mxu1 %v7190_v57  ;;  %v7196_v4 = vld [vmem:[#allocation21 + $0x64] ss:$8 sps:$4 sm:$0xff]   ;;  %v7194_v18 = vld [vmem:[#allocation21 + $0x60] ss:$8 sps:$4 sm:$0xff]   ;;  %v7197_v19 = vld [vmem:[#allocation21 + $0x70] ss:$8 sps:$4 sm:$0xff]  }
 0xfe3   :  { %v7211_v56 = vld [vmem:[#allocation24 + $0x28] sm:$0xff]   ;;  %v7212_v57 = vld [vmem:[#allocation24 + $0x70] sm:$0xff]  }
 0xfe4   :  { %6582 = vmatmul.mubr.bf16.vlgmr.msra.gmra.mrb[20].mxu0 %v2299_v46 }
 0xfe5   :  { %2609 = vmatpush1.bf16.msra.mxu1 %v7188_v9  ;;  %v7213_v9 = vld [vmem:[#allocation24 + $0x30] sm:$0xff]  }
 0xfe6   :  { %2610 = vmatprep.subr.bf16.mxu1 %v7193_v12  ;;  %v7214_v12 = vld [vmem:[#allocation24 + $0x78] sm:$0xff]  }
 0xfe9   :  { %2611 = vmatpush1.bf16.msra.mxu1 %v7191_v13  ;;  %v7215_v13 = vld [vmem:[#allocation24 + $0x38] sm:$0xff]  }
 0xfea   :  { %2612 = vmatprep.subr.bf16.mxu1 %v7196_v4 }
 0xfed   :  { %2613 = vmatpush1.bf16.msra.mxu1 %v7194_v18 }
0x10b7   :  { %v6583_v61 = vpop.f32.mrb[20].mxu0 }
0x10b8   :  { %v2414_v62 = vadd.f32 %v6583_v61, %v6024_v60  ;;  %v2405_v20 = vpop.f32.mrb[21].mxu0 }
0x10b9   :  { %v2406_v37 = vadd.f32 %v6024_v60, %v2405_v20  ;;  %v6584_v30 = vpop.f32.mrb[22].mxu0 }
0x10ba   :  { %v2408_v25 = vpop.f32.mrb[23].mxu0  ;;  %v2417_v42 = vadd.f32 %v6584_v30, %v6024_v60  ;;  %v2422_v53 = vadd.f32 %v2414_v62, %v8377_v10  ;;  %v7199_v10 = vld [vmem:[#allocation21 + $0x74] ss:$8 sps:$4 sm:$0xff]  }
0x10bb   :  { %v2409_v41 = vadd.f32 %v6024_v60, %v2408_v25  ;;  %v2420_v29 = vadd.f32 %v2406_v37, %v8369_v51  ;;  %2614 = vmatprep.subr.bf16.mxu1 %v7199_v10 }
0x10bc   :  { %v2423_v34 = vadd.f32 %v2417_v42, %v8379_v11  ;;  %2615 = vmatpush1.bf16.msra.mxu1 %v7197_v19 }
0x10bd   :  { %2426 = vadd.xlane.f32.xlu0 %v2420_v29  ;;  %v2421_v33 = vadd.f32 %v2409_v41, %v8371_v52 }
0x10bf   :  { %2428 = vadd.xlane.f32.xlu1 %v2421_v33 }
0x10c3   :  { %2432 = vadd.xlane.f32.xlu1 %v2423_v34 }
0x114a   :  { %v2427_v5 = vpop.xlane.xlu0 %2426 }
0x114b   :  { %v2434_v0 = vmul.f32 0.0078125, %v2427_v5 }
0x114c   :  { %v2429_v39 = vpop.xlane.xlu1 %2428 }
0x114d   :  { %v2435_v51 = vmul.f32 0.0078125, %v2429_v39  ;;  %v2438_v45 = vsub.f32 %v2420_v29, %v2434_v0 }
0x114f   :  { %v2442_v1 = vmul.f32 %v2438_v45, %v2438_v45  ;;  %v2439_v2 = vsub.f32 %v2421_v33, %v2435_v51 }
0x1150   :  { %v2433_v52 = vpop.xlane.xlu1 %2432 }
0x1151   :  { %v2437_v7 = vmul.f32 0.0078125, %v2433_v52  ;;  %2446 = vadd.xlane.f32.xlu0 %v2442_v1  ;;  %v2443_v11 = vmul.f32 %v2439_v2, %v2439_v2  ;;  %v7200_v1 = vld [vmem:[#allocation24 + $0x40] sm:$0xff]  }
0x1152   :  { %v7201_v52 = vld [vmem:[#allocation24] sm:$0xff]   ;;  %6284 = vmatprep.subr.bf16.mxu0 %v7200_v1 }
0x1153   :  { %v8724_v47 = vsub.f32 %v2423_v34, %v2437_v7  ;;  %v6033_v34 = vld [vmem:[#allocation18] ss:$0 sm:$0xff]  ;;  %6285 = vmatpush3.bf16.msra.mxu0 %v7201_v52  ;;  %v7203_v7 = vld [vmem:[#allocation24 + $0x8] sm:$0xff]  }
0x1155   :  { %2448 = vadd.xlane.f32.xlu0 %v2443_v11  ;;  %v2445_v50 = vmul.f32 %v8724_v47, %v8724_v47  ;;  %v7205_v11 = vld [vmem:[#allocation24 + $0x10] sm:$0xff]  }
0x1157   :  { %2452 = vadd.xlane.f32.xlu1 %v2445_v50  ;;  %v7206_v50 = vld [vmem:[#allocation24 + $0x58] sm:$0xff]  }
0x1159   :  { %2430 = vadd.xlane.f32.xlu0 %v2422_v53 }
0x11de   :  { %v2447_v46 = vpop.xlane.xlu0 %2446 }
0x11df   :  { %v2454_v60 = vmul.f32 0.0078125, %v2447_v46 }
0x11e1   :  { %v2458_v61 = vadd.f32 1e-12, %v2454_v60 }
0x11e2   :  { %v2449_v62 = vpop.xlane.xlu0 %2448 }
0x11e3   :  { %7376 = vrsqrt.f32 %v2458_v61  ;;  %v2455_v20 = vmul.f32 0.0078125, %v2449_v62 }
0x11e4   :  { %v2453_v4 = vpop.xlane.xlu1 %2452 }
0x11e5   :  { %v2459_v37 = vadd.f32 1e-12, %v2455_v20  ;;  %v2457_v18 = vmul.f32 0.0078125, %v2453_v4 }
0x11e6   :  { %v2431_v30 = vpop.xlane.xlu0 %2430 }
0x11e7   :  { %7378 = vrsqrt.f32 %v2459_v37  ;;  %v2436_v25 = vmul.f32 0.0078125, %v2431_v30  ;;  %v2461_v10 = vadd.f32 1e-12, %v2457_v18 }
0x11e9   :  { %v2440_v41 = vsub.f32 %v2422_v53, %v2436_v25  ;;  %v7207_v53 = vld [vmem:[#allocation24 + $0x18] sm:$0xff]   ;;  %7380 = vrsqrt.f32 %v2461_v10 }
0x11eb   :  { %v2444_v29 = vmul.f32 %v2440_v41, %v2440_v41 }
0x11ed   :  { %v7377_v42 = vpop.eup %7376  ;;  %2450 = vadd.xlane.f32.xlu0 %v2444_v29 }
0x11ee   :  { %v2466_v33 = vmul.f32 %v7377_v42, %v2438_v45  ;;  %v7202_v45 = vld [vmem:[#allocation24 + $0x48] sm:$0xff]  }
0x11ef   :  { %6286 = vmatprep.subr.bf16.mxu0 %v7202_v45 }
0x11f0   :  { %v2476_v48 = vmul.f32 %v6033_v34, %v2466_v33  ;;  %6287 = vmatpush3.bf16.msra.mxu0 %v7203_v7 }
0x11f1   :  { %v7379_v58 = vpop.eup %7378 }
0x11f2   :  { %v2467_v59 = vmul.f32 %v7379_v58, %v2439_v2  ;;  %v8729_v0 = vadd.f32 %v6034_v38, %v2476_v48  ;;  %v7204_v2 = vld [vmem:[#allocation24 + $0x50] sm:$0xff]   ;;  %v2508_v58 = vld [vmem:[#allocation22] sm:$0x3] }
0x11f3   :  { %6288 = vmatprep.subr.bf16.mxu0 %v7204_v2  ;;  %v7381_v61 = vpop.eup %7380  ;;  %v2517_v48 = vrot.slane %v2508_v58, %v8389_v17 }
0x11f4   :  { %v2477_v5 = vmul.f32 %v6033_v34, %v2467_v59  ;;  %6289 = vmatpush3.bf16.msra.mxu0 %v7205_v11  ;;  %v2469_v62 = vmul.f32 %v7381_v61, %v8724_v47  ;;  %v2513_v59 = vrot.slane %v2508_v58, %v8386_v15 }
0x11f5   :  { %6290 = vmatprep.subr.bf16.mxu0 %v7206_v50 }
0x11f6   :  { %v8731_v39 = vadd.f32 %v6034_v38, %v2477_v5  ;;  %v2479_v30 = vmul.f32 %v6033_v34, %v2469_v62 }
0x11f8   :  { %v2490_v51 = vpack.c.bf16 %v8731_v39, %v8729_v0  ;;  %6291 = vmatpush3.bf16.msra.mxu0 %v7207_v53  ;;  %v8739_v42 = vadd.f32 %v6034_v38, %v2479_v30 }
0x11f9   :  { %6292 = vmatprep.subr.bf16.mxu0 %v7208_v63 }
0x11fa   :  { %2633 = vmatmul.mubr.bf16.vlgmr.msra.gmra.mrb[24].mxu1 %v2490_v51 }
0x11fb   :  { %2642 = vmatprep.mubr.bf16.mxu1 %v9428_v28 }
0x11fc   :  { %6293 = vmatpush3.bf16.msra.mxu0 %v7209_v35 }
0x11fd   :  { %6294 = vmatprep.subr.bf16.mxu0 %v7210_v36 }
0x1200   :  { %6295 = vmatpush3.bf16.msra.mxu0 %v7211_v56 }
0x1201   :  { %6296 = vmatprep.subr.bf16.mxu0 %v7212_v57 }
0x1204   :  { %6297 = vmatpush3.bf16.msra.mxu0 %v7213_v9 }
0x1205   :  { %6298 = vmatprep.subr.bf16.mxu0 %v7214_v12 }
0x1208   :  { %6299 = vmatpush3.bf16.msra.mxu0 %v7215_v13 }
0x127a   :  { %v2451_v19 = vpop.xlane.xlu0 %2450 }
0x127b   :  { %v2456_v46 = vmul.f32 0.0078125, %v2451_v19 }
0x127d   :  { %v2460_v60 = vadd.f32 1e-12, %v2456_v46 }
0x127f   :  { %7382 = vrsqrt.f32 %v2460_v60 }
0x1289   :  { %v7383_v20 = vpop.eup %7382 }
0x128a   :  { %v2468_v37 = vmul.f32 %v7383_v20, %v2440_v41 }
0x128c   :  { %v2478_v25 = vmul.f32 %v6033_v34, %v2468_v37 }
0x128e   :  { %v8737_v29 = vadd.f32 %v6034_v38, %v2478_v25 }
0x1290   :  { %v2491_v33 = vpack.c.bf16 %v8739_v42, %v8737_v29 }
0x1292   :  { %2643 = vmatmul.mubr.bf16.gmra.mrb[28].mxu1 %v2491_v33 }
0x1293   :  { %3196 = vmatprep.mubr.bf16.mxu1 %v9428_v28 }
0x12cd   :  { %v2634_v47 = vpop.f32.mrb[24].mxu1 }
0x12ce   :  { %v2635_v5 = vadd.f32 %v2634_v47, %v2513_v59  ;;  %v2636_v41 = vpop.f32.mrb[25].mxu1 }
0x12cf   :  { %v2637_v51 = vadd.f32 %v2636_v41, %v2517_v48  ;;  %v2638_v34 = vpop.f32.mrb[26].mxu1 }
0x12d0   :  { %v2653_v1 = vmul.f32 %v2635_v5, %v2635_v5  ;;  %v2639_v52 = vadd.f32 %v2638_v34, %v2513_v59  ;;  %v2640_v38 = vpop.f32.mrb[27].mxu1 }
0x12d1   :  { %v2654_v45 = vmul.f32 %v2637_v51, %v2637_v51  ;;  %v2641_v7 = vadd.f32 %v2640_v38, %v2517_v48 }
0x12d2   :  { %v2661_v2 = vmul.f32 %v2653_v1, %v2635_v5  ;;  %v2655_v11 = vmul.f32 %v2639_v52, %v2639_v52 }
0x12d3   :  { %v2662_v50 = vmul.f32 %v2654_v45, %v2637_v51  ;;  %v2656_v53 = vmul.f32 %v2641_v7, %v2641_v7 }
0x12d4   :  { %v2669_v63 = vmul.f32 0.044715, %v2661_v2  ;;  %v2663_v35 = vmul.f32 %v2655_v11, %v2639_v52 }
0x12d5   :  { %v2670_v36 = vmul.f32 0.044715, %v2662_v50  ;;  %v2664_v56 = vmul.f32 %v2656_v53, %v2641_v7 }
0x12d6   :  { %v2677_v57 = vadd.f32 %v2669_v63, %v2635_v5  ;;  %v2671_v9 = vmul.f32 0.044715, %v2663_v35 }
0x12d7   :  { %v2678_v12 = vadd.f32 %v2670_v36, %v2637_v51  ;;  %v2672_v13 = vmul.f32 0.044715, %v2664_v56 }
0x12d8   :  { %v2685_v4 = vmul.f32 0.7978846, %v2677_v57  ;;  %v2679_v18 = vadd.f32 %v2671_v9, %v2639_v52 }
0x12d9   :  { %v2686_v10 = vmul.f32 0.7978846, %v2678_v12  ;;  %v2680_v19 = vadd.f32 %v2672_v13, %v2641_v7 }
0x12da   :  { %7384 = vtanh.f32 %v2685_v4  ;;  %v2687_v46 = vmul.f32 0.7978846, %v2679_v18 }
0x12db   :  { %7386 = vtanh.f32 %v2686_v10  ;;  %v2688_v60 = vmul.f32 0.7978846, %v2680_v19 }
0x12dc   :  { %7388 = vtanh.f32 %v2687_v46 }
0x12dd   :  { %7390 = vtanh.f32 %v2688_v60 }
0x12e4   :  { %v7385_v61 = vpop.eup %7384 }
0x12e5   :  { %v7387_v62 = vpop.eup %7386  ;;  %v2701_v20 = vadd.f32 1.0, %v7385_v61 }
0x12e6   :  { %v7389_v37 = vpop.eup %7388  ;;  %v2702_v30 = vadd.f32 1.0, %v7387_v62 }
0x12e7   :  { %v7391_v25 = vpop.eup %7390  ;;  %v2709_v33 = vmul.f32 0.5, %v2701_v20  ;;  %v2703_v58 = vadd.f32 1.0, %v7389_v37 }
0x12e8   :  { %v2704_v47 = vadd.f32 1.0, %v7391_v25  ;;  %v2710_v41 = vmul.f32 0.5, %v2702_v30 }
0x12e9   :  { %v2711_v34 = vmul.f32 0.5, %v2703_v58  ;;  %v2717_v38 = vmul.f32 %v2709_v33, %v2635_v5 }
0x12ea   :  { %v2712_v1 = vmul.f32 0.5, %v2704_v47  ;;  %v2718_v2 = vmul.f32 %v2710_v41, %v2637_v51 }
0x12eb   :  { %v2719_v45 = vmul.f32 %v2711_v34, %v2639_v52 }
0x12ec   :  { %v2720_v11 = vmul.f32 %v2712_v1, %v2641_v7 }
0x12ed   :  { %v2725_v50 = vpack.c.bf16 %v2719_v45, %v2717_v38 }
0x12ee   :  { %v2726_v53 = vpack.c.bf16 %v2720_v11, %v2718_v2 }
0x12f0   :  { %2896 = vmatprep.mubr.bf16.mxu0 %v2726_v53 }
0x12f1   :  { %2897 = vmatmul.mubr.bf16.vlgmr.msra.gmra.mrb[24].mxu0 %v2725_v50 }
0x1365   :  { %v2644_v63 = vpop.f32.mrb[28].mxu1 }
0x1366   :  { %v2645_v35 = vadd.f32 %v2644_v63, %v2513_v59  ;;  %v2646_v36 = vpop.f32.mrb[29].mxu1 }
0x1367   :  { %v2647_v56 = vadd.f32 %v2646_v36, %v2517_v48  ;;  %v2648_v57 = vpop.f32.mrb[30].mxu1 }
0x1368   :  { %v2657_v9 = vmul.f32 %v2645_v35, %v2645_v35  ;;  %v2649_v12 = vadd.f32 %v2648_v57, %v2513_v59  ;;  %v2650_v13 = vpop.f32.mrb[31].mxu1 }
0x1369   :  { %v2658_v4 = vmul.f32 %v2647_v56, %v2647_v56  ;;  %v2651_v18 = vadd.f32 %v2650_v13, %v2517_v48 }
0x136a   :  { %v2665_v10 = vmul.f32 %v2657_v9, %v2645_v35  ;;  %v2659_v19 = vmul.f32 %v2649_v12, %v2649_v12 }
0x136b   :  { %v2666_v5 = vmul.f32 %v2658_v4, %v2647_v56  ;;  %v2660_v52 = vmul.f32 %v2651_v18, %v2651_v18 }
0x136c   :  { %v2673_v51 = vmul.f32 0.044715, %v2665_v10  ;;  %v2667_v7 = vmul.f32 %v2659_v19, %v2649_v12 }
0x136d   :  { %v2674_v46 = vmul.f32 0.044715, %v2666_v5  ;;  %v2668_v60 = vmul.f32 %v2660_v52, %v2651_v18  ;;  %v6051_v52 = vld [vmem:[#allocation25] ss:$0 sm:$0xff] }
0x136e   :  { %v2681_v61 = vadd.f32 %v2673_v51, %v2645_v35  ;;  %v2675_v62 = vmul.f32 0.044715, %v2667_v7 }
0x136f   :  { %v2682_v20 = vadd.f32 %v2674_v46, %v2647_v56  ;;  %v2676_v37 = vmul.f32 0.044715, %v2668_v60 }
0x1370   :  { %v2689_v30 = vmul.f32 0.7978846, %v2681_v61  ;;  %v2683_v25 = vadd.f32 %v2675_v62, %v2649_v12 }
0x1371   :  { %v2690_v33 = vmul.f32 0.7978846, %v2682_v20  ;;  %v2684_v58 = vadd.f32 %v2676_v37, %v2651_v18 }
0x1372   :  { %7392 = vtanh.f32 %v2689_v30  ;;  %v2691_v59 = vmul.f32 0.7978846, %v2683_v25  ;;  %v7219_v30 = vld [vmem:[#allocation12 + $0xd8] ss:$12 sps:$4 sm:$0xff]  }
0x1373   :  { %7394 = vtanh.f32 %v2690_v33  ;;  %v2692_v48 = vmul.f32 0.7978846, %v2684_v58 }
0x1374   :  { %7396 = vtanh.f32 %v2691_v59 }
0x1375   :  { %7398 = vtanh.f32 %v2692_v48 }
0x137c   :  { %v7393_v47 = vpop.eup %7392 }
0x137d   :  { %v7395_v41 = vpop.eup %7394  ;;  %v2705_v34 = vadd.f32 1.0, %v7393_v47 }
0x137e   :  { %v7397_v1 = vpop.eup %7396  ;;  %v2706_v38 = vadd.f32 1.0, %v7395_v41 }
0x137f   :  { %v7399_v45 = vpop.eup %7398  ;;  %v2707_v2 = vadd.f32 1.0, %v7397_v1  ;;  %v2713_v11 = vmul.f32 0.5, %v2705_v34 }
0x1380   :  { %v2708_v50 = vadd.f32 1.0, %v7399_v45  ;;  %v2714_v53 = vmul.f32 0.5, %v2706_v38 }
0x1381   :  { %v2715_v63 = vmul.f32 0.5, %v2707_v2  ;;  %v2721_v57 = vmul.f32 %v2713_v11, %v2645_v35 }
0x1382   :  { %v2716_v36 = vmul.f32 0.5, %v2708_v50  ;;  %v2722_v13 = vmul.f32 %v2714_v53, %v2647_v56  ;;  %v7216_v56 = vld [vmem:[#allocation12 + $0xc0] ss:$12 sps:$4 sm:$0xff]  }
0x1383   :  { %v2723_v9 = vmul.f32 %v2715_v63, %v2649_v12  ;;  %v7218_v12 = vld [vmem:[#allocation12 + $0xc4] ss:$12 sps:$4 sm:$0xff]  }
0x1384   :  { %v2724_v4 = vmul.f32 %v2716_v36, %v2651_v18  ;;  %v7221_v18 = vld [vmem:[#allocation12 + $0xdc] ss:$12 sps:$4 sm:$0xff]   ;;  %3164 = vmatprep.subr.bf16.mxu1 %v7218_v12  ;;  %v7224_v36 = vld [vmem:[#allocation12 + $0xf4] ss:$12 sps:$4 sm:$0xff]  }
0x1385   :  { %v2727_v10 = vpack.c.bf16 %v2723_v9, %v2721_v57  ;;  %3165 = vmatpush1.bf16.msra.mxu1 %v7216_v56  ;;  %v7222_v57 = vld [vmem:[#allocation12 + $0xf0] ss:$12 sps:$4 sm:$0xff]   ;;  %v7227_v9 = vld [vmem:[#allocation12 + $0x10c] ss:$12 sps:$4 sm:$0xff]  }
0x1386   :  { %v2728_v19 = vpack.c.bf16 %v2724_v4, %v2722_v13  ;;  %3166 = vmatprep.subr.bf16.mxu1 %v7221_v18  ;;  %v7225_v13 = vld [vmem:[#allocation12 + $0x108] ss:$12 sps:$4 sm:$0xff]   ;;  %v7230_v4 = vld [vmem:[#allocation12 + $0x124] ss:$12 sps:$4 sm:$0xff]  }
0x1388   :  { %2904 = vmatprep.mubr.bf16.mxu0 %v2728_v19  ;;  %v7233_v19 = vld [vmem:[#allocation12 + $0x13c] ss:$12 sps:$4 sm:$0xff]  }
0x1389   :  { %2905 = vmatmul.mubr.bf16.gmra.mrb[28].mxu0 %v2727_v10  ;;  %3167 = vmatpush1.bf16.msra.mxu1 %v7219_v30  ;;  %v7228_v10 = vld [vmem:[#allocation12 + $0x120] ss:$12 sps:$4 sm:$0xff]  }
0x138a   :  { %3168 = vmatprep.subr.bf16.mxu1 %v7224_v36  ;;  %v7244_v36 = vld [vmem:[#allocation12 + $0x128] ss:$12 sps:$4 sm:$0xff]  }
0x138d   :  { %3169 = vmatpush1.bf16.msra.mxu1 %v7222_v57  ;;  %v7246_v57 = vld [vmem:[#allocation12 + $0x158] ss:$12 sps:$4 sm:$0xff]  }
0x138e   :  { %3170 = vmatprep.subr.bf16.mxu1 %v7227_v9  ;;  %v7247_v9 = vld [vmem:[#allocation12 + $0x170] ss:$12 sps:$4 sm:$0xff]  }
0x1391   :  { %3171 = vmatpush1.bf16.msra.mxu1 %v7225_v13 }
0x1392   :  { %3172 = vmatprep.subr.bf16.mxu1 %v7230_v4 }
0x1395   :  { %3173 = vmatpush1.bf16.msra.mxu1 %v7228_v10 }
0x1396   :  { %3174 = vmatprep.subr.bf16.mxu1 %v7233_v19 }
0x13c4   :  { %v6300_v5 = vpop.f32.mrb[24].mxu0 }
0x13c5   :  { %v6301_v51 = vpop.f32.mrb[25].mxu0 }
0x13c6   :  { %v6302_v7 = vadd.f32 %v6301_v51, %v6300_v5  ;;  %v6303_v46 = vpop.f32.mrb[26].mxu0  ;;  %v7231_v5 = vld [vmem:[#allocation12 + $0x138] ss:$12 sps:$4 sm:$0xff]  }
0x13c7   :  { %v6304_v60 = vpop.f32.mrb[27].mxu0  ;;  %3175 = vmatpush1.bf16.msra.mxu1 %v7231_v5  ;;  %v7239_v51 = vld [vmem:[#allocation12 + $0x16c] ss:$12 sps:$4 sm:$0xff]  }
0x13c8   :  { %v2899_v61 = vadd.f32 %v6302_v7, %v6051_v52  ;;  %v6305_v62 = vadd.f32 %v6304_v60, %v6303_v46  ;;  %v7240_v7 = vld [vmem:[#allocation12 + $0xc8] ss:$12 sps:$4 sm:$0xff]   ;;  %v7241_v46 = vld [vmem:[#allocation12 + $0xe0] ss:$12 sps:$4 sm:$0xff]  }
0x13c9   :  { %6585 = vmatprep.subr.bf16.mxu0 %v7240_v7 }
0x13ca   :  { %v2902_v20 = vadd.f32 %v6305_v62, %v6051_v52  ;;  %v2913_v37 = vadd.f32 %v2899_v61, %v8729_v0  ;;  %6586 = vmatpush3.bf16.msra.mxu0 %v7240_v7 }
0x13cb   :  { %6587 = vmatprep.subr.bf16.mxu0 %v7241_v46 }
0x13cc   :  { %2919 = vadd.xlane.f32.xlu0 %v2913_v37  ;;  %v2914_v35 = vadd.f32 %v2902_v20, %v8731_v39 }
0x13ce   :  { %2921 = vadd.xlane.f32.xlu1 %v2914_v35  ;;  %6588 = vmatpush3.bf16.msra.mxu0 %v7241_v46 }
0x1459   :  { %v2920_v25 = vpop.xlane.xlu0 %2919 }
0x145a   :  { %v2927_v33 = vmul.f32 0.0078125, %v2920_v25 }
0x145b   :  { %v2922_v58 = vpop.xlane.xlu1 %2921 }
0x145c   :  { %v2928_v59 = vmul.f32 0.0078125, %v2922_v58  ;;  %v6306_v48 = vpop.f32.mrb[28].mxu0  ;;  %v8748_v47 = vsub.f32 %v2913_v37, %v2927_v33 }
0x145d   :  { %v6307_v0 = vpop.f32.mrb[29].mxu0 }
0x145e   :  { %v6308_v41 = vadd.f32 %v6307_v0, %v6306_v48  ;;  %v6309_v34 = vpop.f32.mrb[30].mxu0  ;;  %v2935_v39 = vmul.f32 %v8748_v47, %v8748_v47  ;;  %v8752_v1 = vsub.f32 %v2914_v35, %v2928_v59  ;;  %v6068_v0 = vld [vmem:[#allocation27] ss:$0 sm:$0xff] }
0x145f   :  { %v6310_v38 = vpop.f32.mrb[31].mxu0 }
0x1460   :  { %v2907_v45 = vadd.f32 %v6308_v41, %v6051_v52  ;;  %v6311_v2 = vadd.f32 %v6310_v38, %v6309_v34  ;;  %2939 = vadd.xlane.f32.xlu0 %v2935_v39  ;;  %v2936_v11 = vmul.f32 %v8752_v1, %v8752_v1 }
0x1462   :  { %v2910_v50 = vadd.f32 %v6311_v2, %v6051_v52  ;;  %2941 = vadd.xlane.f32.xlu1 %v2936_v11  ;;  %v2915_v53 = vadd.f32 %v2907_v45, %v8737_v29  ;;  %v7236_v29 = vld [vmem:[#allocation12 + $0x154] ss:$12 sps:$4 sm:$0xff]   ;;  %v7234_v52 = vld [vmem:[#allocation12 + $0x150] ss:$12 sps:$4 sm:$0xff]  }
0x1463   :  { %3176 = vmatprep.subr.bf16.mxu1 %v7236_v29  ;;  %v6069_v45 = vld [vmem:[#allocation28] ss:$0 sm:$0xff] }
0x1464   :  { %2923 = vadd.xlane.f32.xlu0 %v2915_v53  ;;  %v2916_v63 = vadd.f32 %v2910_v50, %v8739_v42  ;;  %3177 = vmatpush1.bf16.msra.mxu1 %v7234_v52  ;;  %v7237_v42 = vld [vmem:[#allocation12 + $0x168] ss:$12 sps:$4 sm:$0xff]  }
0x1465   :  { %3178 = vmatprep.subr.bf16.mxu1 %v7239_v51 }
0x1466   :  { %2925 = vadd.xlane.f32.xlu1 %v2916_v63 }
0x1468   :  { %3179 = vmatpush1.bf16.msra.mxu1 %v7237_v42 }
0x14ed   :  { %v2940_v60 = vpop.xlane.xlu0 %2939 }
0x14ee   :  { %v2947_v61 = vmul.f32 0.0078125, %v2940_v60 }
0x14ef   :  { %v2942_v62 = vpop.xlane.xlu1 %2941 }
0x14f0   :  { %v2951_v20 = vadd.f32 1e-12, %v2947_v61  ;;  %v2948_v37 = vmul.f32 0.0078125, %v2942_v62 }
0x14f1   :  { %v2924_v35 = vpop.xlane.xlu0 %2923 }
0x14f2   :  { %7400 = vrsqrt.f32 %v2951_v20  ;;  %v2952_v56 = vadd.f32 1e-12, %v2948_v37  ;;  %v2929_v12 = vmul.f32 0.0078125, %v2924_v35  ;;  %v3019_v37 = vld [vmem:[#allocation13 + $0x3] sm:$0x7] }
0x14f3   :  { %v2926_v18 = vpop.xlane.xlu1 %2925  ;;  %v8774_v35 = vrot.slane %v3019_v37, %v8386_v15 }
0x14f4   :  { %7402 = vrsqrt.f32 %v2952_v56  ;;  %v2930_v30 = vmul.f32 0.0078125, %v2926_v18  ;;  %v2933_v25 = vsub.f32 %v2915_v53, %v2929_v12  ;;  %v3028_v12 = vrot.slane %v3019_v37, %v8389_v17 }
0x14f6   :  { %v2937_v33 = vmul.f32 %v2933_v25, %v2933_v25  ;;  %v2934_v58 = vsub.f32 %v2916_v63, %v2930_v30  ;;  %v7242_v63 = vld [vmem:[#allocation12 + $0xf8] ss:$12 sps:$4 sm:$0xff]  }
0x14f7   :  { %6589 = vmatprep.subr.bf16.mxu0 %v7242_v63 }
0x14f8   :  { %2943 = vadd.xlane.f32.xlu0 %v2937_v33  ;;  %v2938_v59 = vmul.f32 %v2934_v58, %v2934_v58  ;;  %6590 = vmatpush3.bf16.msra.mxu0 %v7242_v63 }
0x14fa   :  { %2945 = vadd.xlane.f32.xlu1 %v2938_v59 }
0x14fc   :  { %v7401_v48 = vpop.eup %7400 }
0x14fd   :  { %v2959_v41 = vmul.f32 %v7401_v48, %v8748_v47  ;;  %v7243_v47 = vld [vmem:[#allocation12 + $0x110] ss:$12 sps:$4 sm:$0xff]  }
0x14fe   :  { %v7403_v34 = vpop.eup %7402  ;;  %6591 = vmatprep.subr.bf16.mxu0 %v7243_v47 }
0x14ff   :  { %v2969_v39 = vmul.f32 %v6068_v0, %v2959_v41  ;;  %v2960_v38 = vmul.f32 %v7403_v34, %v8752_v1  ;;  %6592 = vmatpush3.bf16.msra.mxu0 %v7243_v47  ;;  %v7245_v1 = vld [vmem:[#allocation12 + $0x140] ss:$12 sps:$4 sm:$0xff]   ;;  %v3032_v34 = vrot.slane %v3019_v37, %v400_v44 }
0x1500   :  { %6593 = vmatprep.subr.bf16.mxu0 %v7244_v36 }
0x1501   :  { %v2970_v2 = vmul.f32 %v6068_v0, %v2960_v38  ;;  %v8760_v11 = vadd.f32 %v6069_v45, %v2969_v39 }
0x1503   :  { %v8762_v50 = vadd.f32 %v6069_v45, %v2970_v2  ;;  %6594 = vmatpush3.bf16.msra.mxu0 %v7244_v36 }
0x1504   :  { %6595 = vmatprep.subr.bf16.mxu0 %v7245_v1 }
0x1505   :  { %v2983_v53 = vpack.c.bf16 %v8762_v50, %v8760_v11 }
0x1507   :  { %3197 = vmatmul.mubr.bf16.vlgmr.msra.gmra.mrb[32].mxu1 %v2983_v53  ;;  %6601 = vmatprep.mubr.bf16.mxu0 %v2983_v53 }
0x1508   :  { %3206 = vmatprep.mubr.bf16.mxu1 %v9428_v28  ;;  %6596 = vmatpush3.bf16.msra.mxu0 %v7245_v1 }
0x1509   :  { %6597 = vmatprep.subr.bf16.mxu0 %v7246_v57 }
0x150c   :  { %6598 = vmatpush3.bf16.msra.mxu0 %v7246_v57 }
0x150d   :  { %6599 = vmatprep.subr.bf16.mxu0 %v7247_v9 }
0x1510   :  { %6600 = vmatpush3.bf16.msra.mxu0 %v7247_v9 }
0x1585   :  { %v2944_v13 = vpop.xlane.xlu0 %2943 }
0x1586   :  { %v2949_v4 = vmul.f32 0.0078125, %v2944_v13 }
0x1587   :  { %v2946_v10 = vpop.xlane.xlu1 %2945 }
0x1588   :  { %v2953_v19 = vadd.f32 1e-12, %v2949_v4  ;;  %v2950_v5 = vmul.f32 0.0078125, %v2946_v10 }
0x158a   :  { %7404 = vrsqrt.f32 %v2953_v19  ;;  %v2954_v29 = vadd.f32 1e-12, %v2950_v5 }
0x158c   :  { %7406 = vrsqrt.f32 %v2954_v29 }
0x1594   :  { %v7405_v52 = vpop.eup %7404 }
0x1595   :  { %v2961_v42 = vmul.f32 %v7405_v52, %v2933_v25 }
0x1596   :  { %v7407_v51 = vpop.eup %7406 }
0x1597   :  { %v2962_v7 = vmul.f32 %v7407_v51, %v2934_v58  ;;  %v2971_v46 = vmul.f32 %v6068_v0, %v2961_v42 }
0x1599   :  { %v2972_v60 = vmul.f32 %v6068_v0, %v2962_v7  ;;  %v8767_v61 = vadd.f32 %v6069_v45, %v2971_v46  ;;  %v8809_v7 = vld [vmem:[#allocation7] ss:$0 sm:$0xff] }
0x159b   :  { %v8769_v62 = vadd.f32 %v6069_v45, %v2972_v60 }
0x159d   :  { %v2984_v20 = vpack.c.bf16 %v8769_v62, %v8767_v61 }
0x159f   :  { %3207 = vmatmul.mubr.bf16.gmra.mrb[36].mxu1 %v2984_v20  ;;  %6602 = vmatmul.mubr.bf16.vlgmr.msra.gmra.mrb[32].mxu0 %v2984_v20 }
0x15da   :  { %v3198_v56 = vpop.f32.mrb[32].mxu1 }
0x15db   :  { %v8778_v18 = vadd.f32 %v3198_v56, %v8774_v35  ;;  %v3200_v30 = vpop.f32.mrb[33].mxu1 }
0x15dc   :  { %v3202_v25 = vpop.f32.mrb[34].mxu1  ;;  %v3201_v58 = vadd.f32 %v3200_v30, %v3028_v12 }
0x15dd   :  { %v3204_v33 = vpop.f32.mrb[35].mxu1  ;;  %6609 = vmatprep.mubr.msk.f32.mxu1 %vm642_vm0, %v8778_v18  ;;  %v8789_v41 = vadd.f32 %v3202_v25, %v8774_v35 }
0x15de   :  { %v3205_v59 = vadd.f32 %v3204_v33, %v3028_v12 }
0x15e0   :  { %v6837_v48 = vpack.c.bf16 %v3205_v59, %v3201_v58  ;;  %v8782_v0 = vpack.i.bf16 %v3205_v59, %v3201_v58 }
0x15e2   :  { %6839 = vmatprep.subr.msk.bf16.mxu1 %vm8404_vm1, %v6837_v48 }
0x15e3   :  { %6842 = vmatpush3.bf16.xpose.msk.msra.mxu1 %vm8404_vm1, %v6837_v48 }
0x15ea   :  { %6610 = vmatmul.mubr.msk.f32.vlgmr.msra.gmra.mrb[40].mxu1 %vm642_vm0, %v8789_v41 }
0x1672   :  { %v8795_v39 = vpop.f32.mrb[36].mxu1  ;;  %v6603_v38 = vpop.f32.mrb[32].mxu0 }
0x1673   :  { %v3260_v45 = vadd.f32 %v6603_v38, %v3032_v34  ;;  %v3210_v2 = vpop.f32.mrb[37].mxu1  ;;  %v3251_v53 = vpop.f32.mrb[33].mxu0 }
0x1674   :  { %v8797_v63 = vpop.f32.mrb[38].mxu1  ;;  %v6604_v47 = vpop.f32.mrb[34].mxu0  ;;  %v3211_v9 = vadd.f32 %v3210_v2, %v3028_v12  ;;  %v3252_v13 = vadd.f32 %v3251_v53, %v3032_v34 }
0x1675   :  { %v3263_v36 = vadd.f32 %v6604_v47, %v3032_v34  ;;  %v3214_v1 = vpop.f32.mrb[39].mxu1  ;;  %v3254_v57 = vpop.f32.mrb[35].mxu0 }
0x1676   :  { %v3215_v4 = vadd.f32 %v3214_v1, %v3028_v12  ;;  %v3255_v10 = vadd.f32 %v3254_v57, %v3032_v34 }
0x1677   :  { %v8799_v19 = vpack.c.bf16 %v3263_v36, %v3260_v45  ;;  %v8801_v5 = vpack.i.bf16 %v3263_v36, %v3260_v45 }
0x1678   :  { %v6843_v44 = vpack.c.bf16 %v3255_v10, %v3252_v13  ;;  %v8803_v29 = vpack.i.bf16 %v3255_v10, %v3252_v13  ;;  %v8805_v52 = vpack.i.bf16 %v3215_v4, %v3211_v9  ;;  %v8807_v42 = vpack.c.bf16 %v3215_v4, %v3211_v9 }
0x167a   :  { %6844 = vmatprep.subr.bf16.mxu1 %v6843_v44 }
0x167b   :  { %6846 = vmatpush3.bf16.msra.mxu1 %v6843_v44 }
0x16bd   :  { %v6611_v51 = vpop.f32.mrb[40].mxu1 }
0x16be   :  { %v3350_v46 = vadd.f32 %v8809_v7, %v6611_v51  ;;  %v3344_v60 = vpop.f32.mrb[41].mxu1 }
0x16bf   :  { %v3345_v20 = vadd.f32 %v8809_v7, %v3344_v60 }
0x16c0   :  { %v3356_v37 = vsel %vm730_vm2, %v3350_v46, -inf }
0x16c1   :  { %3357 = vmax.xlane.f32.xlu1 %v3356_v37  ;;  %v3353_v56 = vsel %vm730_vm2, %v3345_v20, -inf }
0x16c2   :  { %3354 = vmax.xlane.f32.xlu0 %v3353_v56 }
0x174e   :  { %v3358_v12 = vpop.xlane.xlu1 %3357 }
0x174f   :  { %v3360_v30 = vsub.f32 %v3350_v46, %v3358_v12  ;;  %v3355_v25 = vpop.xlane.xlu0 %3354 }
0x1750   :  { %v3359_v33 = vsub.f32 %v3345_v20, %v3355_v25 }
0x1751   :  { %v3363_v58 = vmul.f32 1.442695, %v3360_v30 }
0x1752   :  { %v3361_v59 = vmul.f32 1.442695, %v3359_v33 }
0x1753   :  { %7408 = vpow2.f32 %v3363_v58 }
0x1754   :  { %7410 = vpow2.f32 %v3361_v59 }
0x175d   :  { %v7409_v48 = vpop.eup %7408 }
0x175e   :  { %v7411_v34 = vpop.eup %7410  ;;  %v3368_v38 = vsel %vm730_vm2, %v7409_v48, 0.0 }
0x175f   :  { %3369 = vadd.xlane.f32.xlu1 %v3368_v38  ;;  %v3365_v45 = vsel %vm730_vm2, %v7411_v34, 0.0 }
0x1760   :  { %3366 = vadd.xlane.f32.xlu0 %v3365_v45 }
0x1770   :  { %3456 = vrot.lane.b32.xlu1 %v8778_v18, %s7990_s16 }
0x1774   :  { %7052 = vrot.lane.b32.xlu1 %v8782_v0, %s7982_s26 }
0x1776   :  { %7047 = vrot.lane.b32.xlu0 %v8782_v0, %s7990_s16 }
0x1778   :  { %3458 = vrot.lane.b32.xlu1 %v8789_v41, %s7990_s16 }
0x177a   :  { %3658 = vrot.lane.b32.xlu0 %v8778_v18, %s7982_s26 }
0x177c   :  { %3660 = vrot.lane.b32.xlu1 %v8789_v41, %s7982_s26 }
0x17ec   :  { %v3370_v2 = vpop.xlane.xlu1 %3369 }
0x17ed   :  { %7412 = vrcp.f32 %v3370_v2  ;;  %v3367_v53 = vpop.xlane.xlu0 %3366 }
0x17ee   :  { %7414 = vrcp.f32 %v3367_v53 }
0x17f0   :  { %v3457_v47 = vpop.permute.xlu1 %3456 }
0x17f1   :  { %v7048_v36 = vpop.permute.xlu0 %7047 }
0x17f2   :  { %v7050_v1 = vunpack.i.h.bf16 %v7048_v36  ;;  %v7049_v57 = vunpack.i.l.bf16 %v7048_v36 }
0x17f4   :  { %v6847_v9 = vpack.c.bf16 %v7050_v1, %v7049_v57  ;;  %v7053_v13 = vpop.permute.xlu1 %7052 }
0x17f5   :  { %v7055_v4 = vunpack.i.h.bf16 %v7053_v13  ;;  %v7054_v10 = vunpack.i.l.bf16 %v7053_v13  ;;  %v3659_v44 = vpop.permute.xlu0 %3658 }
0x17f6   :  { %6849 = vmatprep.subr.msk.bf16.mxu1 %vm8404_vm1, %v6847_v9  ;;  %6637 = vmatprep.mubr.msk.f32.mxu0 %vm642_vm0, %v3659_v44 }
0x17f7   :  { %v7413_v51 = vpop.eup %7412  ;;  %v6857_v46 = vpack.c.bf16 %v7055_v4, %v7054_v10 }
0x17f8   :  { %v7415_v60 = vpop.eup %7414  ;;  %v3459_v37 = vpop.permute.xlu1 %3458  ;;  %v8838_v56 = vmul.f32 %v7413_v51, %v7409_v48 }
0x17f9   :  { %6859 = vmatprep.subr.msk.bf16.mxu0 %vm8404_vm1, %v6857_v46  ;;  %v8834_v20 = vmul.f32 %v7415_v60, %v7411_v34 }
0x17fa   :  { %6862 = vmatpush3.bf16.xpose.msk.msra.mxu0 %vm8404_vm1, %v6857_v46 }
0x17fb   :  { %6616 = vmatprep.mubr.msk.f32.mxu1 %vm730_vm2, %v8834_v20 }
0x17fc   :  { %6617 = vmatmul.mubr.msk.f32.vlgmr.msra.gmra.mrb[42].mxu1 %vm730_vm2, %v8838_v56  ;;  %v3661_v12 = vpop.permute.xlu1 %3660 }
0x17fd   :  { %6852 = vmatpush3.bf16.xpose.msk.msra.mxu1 %vm8404_vm1, %v6847_v9  ;;  %6623 = vmatprep.mubr.msk.f32.mxu1 %vm642_vm0, %v3457_v47 }
0x1801   :  { %6638 = vmatmul.mubr.msk.f32.vlgmr.msra.gmra.mrb[36].mxu0 %vm642_vm0, %v3661_v12 }
0x1804   :  { %6624 = vmatmul.mubr.msk.f32.vlgmr.msra.gmra.mrb[44].mxu1 %vm642_vm0, %v3459_v37 }
0x18cf   :  { %v8849_v30 = vpop.f32.mrb[42].mxu1 }
0x18d0   :  { %v8851_v25 = vpop.f32.mrb[43].mxu1 }
0x18d4   :  { %v6639_v33 = vpop.f32.mrb[36].mxu0 }
0x18d5   :  { %v3740_v58 = vpop.f32.mrb[37].mxu0  ;;  %v3746_v47 = vadd.f32 %v8809_v7, %v6639_v33 }
0x18d6   :  { %v3741_v2 = vadd.f32 %v8809_v7, %v3740_v58 }
0x18d7   :  { %v6625_v59 = vpop.f32.mrb[44].mxu1  ;;  %v3752_v1 = vsel %vm730_vm2, %v3746_v47, -inf }
0x18d8   :  { %v3544_v48 = vadd.f32 %v8809_v7, %v6625_v59  ;;  %v3538_v34 = vpop.f32.mrb[45].mxu1  ;;  %v3749_v36 = vsel %vm730_vm2, %v3741_v2, -inf }
0x18d9   :  { %v3539_v38 = vadd.f32 %v8809_v7, %v3538_v34 }
0x18da   :  { %v3550_v45 = vsel %vm730_vm2, %v3544_v48, -inf }
0x18db   :  { %3551 = vmax.xlane.f32.xlu1 %v3550_v45  ;;  %v3547_v53 = vsel %vm730_vm2, %v3539_v38, -inf }
0x18dc   :  { %3548 = vmax.xlane.f32.xlu0 %v3547_v53 }
0x18e0   :  { %3750 = vmax.xlane.f32.xlu0 %v3749_v36 }
0x18e4   :  { %3753 = vmax.xlane.f32.xlu0 %v3752_v1 }
0x1968   :  { %v3552_v13 = vpop.xlane.xlu1 %3551 }
0x1969   :  { %v3549_v57 = vpop.xlane.xlu0 %3548  ;;  %v3554_v44 = vsub.f32 %v3544_v48, %v3552_v13 }
0x196a   :  { %v3553_v9 = vsub.f32 %v3539_v38, %v3549_v57 }
0x196b   :  { %v3557_v12 = vmul.f32 1.442695, %v3554_v44 }
0x196c   :  { %v3555_v51 = vmul.f32 1.442695, %v3553_v9 }
0x196d   :  { %v3751_v4 = vpop.xlane.xlu0 %3750 }
0x196e   :  { %v3755_v10 = vsub.f32 %v3741_v2, %v3751_v4 }
0x1970   :  { %v3757_v46 = vmul.f32 1.442695, %v3755_v10 }
0x1971   :  { %v3754_v60 = vpop.xlane.xlu0 %3753 }
0x1972   :  { %7416 = vpow2.f32 %v3757_v46  ;;  %v3756_v37 = vsub.f32 %v3746_v47, %v3754_v60 }
0x1973   :  { %7418 = vpow2.f32 %v3555_v51 }
0x1974   :  { %v3759_v33 = vmul.f32 1.442695, %v3756_v37 }
0x1976   :  { %7420 = vpow2.f32 %v3759_v33 }
0x1977   :  { %7422 = vpow2.f32 %v3557_v12 }
0x197c   :  { %v7417_v58 = vpop.eup %7416 }
0x197d   :  { %v3761_v59 = vsel %vm730_vm2, %v7417_v58, 0.0  ;;  %v7419_v34 = vpop.eup %7418 }
0x197e   :  { %3762 = vadd.xlane.f32.xlu0 %v3761_v59  ;;  %v3559_v45 = vsel %vm730_vm2, %v7419_v34, 0.0 }
0x1980   :  { %v7421_v38 = vpop.eup %7420 }
0x1981   :  { %v3764_v48 = vsel %vm730_vm2, %v7421_v38, 0.0  ;;  %v7423_v2 = vpop.eup %7422 }
0x1982   :  { %3560 = vadd.xlane.f32.xlu0 %v3559_v45  ;;  %3765 = vadd.xlane.f32.xlu1 %v3764_v48  ;;  %v3562_v53 = vsel %vm730_vm2, %v7423_v2, 0.0 }
0x1986   :  { %3563 = vadd.xlane.f32.xlu1 %v3562_v53 }
0x1997   :  { %7062 = vrot.lane.b32.xlu1 %v8803_v29, %s7982_s26 }
0x1998   :  { %7057 = vrot.lane.b32.xlu0 %v8803_v29, %s7990_s16 }
0x199b   :  { %7067 = vrot.lane.b32.xlu1 %v8782_v0, %s7971_s10 }
0x199c   :  { %3860 = vrot.lane.b32.xlu0 %v8789_v41, %s7971_s10 }
0x199f   :  { %3858 = vrot.lane.b32.xlu1 %v8778_v18, %s7971_s10 }
0x1a0b   :  { %v3763_v47 = vpop.xlane.xlu0 %3762 }
0x1a0f   :  { %v3766_v36 = vpop.xlane.xlu1 %3765  ;;  %v3561_v1 = vpop.xlane.xlu0 %3560 }
0x1a10   :  { %7424 = vrcp.f32 %v3561_v1 }
0x1a11   :  { %7426 = vrcp.f32 %v3763_v47 }
0x1a13   :  { %v3564_v57 = vpop.xlane.xlu1 %3563  ;;  %v7058_v9 = vpop.permute.xlu0 %7057 }
0x1a14   :  { %7428 = vrcp.f32 %v3564_v57  ;;  %v7060_v13 = vunpack.i.h.bf16 %v7058_v9  ;;  %v7059_v4 = vunpack.i.l.bf16 %v7058_v9 }
0x1a15   :  { %7430 = vrcp.f32 %v3766_v36 }
0x1a16   :  { %v6853_v10 = vpack.c.bf16 %v7060_v13, %v7059_v4 }
0x1a17   :  { %v7063_v44 = vpop.permute.xlu1 %7062 }
0x1a18   :  { %v7065_v0 = vunpack.i.h.bf16 %v7063_v44  ;;  %v7064_v51 = vunpack.i.l.bf16 %v7063_v44  ;;  %6854 = vmatprep.subr.bf16.mxu1 %v6853_v10 }
0x1a19   :  { %6856 = vmatpush3.bf16.msra.mxu1 %v6853_v10 }
0x1a1a   :  { %v6863_v41 = vpack.c.bf16 %v7065_v0, %v7064_v51  ;;  %v7425_v46 = vpop.eup %7424 }
0x1a1b   :  { %v7068_v18 = vpop.permute.xlu1 %7067  ;;  %v8875_v60 = vmul.f32 %v7425_v46, %v7419_v34  ;;  %v7427_v37 = vpop.eup %7426 }
0x1a1c   :  { %6864 = vmatprep.subr.bf16.mxu1 %v6863_v41  ;;  %v7070_v12 = vunpack.i.h.bf16 %v7068_v18  ;;  %v7069_v33 = vunpack.i.l.bf16 %v7068_v18  ;;  %v8881_v53 = vmul.f32 %v7427_v37, %v7417_v58  ;;  %v3861_v58 = vpop.permute.xlu0 %3860 }
0x1a1d   :  { %6630 = vmatprep.mubr.msk.f32.mxu1 %vm730_vm2, %v8875_v60 }
0x1a1e   :  { %v7429_v59 = vpop.eup %7428  ;;  %v6867_v47 = vpack.c.bf16 %v7070_v12, %v7069_v33 }
0x1a1f   :  { %v8879_v45 = vmul.f32 %v7429_v59, %v7423_v2  ;;  %v7431_v48 = vpop.eup %7430  ;;  %v3859_v36 = vpop.permute.xlu1 %3858 }
0x1a20   :  { %v8887_v34 = vmul.f32 %v7431_v48, %v7421_v38 }
0x1a21   :  { %6631 = vmatmul.mubr.msk.f32.vlgmr.msra.gmra.mrb[46].mxu1 %vm730_vm2, %v8879_v45 }
0x1a22   :  { %6866 = vmatpush3.bf16.msra.mxu1 %v6863_v41  ;;  %6644 = vmatprep.mubr.msk.f32.mxu1 %vm730_vm2, %v8881_v53  ;;  %v8921_v41 = vadd.f32 %v8797_v63, %v8774_v35 }
0x1a23   :  { %6869 = vmatprep.subr.msk.bf16.mxu1 %vm8404_vm1, %v6867_v47 }
0x1a25   :  { %6645 = vmatmul.mubr.msk.f32.vlgmr.msra.gmra.mrb[48].mxu1 %vm730_vm2, %v8887_v34 }
0x1a26   :  { %6651 = vmatprep.mubr.msk.f32.mxu1 %vm642_vm0, %v3859_v36 }
0x1a2b   :  { %6872 = vmatpush3.bf16.xpose.msk.msra.mxu1 %vm8404_vm1, %v6867_v47 }
0x1a2c   :  { %6884 = vmatprep.subr.bf16.mxu1 %v8799_v19 }
0x1a32   :  { %6652 = vmatmul.mubr.msk.f32.vlgmr.msra.gmra.mrb[50].mxu1 %vm642_vm0, %v3861_v58 }
0x1a33   :  { %6886 = vmatpush3.bf16.msra.mxu1 %v8799_v19 }
0x1af4   :  { %v8899_v38 = vpop.f32.mrb[46].mxu1 }
0x1af5   :  { %v8901_v2 = vpop.f32.mrb[47].mxu1 }
0x1af8   :  { %v8905_v57 = vpop.f32.mrb[48].mxu1 }
0x1af9   :  { %v8907_v9 = vpop.f32.mrb[49].mxu1 }
0x1b05   :  { %v6653_v4 = vpop.f32.mrb[50].mxu1 }
0x1b06   :  { %v3946_v10 = vadd.f32 %v8809_v7, %v6653_v4  ;;  %v3940_v44 = vpop.f32.mrb[51].mxu1 }
0x1b07   :  { %v3941_v19 = vadd.f32 %v8809_v7, %v3940_v44 }
0x1b08   :  { %v3952_v0 = vsel %vm730_vm2, %v3946_v10, -inf }
0x1b09   :  { %3953 = vmax.xlane.f32.xlu0 %v3952_v0  ;;  %v3949_v51 = vsel %vm730_vm2, %v3941_v19, -inf }
0x1b0a   :  { %3950 = vmax.xlane.f32.xlu1 %v3949_v51 }
0x1b1b   :  { %7072 = vrot.lane.b32.xlu1 %v8803_v29, %s7971_s10 }
0x1b1f   :  { %7077 = vrot.lane.b32.xlu1 %v8805_v52, %s7990_s16 }
0x1b23   :  { %4280 = vrot.lane.b32.xlu1 %v8921_v41, %s7990_s16 }
0x1b96   :  { %v3954_v7 = vpop.xlane.xlu0 %3953 }
0x1b97   :  { %v3956_v46 = vsub.f32 %v3946_v10, %v3954_v7  ;;  %v3951_v18 = vpop.xlane.xlu1 %3950 }
0x1b98   :  { %v3955_v37 = vsub.f32 %v3941_v19, %v3951_v18 }
0x1b99   :  { %v3959_v12 = vmul.f32 1.442695, %v3956_v46 }
0x1b9a   :  { %v3957_v33 = vmul.f32 1.442695, %v3955_v37 }
0x1b9b   :  { %v7073_v59 = vpop.permute.xlu1 %7072 }
0x1b9c   :  { %7432 = vpow2.f32 %v3957_v33  ;;  %v7075_v48 = vunpack.i.h.bf16 %v7073_v59  ;;  %v7074_v29 = vunpack.i.l.bf16 %v7073_v59  ;;  %v8940_v33 = vadd.f32 %v8795_v39, %v8774_v35 }
0x1b9d   :  { %7434 = vpow2.f32 %v3959_v12 }
0x1b9e   :  { %v6873_v47 = vpack.c.bf16 %v7075_v48, %v7074_v29 }
0x1b9f   :  { %v7078_v36 = vpop.permute.xlu1 %7077 }
0x1ba0   :  { %v7080_v58 = vunpack.i.h.bf16 %v7078_v36  ;;  %v7079_v4 = vunpack.i.l.bf16 %v7078_v36  ;;  %6874 = vmatprep.subr.bf16.mxu0 %v6873_v47 }
0x1ba1   :  { %6876 = vmatpush3.bf16.msra.mxu0 %v6873_v47  ;;  %v8957_v47 = vld [vmem:[#allocation7 + $0x1] ss:$0 sm:$0xff] }
0x1ba2   :  { %v6887_v63 = vpack.c.bf16 %v7080_v58, %v7079_v4  ;;  %6879 = vmatprep.subr.msk.bf16.mxu0 %vm8404_vm1, %v8807_v42 }
0x1ba4   :  { %6889 = vmatprep.subr.msk.bf16.mxu1 %vm8404_vm1, %v6887_v63 }
0x1ba6   :  { %v7433_v10 = vpop.eup %7432 }
0x1ba7   :  { %v3961_v44 = vsel %vm730_vm2, %v7433_v10, 0.0  ;;  %v7435_v19 = vpop.eup %7434 }
0x1ba8   :  { %3962 = vadd.xlane.f32.xlu0 %v3961_v44  ;;  %v3964_v0 = vsel %vm730_vm2, %v7435_v19, 0.0 }
0x1bac   :  { %3965 = vadd.xlane.f32.xlu0 %v3964_v0 }
0x1c35   :  { %v3963_v51 = vpop.xlane.xlu0 %3962 }
0x1c36   :  { %7436 = vrcp.f32 %v3963_v51 }
0x1c39   :  { %v3966_v7 = vpop.xlane.xlu0 %3965 }
0x1c3a   :  { %7438 = vrcp.f32 %v3966_v7 }
0x1c40   :  { %v7437_v46 = vpop.eup %7436 }
0x1c41   :  { %v8932_v18 = vmul.f32 %v7437_v46, %v7433_v10 }
0x1c43   :  { %6658 = vmatprep.mubr.msk.f32.mxu0 %vm730_vm2, %v8932_v18 }
0x1c44   :  { %v7439_v37 = vpop.eup %7438 }
0x1c45   :  { %v8936_v12 = vmul.f32 %v7439_v37, %v7435_v19 }
0x1c47   :  { %6659 = vmatmul.mubr.msk.f32.vlgmr.msra.gmra.mrb[38].mxu0 %vm730_vm2, %v8936_v12 }
0x1c48   :  { %6882 = vmatpush3.bf16.xpose.msk.msra.mxu0 %vm8404_vm1, %v8807_v42  ;;  %6665 = vmatprep.mubr.msk.f32.mxu0 %vm642_vm0, %v8940_v33 }
0x1c4f   :  { %6666 = vmatmul.mubr.msk.f32.vlgmr.msra.gmra.mrb[40].mxu0 %vm642_vm0, %v8921_v41 }
0x1d1a   :  { %v8951_v59 = vpop.f32.mrb[38].mxu0 }
0x1d1b   :  { %v8953_v48 = vpop.f32.mrb[39].mxu0 }
0x1d22   :  { %v6667_v39 = vpop.f32.mrb[40].mxu0 }
0x1d23   :  { %v4166_v29 = vpop.f32.mrb[41].mxu0  ;;  %v4172_v42 = vadd.f32 %v8957_v47, %v6667_v39 }
0x1d24   :  { %v4167_v36 = vadd.f32 %v8957_v47, %v4166_v29 }
0x1d25   :  { %v4178_v4 = vsel %vm730_vm2, %v4172_v42, -inf }
0x1d26   :  { %v4175_v58 = vsel %vm730_vm2, %v4167_v36, -inf }
0x1d27   :  { %4176 = vmax.xlane.f32.xlu0 %v4175_v58 }
0x1d2b   :  { %4179 = vmax.xlane.f32.xlu0 %v4178_v4 }
0x1db4   :  { %v4177_v10 = vpop.xlane.xlu0 %4176 }
0x1db5   :  { %v4181_v44 = vsub.f32 %v4167_v36, %v4177_v10 }
0x1db7   :  { %v4183_v19 = vmul.f32 1.442695, %v4181_v44 }
0x1db8   :  { %v4180_v0 = vpop.xlane.xlu0 %4179 }
0x1db9   :  { %7440 = vpow2.f32 %v4183_v19  ;;  %v4182_v51 = vsub.f32 %v4172_v42, %v4180_v0  ;;  %v4281_v0 = vpop.permute.xlu1 %4280 }
0x1dbb   :  { %v4185_v7 = vmul.f32 1.442695, %v4182_v51 }
0x1dbd   :  { %7442 = vpow2.f32 %v4185_v7 }
0x1dc3   :  { %v7441_v46 = vpop.eup %7440 }
0x1dc4   :  { %v4187_v37 = vsel %vm730_vm2, %v7441_v46, 0.0 }
0x1dc5   :  { %4188 = vadd.xlane.f32.xlu0 %v4187_v37 }
0x1dc7   :  { %v7443_v29 = vpop.eup %7442 }
0x1dc8   :  { %v4190_v39 = vsel %vm730_vm2, %v7443_v29, 0.0 }
0x1dc9   :  { %4191 = vadd.xlane.f32.xlu0 %v4190_v39 }
0x1ddf   :  { %4278 = vrot.lane.b32.xlu0 %v8940_v33, %s7990_s16 }
0x1e52   :  { %v4189_v58 = vpop.xlane.xlu0 %4188 }
0x1e53   :  { %7444 = vrcp.f32 %v4189_v58 }
0x1e56   :  { %v4192_v36 = vpop.xlane.xlu0 %4191 }
0x1e57   :  { %7446 = vrcp.f32 %v4192_v36 }
0x1e5a   :  { %v4279_v19 = vpop.permute.xlu0 %4278 }
0x1e5d   :  { %v7445_v4 = vpop.eup %7444 }
0x1e5e   :  { %v8967_v10 = vmul.f32 %v7445_v4, %v7441_v46 }
0x1e60   :  { %6672 = vmatprep.mubr.msk.f32.mxu1 %vm730_vm2, %v8967_v10 }
0x1e61   :  { %v7447_v42 = vpop.eup %7446 }
0x1e62   :  { %v8971_v44 = vmul.f32 %v7447_v42, %v7443_v29 }
0x1e64   :  { %6673 = vmatmul.mubr.msk.f32.vlgmr.msra.gmra.mrb[52].mxu1 %vm730_vm2, %v8971_v44 }
0x1e65   :  { %6892 = vmatpush3.bf16.xpose.msk.msra.mxu1 %vm8404_vm1, %v6887_v63  ;;  %6679 = vmatprep.mubr.msk.f32.mxu1 %vm642_vm0, %v4279_v19 }
0x1e6c   :  { %6680 = vmatmul.mubr.msk.f32.vlgmr.msra.gmra.mrb[54].mxu1 %vm642_vm0, %v4281_v0 }
0x1f37   :  { %v8979_v51 = vpop.f32.mrb[52].mxu1 }
0x1f38   :  { %v8981_v7 = vpop.f32.mrb[53].mxu1 }
0x1f3f   :  { %v6681_v46 = vpop.f32.mrb[54].mxu1 }
0x1f40   :  { %v4366_v37 = vadd.f32 %v8957_v47, %v6681_v46  ;;  %v4360_v29 = vpop.f32.mrb[55].mxu1 }
0x1f41   :  { %v4361_v39 = vadd.f32 %v8957_v47, %v4360_v29 }
0x1f42   :  { %v4372_v58 = vsel %vm730_vm2, %v4366_v37, -inf }
0x1f43   :  { %4373 = vmax.xlane.f32.xlu0 %v4372_v58  ;;  %v4369_v63 = vsel %vm730_vm2, %v4361_v39, -inf }
0x1f44   :  { %4370 = vmax.xlane.f32.xlu1 %v4369_v63 }
0x1f55   :  { %7082 = vrot.lane.b32.xlu1 %v8801_v5, %s7990_s16 }
0x1f59   :  { %7087 = vrot.lane.b32.xlu0 %v8805_v52, %s7982_s26  ;;  %4480 = vrot.lane.b32.xlu1 %v8940_v33, %s7982_s26 }
0x1fd0   :  { %v4374_v36 = vpop.xlane.xlu0 %4373 }
0x1fd1   :  { %v4376_v4 = vsub.f32 %v4366_v37, %v4374_v36  ;;  %v4371_v42 = vpop.xlane.xlu1 %4370 }
0x1fd2   :  { %v4375_v19 = vsub.f32 %v4361_v39, %v4371_v42 }
0x1fd3   :  { %v4379_v0 = vmul.f32 1.442695, %v4376_v4 }
0x1fd4   :  { %v4377_v46 = vmul.f32 1.442695, %v4375_v19  ;;  %v7088_v29 = vpop.permute.xlu0 %7087 }
0x1fd5   :  { %7448 = vpow2.f32 %v4379_v0  ;;  %v7083_v58 = vpop.permute.xlu1 %7082  ;;  %v7090_v1 = vunpack.i.h.bf16 %v7088_v29  ;;  %v7089_v63 = vunpack.i.l.bf16 %v7088_v29 }
0x1fd6   :  { %v7085_v35 = vunpack.i.h.bf16 %v7083_v58  ;;  %v7084_v13 = vunpack.i.l.bf16 %v7083_v58  ;;  %7450 = vpow2.f32 %v4377_v46 }
0x1fd7   :  { %v6897_v21 = vpack.c.bf16 %v7090_v1, %v7089_v63 }
0x1fd8   :  { %v6893_v28 = vpack.c.bf16 %v7085_v35, %v7084_v13 }
0x1fd9   :  { %v4481_v42 = vpop.permute.xlu1 %4480 }
0x1fda   :  { %6894 = vmatprep.subr.bf16.mxu0 %v6893_v28 }
0x1fdb   :  { %6896 = vmatpush3.bf16.msra.mxu0 %v6893_v28 }
0x1fdc   :  { %6899 = vmatprep.subr.msk.bf16.mxu0 %vm8404_vm1, %v6897_v21 }
0x1fdf   :  { %v7449_v37 = vpop.eup %7448 }
0x1fe0   :  { %v4384_v39 = vsel %vm730_vm2, %v7449_v37, 0.0  ;;  %v7451_v36 = vpop.eup %7450 }
0x1fe1   :  { %4385 = vadd.xlane.f32.xlu1 %v4384_v39  ;;  %v4381_v4 = vsel %vm730_vm2, %v7451_v36, 0.0 }
0x1fe5   :  { %4382 = vadd.xlane.f32.xlu1 %v4381_v4 }
0x1ff6   :  { %4482 = vrot.lane.b32.xlu1 %v8921_v41, %s7982_s26 }
0x206e   :  { %v4386_v19 = vpop.xlane.xlu1 %4385 }
0x206f   :  { %7452 = vrcp.f32 %v4386_v19 }
0x2072   :  { %v4383_v1 = vpop.xlane.xlu1 %4382 }
0x2073   :  { %7454 = vrcp.f32 %v4383_v1 }
0x2076   :  { %v4483_v46 = vpop.permute.xlu1 %4482 }
0x2079   :  { %v7453_v28 = vpop.eup %7452 }
0x207a   :  { %v9001_v0 = vmul.f32 %v7453_v28, %v7449_v37 }
0x207d   :  { %v7455_v13 = vpop.eup %7454 }
0x207e   :  { %v8999_v35 = vmul.f32 %v7455_v13, %v7451_v36 }
0x2080   :  { %6686 = vmatprep.mubr.msk.f32.mxu0 %vm730_vm2, %v8999_v35 }
0x2081   :  { %6687 = vmatmul.mubr.msk.f32.vlgmr.msra.gmra.mrb[42].mxu0 %vm730_vm2, %v9001_v0 }
0x2082   :  { %6902 = vmatpush3.bf16.xpose.msk.msra.mxu0 %vm8404_vm1, %v6897_v21  ;;  %6693 = vmatprep.mubr.msk.f32.mxu0 %vm642_vm0, %v4481_v42 }
0x2089   :  { %6694 = vmatmul.mubr.msk.f32.vlgmr.msra.gmra.mrb[44].mxu0 %vm642_vm0, %v4483_v46 }
0x2154   :  { %v9011_v29 = vpop.f32.mrb[42].mxu0 }
0x2155   :  { %v9013_v58 = vpop.f32.mrb[43].mxu0 }
0x215c   :  { %v6695_v37 = vpop.f32.mrb[44].mxu0 }
0x215d   :  { %v4568_v39 = vadd.f32 %v8957_v47, %v6695_v37  ;;  %v4562_v36 = vpop.f32.mrb[45].mxu0 }
0x215e   :  { %v4563_v4 = vadd.f32 %v8957_v47, %v4562_v36 }
0x215f   :  { %v4574_v21 = vsel %vm730_vm2, %v4568_v39, -inf }
0x2160   :  { %4575 = vmax.xlane.f32.xlu0 %v4574_v21  ;;  %v4571_v42 = vsel %vm730_vm2, %v4563_v4, -inf }
0x2161   :  { %4572 = vmax.xlane.f32.xlu1 %v4571_v42 }
0x2172   :  { %7092 = vrot.lane.b32.xlu1 %v8801_v5, %s7982_s26 }
0x2176   :  { %4680 = vrot.lane.b32.xlu1 %v8940_v33, %s7971_s10 }
0x217a   :  { %4682 = vrot.lane.b32.xlu1 %v8921_v41, %s7971_s10 }
0x21ed   :  { %v4576_v19 = vpop.xlane.xlu0 %4575 }
0x21ee   :  { %v4578_v1 = vsub.f32 %v4568_v39, %v4576_v19  ;;  %v4573_v28 = vpop.xlane.xlu1 %4572 }
0x21ef   :  { %v4577_v13 = vsub.f32 %v4563_v4, %v4573_v28 }
0x21f0   :  { %v4581_v46 = vmul.f32 1.442695, %v4578_v1 }
0x21f1   :  { %v4579_v37 = vmul.f32 1.442695, %v4577_v13 }
0x21f2   :  { %7456 = vpow2.f32 %v4581_v46  ;;  %v7093_v36 = vpop.permute.xlu1 %7092 }
0x21f3   :  { %v7095_v21 = vunpack.i.h.bf16 %v7093_v36  ;;  %v7094_v63 = vunpack.i.l.bf16 %v7093_v36  ;;  %7458 = vpow2.f32 %v4579_v37 }
0x21f5   :  { %v6903_v42 = vpack.c.bf16 %v7095_v21, %v7094_v63 }
0x21f7   :  { %6904 = vmatprep.subr.bf16.mxu1 %v6903_v42 }
0x21f8   :  { %6906 = vmatpush3.bf16.msra.mxu1 %v6903_v42  ;;  %v9454_v42 = vmov 0  }
0x21fc   :  { %v7457_v23 = vpop.eup %7456 }
0x21fd   :  { %v4586_v33 = vsel %vm730_vm2, %v7457_v23, 0.0  ;;  %v7459_v32 = vpop.eup %7458 }
0x21fe   :  { %4587 = vadd.xlane.f32.xlu0 %v4586_v33  ;;  %v4583_v41 = vsel %vm730_vm2, %v7459_v32, 0.0 }
0x2202   :  { %4584 = vadd.xlane.f32.xlu0 %v4583_v41 }
0x2218   :  { %7097 = vrot.lane.b32.xlu0 %v8805_v52, %s7971_s10  ;;  %v4681_v52 = vpop.permute.xlu1 %4680 }
0x221c   :  { %v4683_v21 = vpop.permute.xlu1 %4682 }
0x228b   :  { %v4588_v39 = vpop.xlane.xlu0 %4587 }
0x228c   :  { %7460 = vrcp.f32 %v4588_v39 }
0x228f   :  { %v4585_v4 = vpop.xlane.xlu0 %4584 }
0x2290   :  { %7462 = vrcp.f32 %v4585_v4 }
0x2293   :  { %v7098_v19 = vpop.permute.xlu0 %7097 }
0x2294   :  { %v7100_v1 = vunpack.i.h.bf16 %v7098_v19  ;;  %v7099_v63 = vunpack.i.l.bf16 %v7098_v19 }
0x2296   :  { %v6907_v28 = vpack.c.bf16 %v7100_v1, %v7099_v63  ;;  %v7461_v13 = vpop.eup %7460  ;;  %v9455_v63 = vpack.i.bf16 %v8905_v57, %v8907_v9 }
0x2297   :  { %v9035_v36 = vmul.f32 %v7461_v13, %v7457_v23 }
0x2298   :  { %6909 = vmatprep.subr.msk.bf16.mxu1 %vm8404_vm1, %v6907_v28 }
0x229a   :  { %v7463_v46 = vpop.eup %7462 }
0x229b   :  { %v9033_v37 = vmul.f32 %v7463_v46, %v7459_v32 }
0x229d   :  { %6700 = vmatprep.mubr.msk.f32.mxu1 %vm730_vm2, %v9033_v37 }
0x229e   :  { %6701 = vmatmul.mubr.msk.f32.vlgmr.msra.gmra.mrb[56].mxu1 %vm730_vm2, %v9035_v36 }
0x229f   :  { %6912 = vmatpush3.bf16.xpose.msk.msra.mxu1 %vm8404_vm1, %v6907_v28  ;;  %6707 = vmatprep.mubr.msk.f32.mxu1 %vm642_vm0, %v4681_v52  ;;  %v9456_v28 = vpack.i.bf16 %v9011_v29, %v9013_v58 }
0x22a6   :  { %6708 = vmatmul.mubr.msk.f32.vlgmr.msra.gmra.mrb[58].mxu1 %vm642_vm0, %v4683_v21 }
0x22a7   :  { %5250 = vmatprep.mubr.bf16.mxu1 %v9454_v42 }
0x2371   :  { %v6702_v32 = vpop.f32.mrb[56].mxu1 }
0x2372   :  { %v4671_v23 = vpop.f32.mrb[57].mxu1 }
0x2373   :  { %v7126_v33 = vpack.i.bf16 %v6702_v32, %v4671_v23 }
0x2379   :  { %v6709_v41 = vpop.f32.mrb[58].mxu1 }
0x237a   :  { %v4768_v39 = vadd.f32 %v8957_v47, %v6709_v41  ;;  %v4762_v4 = vpop.f32.mrb[59].mxu1 }
0x237b   :  { %v4763_v19 = vadd.f32 %v8957_v47, %v4762_v4  ;;  %v9457_v47 = vpack.i.bf16 %v8951_v59, %v8953_v48 }
0x237c   :  { %v4774_v1 = vsel %vm730_vm2, %v4768_v39, -inf }
0x237d   :  { %4775 = vmax.xlane.f32.xlu0 %v4774_v1  ;;  %v4771_v27 = vsel %vm730_vm2, %v4763_v19, -inf }
0x237e   :  { %4772 = vmax.xlane.f32.xlu1 %v4771_v27 }
0x238f   :  { %7102 = vrot.lane.b32.xlu1 %v8801_v5, %s7971_s10 }
0x2393   :  { %7112 = vrot.lane.b32.xlu1 %v9455_v63, %s7982_s26 }
0x2397   :  { %7117 = vrot.lane.b32.xlu1 %v9456_v28, %s7971_s10  ;;  %v9458_v28 = vpack.i.bf16 %v8899_v38, %v8901_v2 }
0x239b   :  { %7122 = vrot.lane.b32.xlu1 %v9457_v47, %s7990_s16 }
0x240a   :  { %v4776_v13 = vpop.xlane.xlu0 %4775 }
0x240b   :  { %v4778_v46 = vsub.f32 %v4768_v39, %v4776_v13  ;;  %v4773_v52 = vpop.xlane.xlu1 %4772 }
0x240c   :  { %v4777_v21 = vsub.f32 %v4763_v19, %v4773_v52 }
0x240d   :  { %v4781_v5 = vmul.f32 1.442695, %v4778_v46 }
0x240e   :  { %v4779_v32 = vmul.f32 1.442695, %v4777_v21 }
0x240f   :  { %v7103_v23 = vpop.permute.xlu1 %7102 }
0x2410   :  { %7464 = vpow2.f32 %v4779_v32  ;;  %v7105_v57 = vunpack.i.h.bf16 %v7103_v23  ;;  %v7104_v9 = vunpack.i.l.bf16 %v7103_v23 }
0x2411   :  { %7466 = vpow2.f32 %v4781_v5 }
0x2412   :  { %v6913_v41 = vpack.c.bf16 %v7105_v57, %v7104_v9 }
0x2413   :  { %v7113_v4 = vpop.permute.xlu1 %7112 }
0x2414   :  { %6914 = vmatprep.subr.bf16.mxu0 %v6913_v41  ;;  %v7115_v21 = vunpack.i.h.bf16 %v7113_v4  ;;  %v7114_v5 = vunpack.i.l.bf16 %v7113_v4 }
0x2415   :  { %6916 = vmatpush3.bf16.msra.mxu0 %v6913_v41 }
0x2417   :  { %v7118_v29 = vpop.permute.xlu1 %7117 }
0x2418   :  { %v7120_v58 = vunpack.i.h.bf16 %v7118_v29  ;;  %v7119_v1 = vunpack.i.l.bf16 %v7118_v29 }
0x241a   :  { %v7465_v59 = vpop.eup %7464  ;;  %v9066_v48 = vsel %vm642_vm0, %v8979_v51, %v7120_v58  ;;  %v9070_v39 = vsel %vm642_vm0, %v8981_v7, %v7119_v1 }
0x241b   :  { %v4783_v19 = vsel %vm730_vm2, %v7465_v59, 0.0  ;;  %v7467_v27 = vpop.eup %7466  ;;  %v7123_v7 = vpop.permute.xlu1 %7122 }
0x241c   :  { %4784 = vadd.xlane.f32.xlu0 %v4783_v19  ;;  %v4786_v63 = vsel %vm730_vm2, %v7467_v27, 0.0  ;;  %v7125_v23 = vunpack.i.h.bf16 %v7123_v7  ;;  %v7124_v57 = vunpack.i.l.bf16 %v7123_v7 }
0x2420   :  { %4787 = vadd.xlane.f32.xlu0 %v4786_v63  ;;  %v7251_v63 = vld [vmem:[#allocation15 + $0x58] sm:$0xff]  }
0x2436   :  { %7107 = vrot.lane.b32.xlu0 %v9458_v28, %s7971_s10  ;;  %v7252_v28 = vld [vmem:[#allocation15 + $0x60] sm:$0xff]  }
0x243a   :  { %7127 = vrot.lane.b32.xlu0 %v7126_v33, %s7982_s26 }
0x24a9   :  { %v4785_v51 = vpop.xlane.xlu0 %4784 }
0x24aa   :  { %7468 = vrcp.f32 %v4785_v51  ;;  %v7254_v51 = vld [vmem:[#allocation15 + $0x70] sm:$0xff]  }
0x24ad   :  { %v4788_v47 = vpop.xlane.xlu0 %4787 }
0x24ae   :  { %7470 = vrcp.f32 %v4788_v47  ;;  %v7255_v47 = vld [vmem:[#allocation15 + $0x78] sm:$0xff]  }
0x24b1   :  { %v7108_v13 = vpop.permute.xlu0 %7107 }
0x24b2   :  { %v7110_v46 = vunpack.i.h.bf16 %v7108_v13  ;;  %v7109_v52 = vunpack.i.l.bf16 %v7108_v13 }
0x24b4   :  { %v7469_v32 = vpop.eup %7468  ;;  %v4083_v9 = vsel %vm642_vm0, %v8849_v30, %v7110_v46  ;;  %v4082_v38 = vsel %vm642_vm0, %v8851_v25, %v7109_v52  ;;  %v7248_v30 = vld [vmem:[#allocation15 + $0x40] sm:$0xff]   ;;  %v7249_v25 = vld [vmem:[#allocation15 + $0x48] sm:$0xff]  }
0x24b5   :  { %v9083_v2 = vmul.f32 %v7469_v32, %v7465_v59  ;;  %v4084_v33 = vsel %vm1462_vm3, %v4082_v38, %v7114_v5  ;;  %v4085_v41 = vsel %vm1462_vm3, %v4083_v9, %v7115_v21  ;;  %6717 = vmatprep.subr.bf16.mxu0 %v7248_v30  ;;  %v7250_v59 = vld [vmem:[#allocation15 + $0x50] sm:$0xff]   ;;  %v7128_v52 = vpop.permute.xlu0 %7127 }
0x24b6   :  { %v4086_v29 = vsel %vm1465_vm4, %v4084_v33, %v7124_v57  ;;  %v4087_v58 = vsel %vm1465_vm4, %v4085_v41, %v7125_v23  ;;  %v7130_v21 = vunpack.i.h.bf16 %v7128_v52  ;;  %v7129_v5 = vunpack.i.l.bf16 %v7128_v52  ;;  %v7259_v52 = vld [vmem:[#allocation21 + $0x90] ss:$8 sps:$4 sm:$0xff]  }
0x24b7   :  { %6714 = vmatprep.mubr.msk.f32.mxu0 %vm730_vm2, %v9083_v2  ;;  %v4910_v4 = vpack.c.bf16 %v4087_v58, %v4086_v29  ;;  %v6142_v58 = vld [vmem:[#allocation16 + $0x1] ss:$0 sm:$0xff] }
0x24b8   :  { %v7471_v1 = vpop.eup %7470  ;;  %v4906_v9 = vsel %vm1462_vm3, %v9070_v39, %v7129_v5  ;;  %v4907_v38 = vsel %vm1462_vm3, %v9066_v48, %v7130_v21 }
0x24b9   :  { %v9091_v19 = vmul.f32 %v7471_v1, %v7467_v27  ;;  %v7253_v27 = vld [vmem:[#allocation15 + $0x68] sm:$0xff]  }
0x24bb   :  { %6715 = vmatmul.mubr.msk.f32.vlgmr.msra.gmra.mrb[46].mxu0 %vm730_vm2, %v9091_v19 }
0x24bc   :  { %6733 = vmatprep.mubr.bf16.mxu0 %v4910_v4  ;;  %6718 = vmatpush3.bf16.msra.mxu0 %v7248_v30 }
0x24bd   :  { %6719 = vmatprep.subr.bf16.mxu0 %v7249_v25 }
0x24c0   :  { %6720 = vmatpush3.bf16.msra.mxu0 %v7249_v25 }
0x24c1   :  { %6721 = vmatprep.subr.bf16.mxu0 %v7250_v59 }
0x24c4   :  { %6722 = vmatpush3.bf16.msra.mxu0 %v7250_v59 }
0x24c5   :  { %6723 = vmatprep.subr.bf16.mxu0 %v7251_v63 }
0x24c8   :  { %6724 = vmatpush3.bf16.msra.mxu0 %v7251_v63 }
0x24c9   :  { %6725 = vmatprep.subr.bf16.mxu0 %v7252_v28 }
0x24cc   :  { %6726 = vmatpush3.bf16.msra.mxu0 %v7252_v28 }
0x24cd   :  { %6727 = vmatprep.subr.bf16.mxu0 %v7253_v27 }
0x24d0   :  { %6728 = vmatpush3.bf16.msra.mxu0 %v7253_v27 }
0x24d1   :  { %6729 = vmatprep.subr.bf16.mxu0 %v7254_v51 }
0x24d4   :  { %6730 = vmatpush3.bf16.msra.mxu0 %v7254_v51 }
0x24d5   :  { %6731 = vmatprep.subr.bf16.mxu0 %v7255_v47 }
0x24d8   :  { %6732 = vmatpush3.bf16.msra.mxu0 %v7255_v47 }
0x258e   :  { %v6716_v7 = vpop.f32.mrb[46].mxu0 }
0x258f   :  { %v4871_v13 = vpop.f32.mrb[47].mxu0 }
0x2590   :  { %v7131_v46 = vpack.i.bf16 %v6716_v7, %v4871_v13  ;;  %v7256_v7 = vld [vmem:[#allocation21 + $0x80] ss:$8 sps:$4 sm:$0xff]   ;;  %v7258_v13 = vld [vmem:[#allocation21 + $0x84] ss:$8 sps:$4 sm:$0xff]  }
0x2591   :  { %5218 = vmatprep.subr.bf16.mxu1 %v7258_v13 }
0x2592   :  { %7132 = vrot.lane.b32.xlu1 %v7131_v46, %s7990_s16  ;;  %v7261_v46 = vld [vmem:[#allocation21 + $0x94] ss:$8 sps:$4 sm:$0xff]   ;;  %5219 = vmatpush1.bf16.msra.mxu1 %v7256_v7  ;;  %v7277_v7 = vld [vmem:[#allocation21 + $0xf0] ss:$8 sps:$4 sm:$0xff]  }
0x2593   :  { %5220 = vmatprep.subr.bf16.mxu1 %v7261_v46 }
0x2596   :  { %5221 = vmatpush1.bf16.msra.mxu1 %v7259_v52 }
0x2604   :  { %v7133_v32 = vpop.permute.xlu1 %7132 }
0x2605   :  { %v7135_v23 = vunpack.i.h.bf16 %v7133_v32  ;;  %v7134_v57 = vunpack.i.l.bf16 %v7133_v32 }
0x2607   :  { %v4909_v33 = vsel %vm1465_vm4, %v4907_v38, %v7135_v23  ;;  %v4908_v41 = vsel %vm1465_vm4, %v4906_v9, %v7134_v57 }
0x2608   :  { %v4911_v29 = vpack.c.bf16 %v4909_v33, %v4908_v41 }
0x260a   :  { %6734 = vmatmul.mubr.bf16.vlgmr.msra.gmra.mrb[48].mxu0 %v4911_v29 }
0x26dd   :  { %v6735_v4 = vpop.f32.mrb[48].mxu0 }
0x26de   :  { %v5019_v1 = vpop.f32.mrb[49].mxu0  ;;  %v5028_v63 = vadd.f32 %v6735_v4, %v6142_v58 }
0x26df   :  { %v5020_v30 = vadd.f32 %v6142_v58, %v5019_v1  ;;  %v6736_v25 = vpop.f32.mrb[50].mxu0  ;;  %v7264_v1 = vld [vmem:[#allocation21 + $0xa4] ss:$8 sps:$4 sm:$0xff]  }
0x26e0   :  { %v5022_v59 = vpop.f32.mrb[51].mxu0  ;;  %v5036_v48 = vadd.f32 %v5028_v63, %v8767_v61  ;;  %v5031_v51 = vadd.f32 %v6736_v25, %v6142_v58  ;;  %5222 = vmatprep.subr.bf16.mxu1 %v7264_v1  ;;  %v7267_v25 = vld [vmem:[#allocation21 + $0xb4] ss:$8 sps:$4 sm:$0xff]   ;;  %v7270_v63 = vld [vmem:[#allocation21 + $0xc4] ss:$8 sps:$4 sm:$0xff]  }
0x26e1   :  { %v5034_v28 = vadd.f32 %v5020_v30, %v8760_v11  ;;  %v5023_v27 = vadd.f32 %v6142_v58, %v5022_v59  ;;  %v7262_v30 = vld [vmem:[#allocation21 + $0xa0] ss:$8 sps:$4 sm:$0xff]   ;;  %v7265_v59 = vld [vmem:[#allocation21 + $0xb0] ss:$8 sps:$4 sm:$0xff]  }
0x26e2   :  { %v5037_v47 = vadd.f32 %v5031_v51, %v8769_v62  ;;  %5223 = vmatpush1.bf16.msra.mxu1 %v7262_v30  ;;  %v7274_v51 = vld [vmem:[#allocation21 + $0xe0] ss:$8 sps:$4 sm:$0xff]  }
0x26e3   :  { %v5035_v39 = vadd.f32 %v5023_v27, %v8762_v50  ;;  %5042 = vadd.xlane.f32.xlu0 %v5034_v28  ;;  %5224 = vmatprep.subr.bf16.mxu1 %v7267_v25  ;;  %v7273_v27 = vld [vmem:[#allocation21 + $0xd4] ss:$8 sps:$4 sm:$0xff]  }
0x26e5   :  { %5044 = vadd.xlane.f32.xlu1 %v5035_v39 }
0x26e6   :  { %5225 = vmatpush1.bf16.msra.mxu1 %v7265_v59 }
0x26e7   :  { %5046 = vadd.xlane.f32.xlu0 %v5036_v48  ;;  %5226 = vmatprep.subr.bf16.mxu1 %v7270_v63  ;;  %v6152_v63 = vld [vmem:[#allocation19 + $0x1] ss:$0 sm:$0xff] }
0x26eb   :  { %5048 = vadd.xlane.f32.xlu0 %v5037_v47 }
0x2770   :  { %v5043_v11 = vpop.xlane.xlu0 %5042 }
0x2771   :  { %v5050_v21 = vmul.f32 0.0078125, %v5043_v11 }
0x2772   :  { %v5045_v50 = vpop.xlane.xlu1 %5044 }
0x2773   :  { %v5054_v5 = vsub.f32 %v5034_v28, %v5050_v21  ;;  %v5051_v32 = vmul.f32 0.0078125, %v5045_v50  ;;  %v7268_v28 = vld [vmem:[#allocation21 + $0xc0] ss:$8 sps:$4 sm:$0xff]  }
0x2774   :  { %v5047_v61 = vpop.xlane.xlu0 %5046  ;;  %5227 = vmatpush1.bf16.msra.mxu1 %v7268_v28 }
0x2775   :  { %v5055_v23 = vsub.f32 %v5035_v39, %v5051_v32  ;;  %v5052_v57 = vmul.f32 0.0078125, %v5047_v61  ;;  %v5058_v9 = vmul.f32 %v5054_v5, %v5054_v5  ;;  %v7271_v39 = vld [vmem:[#allocation21 + $0xd0] ss:$8 sps:$4 sm:$0xff]   ;;  %5228 = vmatprep.subr.bf16.mxu1 %v7273_v27 }
0x2777   :  { %v5056_v38 = vsub.f32 %v5036_v48, %v5052_v57  ;;  %5062 = vadd.xlane.f32.xlu0 %v5058_v9  ;;  %v5059_v62 = vmul.f32 %v5055_v23, %v5055_v23  ;;  %v7276_v48 = vld [vmem:[#allocation21 + $0xe4] ss:$8 sps:$4 sm:$0xff]  }
0x2778   :  { %v5049_v33 = vpop.xlane.xlu0 %5048  ;;  %5229 = vmatpush1.bf16.msra.mxu1 %v7271_v39 }
0x2779   :  { %v5053_v41 = vmul.f32 0.0078125, %v5049_v33  ;;  %5064 = vadd.xlane.f32.xlu1 %v5059_v62  ;;  %v5060_v29 = vmul.f32 %v5056_v38, %v5056_v38  ;;  %5230 = vmatprep.subr.bf16.mxu1 %v7276_v48 }
0x277b   :  { %v5057_v58 = vsub.f32 %v5037_v47, %v5053_v41  ;;  %5066 = vadd.xlane.f32.xlu0 %v5060_v29  ;;  %v7279_v47 = vld [vmem:[#allocation21 + $0xf4] ss:$8 sps:$4 sm:$0xff]  }
0x277c   :  { %5231 = vmatpush1.bf16.msra.mxu1 %v7274_v51  ;;  %v6151_v29 = vld [vmem:[#allocation18 + $0x1] ss:$0 sm:$0xff] }
0x277d   :  { %v5061_v4 = vmul.f32 %v5057_v58, %v5057_v58  ;;  %5232 = vmatprep.subr.bf16.mxu1 %v7279_v47 }
0x277f   :  { %5068 = vadd.xlane.f32.xlu1 %v5061_v4 }
0x2780   :  { %5233 = vmatpush1.bf16.msra.mxu1 %v7277_v7 }
0x2804   :  { %v5063_v13 = vpop.xlane.xlu0 %5062 }
0x2805   :  { %v5070_v46 = vmul.f32 0.0078125, %v5063_v13 }
0x2806   :  { %v5065_v52 = vpop.xlane.xlu1 %5064 }
0x2807   :  { %v5074_v11 = vadd.f32 1e-12, %v5070_v46  ;;  %v5071_v21 = vmul.f32 0.0078125, %v5065_v52 }
0x2808   :  { %v5067_v50 = vpop.xlane.xlu0 %5066 }
0x2809   :  { %7472 = vrsqrt.f32 %v5074_v11  ;;  %v5075_v32 = vadd.f32 1e-12, %v5071_v21  ;;  %v5072_v61 = vmul.f32 0.0078125, %v5067_v50  ;;  %v7280_v11 = vld [vmem:[#allocation24 + $0xc0] sm:$0xff]   ;;  %v7282_v21 = vld [vmem:[#allocation24 + $0xc8] sm:$0xff]  }
0x280a   :  { %6396 = vmatprep.subr.bf16.mxu0 %v7280_v11  ;;  %v7283_v50 = vld [vmem:[#allocation24 + $0x88] sm:$0xff]  }
0x280b   :  { %7474 = vrsqrt.f32 %v5075_v32  ;;  %v5076_v57 = vadd.f32 1e-12, %v5072_v61  ;;  %v7285_v32 = vld [vmem:[#allocation24 + $0x90] sm:$0xff]   ;;  %v7287_v61 = vld [vmem:[#allocation24 + $0x98] sm:$0xff]  }
0x280c   :  { %v5069_v9 = vpop.xlane.xlu1 %5068 }
0x280d   :  { %7476 = vrsqrt.f32 %v5076_v57  ;;  %v5073_v62 = vmul.f32 0.0078125, %v5069_v9  ;;  %v7288_v57 = vld [vmem:[#allocation24 + $0xe0] sm:$0xff]  }
0x280e   :  { %v7289_v9 = vld [vmem:[#allocation24 + $0xa0] sm:$0xff]  }
0x280f   :  { %v5077_v33 = vadd.f32 1e-12, %v5073_v62  ;;  %v7290_v62 = vld [vmem:[#allocation24 + $0xe8] sm:$0xff]  }
0x2811   :  { %7478 = vrsqrt.f32 %v5077_v33  ;;  %v7291_v33 = vld [vmem:[#allocation24 + $0xa8] sm:$0xff]  }
0x2813   :  { %v7473_v41 = vpop.eup %7472 }
0x2814   :  { %v5082_v4 = vmul.f32 %v7473_v41, %v5054_v5  ;;  %v7292_v41 = vld [vmem:[#allocation24 + $0xf0] sm:$0xff]  }
0x2815   :  { %v7475_v1 = vpop.eup %7474 }
0x2816   :  { %v5083_v30 = vmul.f32 %v7475_v1, %v5055_v23  ;;  %v5092_v25 = vmul.f32 %v6151_v29, %v5082_v4  ;;  %v7294_v4 = vld [vmem:[#allocation24 + $0xf8] sm:$0xff]  }
0x2817   :  { %v7477_v59 = vpop.eup %7476  ;;  %v7295_v1 = vld [vmem:[#allocation24 + $0xb8] sm:$0xff]  }
0x2818   :  { %v5093_v28 = vmul.f32 %v6151_v29, %v5083_v30  ;;  %v9106_v27 = vadd.f32 %v6152_v63, %v5092_v25  ;;  %v5084_v48 = vmul.f32 %v7477_v59, %v5056_v38  ;;  %v7281_v38 = vld [vmem:[#allocation24 + $0x80] sm:$0xff]   ;;  %v5126_v30 = vld [vmem:[#allocation22 + $0x2] sm:$0x3] }
0x2819   :  { %6397 = vmatpush3.bf16.msra.mxu0 %v7281_v38  ;;  %v5131_v25 = vrot.slane %v5126_v30, %v8386_v15  ;;  %v5135_v59 = vrot.slane %v5126_v30, %v8389_v17 }
0x281a   :  { %v9108_v39 = vadd.f32 %v6152_v63, %v5093_v28  ;;  %v5094_v13 = vmul.f32 %v6151_v29, %v5084_v48  ;;  %6398 = vmatprep.subr.bf16.mxu0 %v7282_v21 }
0x281b   :  { %v7479_v51 = vpop.eup %7478 }
0x281c   :  { %v5106_v47 = vpack.c.bf16 %v9108_v39, %v9106_v27  ;;  %v5085_v7 = vmul.f32 %v7479_v51, %v5057_v58  ;;  %v9115_v23 = vadd.f32 %v6152_v63, %v5094_v13  ;;  %v7284_v58 = vld [vmem:[#allocation24 + $0xd0] sm:$0xff]  }
0x281d   :  { %6399 = vmatpush3.bf16.msra.mxu0 %v7283_v50 }
0x281e   :  { %5251 = vmatmul.mubr.bf16.vlgmr.msra.gmra.mrb[60].mxu1 %v5106_v47  ;;  %v5095_v46 = vmul.f32 %v6151_v29, %v5085_v7  ;;  %6400 = vmatprep.subr.bf16.mxu0 %v7284_v58  ;;  %v7293_v29 = vld [vmem:[#allocation24 + $0xb0] sm:$0xff]  }
0x281f   :  { %5260 = vmatprep.mubr.bf16.mxu1 %v9454_v42  ;;  %v7286_v42 = vld [vmem:[#allocation24 + $0xd8] sm:$0xff]  }
0x2820   :  { %v9113_v5 = vadd.f32 %v6152_v63, %v5095_v46 }
0x2821   :  { %6401 = vmatpush3.bf16.msra.mxu0 %v7285_v32 }
0x2822   :  { %v5107_v52 = vpack.c.bf16 %v9113_v5, %v9115_v23  ;;  %6402 = vmatprep.subr.bf16.mxu0 %v7286_v42 }
0x2825   :  { %6403 = vmatpush3.bf16.msra.mxu0 %v7287_v61 }
0x2826   :  { %5261 = vmatmul.mubr.bf16.gmra.mrb[64].mxu1 %v5107_v52  ;;  %6404 = vmatprep.subr.bf16.mxu0 %v7288_v57 }
0x2829   :  { %6405 = vmatpush3.bf16.msra.mxu0 %v7289_v9 }
0x282a   :  { %6406 = vmatprep.subr.bf16.mxu0 %v7290_v62 }
0x282d   :  { %6407 = vmatpush3.bf16.msra.mxu0 %v7291_v33 }
0x282e   :  { %6408 = vmatprep.subr.bf16.mxu0 %v7292_v41 }
0x2831   :  { %6409 = vmatpush3.bf16.msra.mxu0 %v7293_v29 }
0x2832   :  { %6410 = vmatprep.subr.bf16.mxu0 %v7294_v4 }
0x2835   :  { %6411 = vmatpush3.bf16.msra.mxu0 %v7295_v1 }
0x28f1   :  { %v5252_v63 = vpop.f32.mrb[60].mxu1 }
0x28f2   :  { %v9121_v28 = vadd.f32 %v5252_v63, %v5131_v25  ;;  %v5254_v48 = vpop.f32.mrb[61].mxu1 }
0x28f3   :  { %v9123_v51 = vadd.f32 %v5254_v48, %v5135_v59  ;;  %v5256_v47 = vpop.f32.mrb[62].mxu1 }
0x28f4   :  { %v5271_v7 = vmul.f32 %v9121_v28, %v9121_v28  ;;  %v9127_v13 = vadd.f32 %v5256_v47, %v5131_v25  ;;  %v5258_v46 = vpop.f32.mrb[63].mxu1 }
0x28f5   :  { %v5272_v52 = vmul.f32 %v9123_v51, %v9123_v51  ;;  %v9131_v11 = vadd.f32 %v5258_v46, %v5135_v59 }
0x28f6   :  { %v5279_v15 = vmul.f32 %v5271_v7, %v9121_v28  ;;  %v5273_v17 = vmul.f32 %v9127_v13, %v9127_v13 }
0x28f7   :  { %v5280_v38 = vmul.f32 %v5272_v52, %v9123_v51  ;;  %v5274_v21 = vmul.f32 %v9131_v11, %v9131_v11 }
0x28f8   :  { %v5287_v50 = vmul.f32 0.044715, %v5279_v15  ;;  %v5281_v58 = vmul.f32 %v5273_v17, %v9127_v13 }
0x28f9   :  { %v5288_v32 = vmul.f32 0.044715, %v5280_v38  ;;  %v5282_v42 = vmul.f32 %v5274_v21, %v9131_v11  ;;  %v5262_v61 = vpop.f32.mrb[64].mxu1 }
0x28fa   :  { %v5295_v57 = vadd.f32 %v5287_v50, %v9121_v28  ;;  %v5289_v9 = vmul.f32 0.044715, %v5281_v58  ;;  %v9142_v62 = vadd.f32 %v5262_v61, %v5131_v25  ;;  %v5264_v33 = vpop.f32.mrb[65].mxu1 }
0x28fb   :  { %v5296_v41 = vadd.f32 %v5288_v32, %v9123_v51  ;;  %v5290_v29 = vmul.f32 0.044715, %v5282_v42  ;;  %v9145_v4 = vadd.f32 %v5264_v33, %v5135_v59  ;;  %v5266_v1 = vpop.f32.mrb[66].mxu1 }
0x28fc   :  { %v5303_v30 = vmul.f32 0.7978846, %v5295_v57  ;;  %v5297_v63 = vadd.f32 %v5289_v9, %v9127_v13  ;;  %v5275_v48 = vmul.f32 %v9142_v62, %v9142_v62  ;;  %v9150_v47 = vadd.f32 %v5266_v1, %v5131_v25  ;;  %v5268_v7 = vpop.f32.mrb[67].mxu1 }
0x28fd   :  { %v5304_v46 = vmul.f32 0.7978846, %v5296_v41  ;;  %v5298_v52 = vadd.f32 %v5290_v29, %v9131_v11  ;;  %v5276_v15 = vmul.f32 %v9145_v4, %v9145_v4  ;;  %v9155_v17 = vadd.f32 %v5268_v7, %v5135_v59 }
0x28fe   :  { %7480 = vtanh.f32 %v5303_v30  ;;  %v5305_v38 = vmul.f32 0.7978846, %v5297_v63  ;;  %v5283_v21 = vmul.f32 %v5275_v48, %v9142_v62  ;;  %v5277_v50 = vmul.f32 %v9150_v47, %v9150_v47 }
0x28ff   :  { %7482 = vtanh.f32 %v5304_v46  ;;  %v5306_v58 = vmul.f32 0.7978846, %v5298_v52  ;;  %v5284_v25 = vmul.f32 %v5276_v15, %v9145_v4  ;;  %v5278_v32 = vmul.f32 %v9155_v17, %v9155_v17 }
0x2900   :  { %7484 = vtanh.f32 %v5305_v38  ;;  %v5291_v42 = vmul.f32 0.044715, %v5283_v21  ;;  %v5285_v61 = vmul.f32 %v5277_v50, %v9150_v47 }
0x2901   :  { %7486 = vtanh.f32 %v5306_v58  ;;  %v5292_v59 = vmul.f32 0.044715, %v5284_v25  ;;  %v5286_v57 = vmul.f32 %v5278_v32, %v9155_v17 }
0x2902   :  { %v5299_v9 = vadd.f32 %v5291_v42, %v9142_v62  ;;  %v5293_v33 = vmul.f32 0.044715, %v5285_v61 }
0x2903   :  { %v5300_v41 = vadd.f32 %v5292_v59, %v9145_v4  ;;  %v5294_v29 = vmul.f32 0.044715, %v5286_v57 }
0x2904   :  { %v5307_v1 = vmul.f32 0.7978846, %v5299_v9  ;;  %v5301_v30 = vadd.f32 %v5293_v33, %v9150_v47 }
0x2905   :  { %v5308_v63 = vmul.f32 0.7978846, %v5300_v41  ;;  %v5302_v48 = vadd.f32 %v5294_v29, %v9155_v17 }
0x2906   :  { %7488 = vtanh.f32 %v5307_v1  ;;  %v5309_v7 = vmul.f32 0.7978846, %v5301_v30 }
0x2907   :  { %7490 = vtanh.f32 %v5308_v63  ;;  %v5310_v46 = vmul.f32 0.7978846, %v5302_v48 }
0x2908   :  { %v7481_v52 = vpop.eup %7480  ;;  %7492 = vtanh.f32 %v5309_v7 }
0x2909   :  { %v7483_v15 = vpop.eup %7482  ;;  %v5319_v38 = vadd.f32 1.0, %v7481_v52  ;;  %7494 = vtanh.f32 %v5310_v46 }
0x290a   :  { %v7485_v21 = vpop.eup %7484  ;;  %v5320_v50 = vadd.f32 1.0, %v7483_v15 }
0x290b   :  { %v7487_v58 = vpop.eup %7486  ;;  %v5327_v25 = vmul.f32 0.5, %v5319_v38  ;;  %v5321_v32 = vadd.f32 1.0, %v7485_v21 }
0x290c   :  { %v5322_v42 = vadd.f32 1.0, %v7487_v58  ;;  %v5328_v61 = vmul.f32 0.5, %v5320_v50 }
0x290d   :  { %v5329_v59 = vmul.f32 0.5, %v5321_v32  ;;  %v5335_v9 = vmul.f32 %v5327_v25, %v9121_v28 }
0x290e   :  { %v5330_v57 = vmul.f32 0.5, %v5322_v42  ;;  %v5336_v29 = vmul.f32 %v5328_v61, %v9123_v51 }
0x290f   :  { %v5337_v33 = vmul.f32 %v5329_v59, %v9127_v13 }
0x2910   :  { %v7489_v41 = vpop.eup %7488  ;;  %v5338_v1 = vmul.f32 %v5330_v57, %v9131_v11  ;;  %v6169_v57 = vld [vmem:[#allocation25 + $0x1] ss:$0 sm:$0xff] }
0x2911   :  { %v7491_v30 = vpop.eup %7490  ;;  %v5343_v63 = vpack.c.bf16 %v5337_v33, %v5335_v9  ;;  %v5323_v48 = vadd.f32 1.0, %v7489_v41 }
0x2912   :  { %v7493_v7 = vpop.eup %7492  ;;  %v5344_v46 = vpack.c.bf16 %v5338_v1, %v5336_v29  ;;  %v5324_v52 = vadd.f32 1.0, %v7491_v30 }
0x2913   :  { %v7495_v15 = vpop.eup %7494  ;;  %v5325_v38 = vadd.f32 1.0, %v7493_v7  ;;  %v5331_v21 = vmul.f32 0.5, %v5323_v48 }
0x2914   :  { %5516 = vmatprep.mubr.bf16.mxu0 %v5344_v46  ;;  %v5326_v50 = vadd.f32 1.0, %v7495_v15  ;;  %v5332_v58 = vmul.f32 0.5, %v5324_v52 }
0x2915   :  { %5517 = vmatmul.mubr.bf16.vlgmr.msra.gmra.mrb[52].mxu0 %v5343_v63  ;;  %v5333_v28 = vmul.f32 0.5, %v5325_v38  ;;  %v5339_v25 = vmul.f32 %v5331_v21, %v9142_v62 }
0x2916   :  { %v5334_v13 = vmul.f32 0.5, %v5326_v50  ;;  %v5340_v11 = vmul.f32 %v5332_v58, %v9145_v4 }
0x2917   :  { %v5341_v51 = vmul.f32 %v5333_v28, %v9150_v47 }
0x2918   :  { %v5342_v32 = vmul.f32 %v5334_v13, %v9155_v17 }
0x2919   :  { %v5345_v42 = vpack.c.bf16 %v5341_v51, %v5339_v25 }
0x291a   :  { %v5346_v61 = vpack.c.bf16 %v5342_v32, %v5340_v11  ;;  %v7296_v32 = vld [vmem:[%s9415_s17] sm:$0xff]  }
0x291c   :  { %5524 = vmatprep.mubr.bf16.mxu0 %v5346_v61  ;;  %v7299_v61 = vld [vmem:[%s9415_s17 + $0x18] sm:$0xff]  }
0x291d   :  { %5525 = vmatmul.mubr.bf16.gmra.mrb[56].mxu0 %v5345_v42  ;;  %v7991_v42 = vmov 0.0  }
0x291e   :  { %6737 = vmatprep.subr.bf16.mxu1 %v7991_v42  ;;  %6753 = vmatprep.mubr.msk.bf16.mxu1 %vm7993_vm5, %v7991_v42 }
0x291f   :  { %6738 = vmatpush3.bf16.msra.mxu1 %v7296_v32 }
0x2920   :  { %6739 = vmatprep.subr.bf16.mxu1 %v7991_v42 }
0x29e8   :  { %v6412_v59 = vpop.f32.mrb[52].mxu0 }
0x29e9   :  { %v6413_v9 = vpop.f32.mrb[53].mxu0 }
0x29ea   :  { %v6414_v33 = vadd.f32 %v6413_v9, %v6412_v59  ;;  %v6415_v41 = vpop.f32.mrb[54].mxu0 }
0x29eb   :  { %v6416_v29 = vpop.f32.mrb[55].mxu0 }
0x29ec   :  { %v5519_v1 = vadd.f32 %v6414_v33, %v6169_v57  ;;  %v6417_v30 = vadd.f32 %v6416_v29, %v6415_v41  ;;  %v9252_v29 = vld [vmem:[#allocation27 + $0x1] ss:$0 sm:$0xff] }
0x29ee   :  { %v5522_v63 = vadd.f32 %v6417_v30, %v6169_v57  ;;  %v5533_v62 = vadd.f32 %v5519_v1, %v9106_v27 }
0x29f0   :  { %5541 = vadd.xlane.f32.xlu1 %v5533_v62  ;;  %v6418_v47 = vpop.f32.mrb[56].mxu0 }
0x29f1   :  { %v6419_v4 = vpop.f32.mrb[57].mxu0 }
0x29f2   :  { %v6420_v48 = vadd.f32 %v6419_v4, %v6418_v47  ;;  %v6421_v17 = vpop.f32.mrb[58].mxu0  ;;  %v9261_v47 = vld [vmem:[#allocation28 + $0x1] ss:$0 sm:$0xff] }
0x29f3   :  { %v6422_v7 = vpop.f32.mrb[59].mxu0 }
0x29f4   :  { %v5527_v46 = vadd.f32 %v6420_v48, %v6169_v57  ;;  %v6423_v52 = vadd.f32 %v6422_v7, %v6421_v17 }
0x29f6   :  { %v5530_v15 = vadd.f32 %v6423_v52, %v6169_v57  ;;  %v5535_v38 = vadd.f32 %v5527_v46, %v9115_v23  ;;  %v9189_v23 = vadd.f32 %v5522_v63, %v9108_v39  ;;  %v7298_v39 = vld [vmem:[%s9415_s17 + $0x10] sm:$0xff]  }
0x29f8   :  { %5545 = vadd.xlane.f32.xlu0 %v5535_v38  ;;  %v5536_v25 = vadd.f32 %v5530_v15, %v9113_v5  ;;  %v7297_v5 = vld [vmem:[%s9415_s17 + $0x8] sm:$0xff]  }
0x29f9   :  { %6740 = vmatpush3.bf16.msra.mxu1 %v7297_v5 }
0x29fa   :  { %6741 = vmatprep.subr.bf16.mxu1 %v7991_v42 }
0x29fd   :  { %6742 = vmatpush3.bf16.msra.mxu1 %v7298_v39 }
0x29fe   :  { %6743 = vmatprep.subr.bf16.mxu1 %v7991_v42 }
0x2a01   :  { %6744 = vmatpush3.bf16.msra.mxu1 %v7299_v61 }
0x2a02   :  { %6745 = vmatprep.subr.bf16.mxu1 %v7991_v42 }
0x2a7d   :  { %v5542_v21 = vpop.xlane.xlu1 %5541 }
0x2a7e   :  { %v5549_v50 = vmul.f32 0.0078125, %v5542_v21  ;;  %v5825_v21 = vstv %s9259_s7 }
0x2a7f   :  { %vm5826_vm7 = vcmp.lt.s32.totalorder %v8383_v14, %v5825_v21 }
0x2a80   :  { %v9179_v58 = vsub.f32 %v5533_v62, %v5549_v50 }
0x2a82   :  { %v5557_v28 = vmul.f32 %v9179_v58, %v9179_v58 }
0x2a84   :  { %5561 = vadd.xlane.f32.xlu1 %v5557_v28 }
0x2a85   :  { %v5546_v27 = vpop.xlane.xlu0 %5545 }
0x2a86   :  { %v5551_v13 = vmul.f32 0.0078125, %v5546_v27 }
0x2a88   :  { %v9184_v51 = vsub.f32 %v5535_v38, %v5551_v13  ;;  %5547 = vadd.xlane.f32.xlu1 %v5536_v25 }
0x2a8a   :  { %v5559_v11 = vmul.f32 %v9184_v51, %v9184_v51 }
0x2a8c   :  { %5565 = vadd.xlane.f32.xlu0 %v5559_v11 }
0x2a90   :  { %5543 = vadd.xlane.f32.xlu0 %v9189_v23 }
0x2a99   :  { %5764 = vrot.lane.b32.xlu1 %v8512_v49, %s7962_s28  ;;  %v7300_v49 = vld [vmem:[%s9415_s17 + $0x20] sm:$0xff]  }
0x2a9a   :  { %6746 = vmatpush3.bf16.msra.mxu1 %v7300_v49 }
0x2a9b   :  { %6747 = vmatprep.subr.bf16.mxu1 %v7991_v42 }
0x2a9d   :  { %5768 = vrot.lane.b32.xlu1 %v8516_v54, %s7971_s10  ;;  %v7301_v54 = vld [vmem:[%s9415_s17 + $0x28] sm:$0xff]  }
0x2a9e   :  { %6748 = vmatpush3.bf16.msra.mxu1 %v7301_v54 }
0x2a9f   :  { %6749 = vmatprep.subr.bf16.mxu1 %v7991_v42 }
0x2aa1   :  { %5770 = vrot.lane.b32.xlu1 %v8522_v55, %s7971_s10  ;;  %v7302_v55 = vld [vmem:[%s9415_s17 + $0x30] sm:$0xff]  }
0x2aa2   :  { %6750 = vmatpush3.bf16.msra.mxu1 %v7302_v55 }
0x2aa3   :  { %6751 = vmatprep.subr.bf16.mxu1 %v7991_v42 }
0x2aa5   :  { %5776 = vrot.lane.b32.xlu1 %v8573_v6, %s7966_s15  ;;  %v7303_v6 = vld [vmem:[%s9415_s17 + $0x38] sm:$0xff]   ;;  %s9246_s17 = sld [smem:[#allocation3]] }
0x2aa6   :  { %6752 = vmatpush3.bf16.msra.mxu1 %v7303_v6 }
0x2aa9   :  { %5782 = vrot.lane.b32.xlu1 %v8838_v56, %s7982_s26 }
0x2aab   :  { %v5755_v62 = vstv %s9246_s17 }
0x2aac   :  { %vm5756_vm6 = vcmp.lt.s32.totalorder %v8383_v14, %v5755_v62 }
0x2aad   :  { %5788 = vrot.lane.b32.xlu1 %v8879_v45, %s7992_s22 }
0x2ab1   :  { %5794 = vrot.lane.b32.xlu1 %v8887_v34, %s7990_s16 }
0x2ab5   :  { %5800 = vrot.lane.b32.xlu1 %v8936_v12, %s7994_s1 }
0x2ab9   :  { %5835 = vrot.lane.b32.xlu1 %v8622_v43, %s7962_s28 }
0x2abd   :  { %5841 = vrot.lane.b32.xlu1 %v8656_v16, %s7971_s10 }
0x2ac1   :  { %5847 = vrot.lane.b32.xlu1 %v8706_v8, %s7966_s15 }
0x2ac5   :  { %5853 = vrot.lane.b32.xlu1 %v8971_v44, %s7982_s26 }
0x2ac9   :  { %5859 = vrot.lane.b32.xlu1 %v9001_v0, %s7992_s22 }
0x2acd   :  { %5865 = vrot.lane.b32.xlu1 %v9035_v36, %s7990_s16 }
0x2b11   :  { %v5562_v56 = vpop.xlane.xlu1 %5561 }
0x2b12   :  { %v5569_v45 = vmul.f32 0.0078125, %v5562_v56 }
0x2b14   :  { %v5573_v34 = vadd.f32 1e-12, %v5569_v45 }
0x2b15   :  { %v5548_v12 = vpop.xlane.xlu1 %5547 }
0x2b16   :  { %7496 = vrsqrt.f32 %v5573_v34  ;;  %v5552_v43 = vmul.f32 0.0078125, %v5548_v12 }
0x2b18   :  { %v9244_v59 = vsub.f32 %v5536_v25, %v5552_v43 }
0x2b19   :  { %v5765_v16 = vpop.permute.xlu1 %5764  ;;  %v5566_v57 = vpop.xlane.xlu0 %5565 }
0x2b1a   :  { %v5571_v8 = vmul.f32 0.0078125, %v5566_v57  ;;  %v5560_v44 = vmul.f32 %v9244_v59, %v9244_v59  ;;  %v5805_v25 = vsel %vm730_vm2, %v8502_v24, %v5765_v16  ;;  %v5752_v57 = vadd.s32 8, %v8383_v14 }
0x2b1c   :  { %v5575_v0 = vadd.f32 1e-12, %v5571_v8  ;;  %5567 = vadd.xlane.f32.xlu1 %v5560_v44  ;;  %vm5827_vm12 = vcmp.lt.s32.totalorder %v5752_v57, %v5825_v21  ;;  %vm5757_vm13 = vcmp.lt.s32.totalorder %v5752_v57, %v5755_v62 }
0x2b1d   :  { %v9250_v36 = vpop.permute.xlu1 %5768  ;;  %v5544_v9 = vpop.xlane.xlu0 %5543 }
0x2b1e   :  { %7498 = vrsqrt.f32 %v5575_v0  ;;  %v5550_v33 = vmul.f32 0.0078125, %v5544_v9 }
0x2b20   :  { %v7497_v41 = vpop.eup %7496  ;;  %v9255_v1 = vsub.f32 %v9189_v23, %v5550_v33 }
0x2b21   :  { %v5581_v30 = vmul.f32 %v7497_v41, %v9179_v58  ;;  %v5771_v63 = vpop.permute.xlu1 %5770 }
0x2b22   :  { %v5558_v4 = vmul.f32 %v9255_v1, %v9255_v1 }
0x2b23   :  { %v5591_v48 = vmul.f32 %v9252_v29, %v5581_v30 }
0x2b24   :  { %5563 = vadd.xlane.f32.xlu0 %v5558_v4 }
0x2b25   :  { %v5601_v17 = vadd.f32 %v9261_v47, %v5591_v48  ;;  %v5777_v7 = vpop.permute.xlu1 %5776  ;;  %v9460_v48 = vld [vmem:[#allocation46_spill] sm:$0xff] }
0x2b27   :  { %v5758_v46 = vsel %vm5756_vm6, %v5601_v17, 0.0 }
0x2b28   :  { %v7499_v52 = vpop.eup %7498  ;;  %5760 = vst [vmem:[#allocation30] sm:$0xff] %v5758_v46 }
0x2b29   :  { %v5583_v15 = vmul.f32 %v7499_v52, %v9184_v51  ;;  %v5783_v38 = vpop.permute.xlu1 %5782  ;;  %v5807_v51 = vsel %vm642_vm0, %v5805_v25, %v5771_v63 }
0x2b2a   :  { %v5810_v32 = vsel %vm5808_vm9, %v5807_v51, %v5777_v7 }
0x2b2b   :  { %v5593_v50 = vmul.f32 %v9252_v29, %v5583_v15  ;;  %v5812_v5 = vsel %vm1462_vm3, %v5810_v32, %v5783_v38 }
0x2b2d   :  { %v5603_v58 = vadd.f32 %v9261_v47, %v5593_v50  ;;  %5871 = vrot.lane.b32.xlu1 %v9091_v19, %s7994_s1  ;;  %v5789_v28 = vpop.permute.xlu1 %5788 }
0x2b2e   :  { %v5815_v19 = vsel %vm5813_vm10, %v5812_v5, %v5789_v28 }
0x2b2f   :  { %v5606_v27 = vrot.slane %v5603_v58, 7  ;;  %v5828_v13 = vsel %vm5826_vm7, %v5603_v58, 0.0 }
0x2b30   :  { %5831 = vst [vmem:[#allocation30 + $0x10] sm:$0xff] %v5828_v13 }
0x2b31   :  { %v5795_v11 = vpop.permute.xlu1 %5794  ;;  %v5609_v23 = vsel %vm5608_vm8, %v5601_v17, %v5606_v27 }
0x2b32   :  { %v5610_v42 = vpack.c.bf16 %v5609_v23, %v5609_v23  ;;  %v5817_v39 = vsel %vm1465_vm4, %v5815_v19, %v5795_v11 }
0x2b34   :  { %6754 = vmatmul.mubr.bf16.vlgmr.msra.gmra.mrb[68].mxu1 %v5610_v42 }
0x2b35   :  { %v5801_v61 = vpop.permute.xlu1 %5800 }
0x2b36   :  { %v5820_v24 = vsel %vm5818_vm11, %v5817_v39, %v5801_v61 }
0x2b37   :  { %5822 = vst [vmem:[#allocation31 + $0x8] sm:$0xff] %v5820_v24 }
0x2b3a   :  { %5762 = vrot.lane.b32.xlu0 %v8508_v31, %s7962_s28  ;;  %v5836_v31 = vpop.permute.xlu1 %5835 }
0x2b3e   :  { %5774 = vrot.lane.b32.xlu0 %v8571_v26, %s7966_s15  ;;  %v5842_v26 = vpop.permute.xlu1 %5841 }
0x2b42   :  { %5780 = vrot.lane.b32.xlu0 %v8834_v20, %s7982_s26 }
0x2b46   :  { %5786 = vrot.lane.b32.xlu0 %v8875_v60, %s7992_s22 }
0x2b4a   :  { %5792 = vrot.lane.b32.xlu0 %v8881_v53, %s7990_s16  ;;  %v9459_v53 = vld [vmem:[#allocation48_spill] sm:$0xff] }
0x2b4e   :  { %5798 = vrot.lane.b32.xlu0 %v8932_v18, %s7994_s1 }
0x2b52   :  { %5833 = vrot.lane.b32.xlu0 %v8620_v40, %s7962_s28  ;;  %v5848_v40 = vpop.permute.xlu1 %5847 }
0x2b56   :  { %5839 = vrot.lane.b32.xlu0 %v8654_v3, %s7971_s10  ;;  %v5854_v20 = vpop.permute.xlu1 %5853 }
0x2b5a   :  { %5845 = vrot.lane.b32.xlu0 %v8698_v22, %s7966_s15  ;;  %v5860_v3 = vpop.permute.xlu1 %5859  ;;  %v5876_v22 = vsel %vm730_vm2, %v9459_v53, %v5836_v31  ;;  %s7995_s15 = smov [#allocation30]  }
0x2b5b   :  { %v5878_v18 = vsel %vm642_vm0, %v5876_v22, %v5842_v26  ;;  %s5897_s10 = sshll.u32 %s7995_s15, 4  ;;  %s5898_s10 = int_to_ptr.vmem [resolvable:$true] %s5897_s10 }
0x2b5c   :  { %p7875_p6 = scmp.lt.s32.totalorder %s5898_s10, %s5898_s10 }
0x2b5e   :  { %5851 = vrot.lane.b32.xlu0 %v8967_v10, %s7982_s26  ;;  %v5866_v60 = vpop.permute.xlu1 %5865  ;;  %s7870_s26 = scalar_lea.vmem %s5898_s10, 512 }
0x2b5f   :  { %p7871_p5 = scmp.ne.s32.totalorder %s5898_s10, %s7870_s26  ;;  %p7876_p7 = scmp.lt.s32.totalorder %s7870_s26, %s7870_s26 }
0x2b61   :  { %p7877_p8 = por %p7876_p7, %p7875_p6 }
0x2b62   :  { %5857 = vrot.lane.b32.xlu0 %v8999_v35, %s7992_s22  ;;  %v5880_v35 = vsel %vm5808_vm9, %v5878_v18, %v5848_v40 }
0x2b63   :  { %p7878_p9 = pnand %p7877_p8, %p7871_p5 }
0x2b66   :  { %5863 = vrot.lane.b32.xlu0 %v9033_v37, %s7990_s16  ;;  %v5882_v37 = vsel %vm1462_vm3, %v5880_v35, %v5854_v20 }
0x2b67   :  { %v5884_v54 = vsel %vm5813_vm10, %v5882_v37, %v5860_v3 }
0x2b68   :  { %v5886_v55 = vsel %vm1465_vm4, %v5884_v54, %v5866_v60 }
0x2b6a   :  { %5869 = vrot.lane.b32.xlu0 %v9083_v2, %s7994_s1 }
0x2ba9   :  { %v5568_v10 = vpop.xlane.xlu1 %5567 }
0x2baa   :  { %v5572_v49 = vmul.f32 0.0078125, %v5568_v10 }
0x2bac   :  { %v5576_v2 = vadd.f32 1e-12, %v5572_v49 }
0x2bad   :  { %v5872_v6 = vpop.permute.xlu1 %5871 }
0x2bae   :  { %7500 = vrsqrt.f32 %v5576_v2  ;;  %v5888_v56 = vsel %vm5818_vm11, %v5886_v55, %v5872_v6 }
0x2baf   :  { %5891 = vst [vmem:[#allocation31 + $0x18] sm:$0xff] %v5888_v56 }
0x2bb1   :  { %v5564_v45 = vpop.xlane.xlu0 %5563 }
0x2bb2   :  { %v5570_v34 = vmul.f32 0.0078125, %v5564_v45 }
0x2bb4   :  { %v5574_v12 = vadd.f32 1e-12, %v5570_v34 }
0x2bb5   :  { %v5763_v43 = vpop.permute.xlu0 %5762 }
0x2bb6   :  { %7502 = vrsqrt.f32 %v5574_v12  ;;  %v5804_v17 = vsel %vm730_vm2, %v9460_v48, %v5763_v43 }
0x2bb8   :  { %v7501_v16 = vpop.eup %7500 }
0x2bb9   :  { %v5584_v8 = vmul.f32 %v7501_v16, %v9244_v59  ;;  %v5775_v44 = vpop.permute.xlu0 %5774  ;;  %v5806_v59 = vsel %vm642_vm0, %v5804_v17, %v9250_v36 }
0x2bba   :  { %v5809_v15 = vsel %vm5808_vm9, %v5806_v59, %v5775_v44 }
0x2bbb   :  { %v5594_v0 = vmul.f32 %v9252_v29, %v5584_v8 }
0x2bbd   :  { %v5781_v9 = vpop.permute.xlu0 %5780  ;;  %v5604_v33 = vadd.f32 %v9261_v47, %v5594_v0 }
0x2bbf   :  { %v5829_v41 = vsel %vm5827_vm12, %v5604_v33, 0.0 }
0x2bc0   :  { %v7503_v30 = vpop.eup %7502  ;;  %5832 = vst [vmem:[#allocation30 + $0x18] sm:$0xff] %v5829_v41 }
0x2bc1   :  { %v5582_v63 = vmul.f32 %v7503_v30, %v9255_v1  ;;  %v5787_v4 = vpop.permute.xlu0 %5786  ;;  %v5811_v1 = vsel %vm1462_vm3, %v5809_v15, %v5781_v9 }
0x2bc2   :  { %v5814_v21 = vsel %vm5813_vm10, %v5811_v1, %v5787_v4 }
0x2bc3   :  { %v5592_v7 = vmul.f32 %v9252_v29, %v5582_v63 }
0x2bc5   :  { %v5793_v46 = vpop.permute.xlu0 %5792  ;;  %v5602_v52 = vadd.f32 %v9261_v47, %v5592_v7 }
0x2bc6   :  { %v5816_v29 = vsel %vm1465_vm4, %v5814_v21, %v5793_v46 }
0x2bc7   :  { %v5759_v38 = vsel %vm5757_vm13, %v5602_v52, 0.0 }
0x2bc8   :  { %5761 = vst [vmem:[#allocation30 + $0x8] sm:$0xff] %v5759_v38 }
0x2bc9   :  { %v5799_v50 = vpop.permute.xlu0 %5798 }
0x2bca   :  { %7881 = shalt.err (!%p7878_p9)
}
0x2bcb   :  { %s7882_s27 = scalar_lea.hbm %s9417_s19, 512 }
0x2bcc   :  { %p7883_p10 = scmp.ne.s32.totalorder %s9417_s19, %s7882_s27  ;;  %p7886_p11 = scmp.lt.u32.totalorder %s7882_s27, %s9417_s19 }
0x2bce   :  { %p7888_p12 = pnand %p7886_p11, %p7883_p10 }
0x2bd0   :  { %7891 = shalt.err (!%p7888_p12)
}
0x2bd1   :  { %5903 = dma.vmem_to_hbm [thread:$0]  %s5898_s10, 512, %s9417_s19, [#allocation6], %s7975_s14, %s7975_s14, %s7976_s24   ;;  %v5819_v36 = vsel %vm5818_vm11, %v5816_v29, %v5799_v50  ;;  %v5834_v62 = vpop.permute.xlu0 %5833  ;;  %v9461_v13 = vld [vmem:[#allocation47_spill] sm:$0xff] }
0x2bd2   :  { %5821 = vst [vmem:[#allocation31] sm:$0xff] %v5819_v36  ;;  %v5875_v25 = vsel %vm730_vm2, %v9461_v13, %v5834_v62  ;;  %s7996_s12 = smov [#allocation31]  }
0x2bd3   :  { %s5909_s18 = sshll.u32 %s7996_s12, 4  ;;  %s5910_s18 = int_to_ptr.vmem [resolvable:$true] %s5909_s18 }
0x2bd4   :  { %s7892_s19 = scalar_lea.vmem %s5910_s18, 512  ;;  %p7897_p0 = scmp.lt.s32.totalorder %s5910_s18, %s5910_s18 }
0x2bd5   :  { %v5840_v47 = vpop.permute.xlu0 %5839  ;;  %p7893_p13 = scmp.ne.s32.totalorder %s5910_s18, %s7892_s19  ;;  %p7898_p1 = scmp.lt.s32.totalorder %s7892_s19, %s7892_s19 }
0x2bd6   :  { %v5877_v51 = vsel %vm642_vm0, %v5875_v25, %v5840_v47 }
0x2bd7   :  { %p7899_p2 = por %p7898_p1, %p7897_p0 }
0x2bd9   :  { %v5846_v58 = vpop.permute.xlu0 %5845  ;;  %p7900_p3 = pnand %p7899_p2, %p7893_p13 }
0x2bda   :  { %v5879_v23 = vsel %vm5808_vm9, %v5877_v51, %v5846_v58 }
0x2bdd   :  { %v5852_v28 = vpop.permute.xlu0 %5851 }
0x2bde   :  { %v5881_v32 = vsel %vm1462_vm3, %v5879_v23, %v5852_v28 }
0x2be1   :  { %v5858_v27 = vpop.permute.xlu0 %5857 }
0x2be2   :  { %v5883_v42 = vsel %vm5813_vm10, %v5881_v32, %v5858_v27 }
0x2be5   :  { %v5864_v11 = vpop.permute.xlu0 %5863 }
0x2be6   :  { %v5885_v5 = vsel %vm1465_vm4, %v5883_v42, %v5864_v11 }
0x2be9   :  { %v5870_v19 = vpop.permute.xlu0 %5869 }
0x2bea   :  { %v5887_v39 = vsel %vm5818_vm11, %v5885_v5, %v5870_v19 }
0x2beb   :  { %5890 = vst [vmem:[#allocation31 + $0x10] sm:$0xff] %v5887_v39 }
0x2bec   :  { %7903 = shalt.err (!%p7900_p3)
}
0x2bed   :  { %s7904_s0 = scalar_lea.hbm %s9418_s20, 512 }
0x2bee   :  { %p7905_p4 = scmp.ne.s32.totalorder %s9418_s20, %s7904_s0  ;;  %p7908_p5 = scmp.lt.u32.totalorder %s7904_s0, %s9418_s20 }
0x2bf0   :  { %p7910_p6 = pnand %p7908_p5, %p7905_p4 }
0x2bf2   :  { %7913 = shalt.err (!%p7910_p6)
}
0x2bf3   :  { %5915 = dma.vmem_to_hbm [thread:$0]  %s5910_s18, 512, %s9418_s20, [#allocation32], %s7975_s14, %s7975_s14, %s7976_s24   ;;  %v7997_v20 = vmov 1966171168  }
0x2bf4   :  { %s9462_s15 = sld [smem:[#allocation56_spill]]  ;;  %v5725_v3 = vunpack.c.l.s4 %v7997_v20  ;;  %s7998_s10 = smov [#allocation33]  }
0x2bf5   :  { %s5921_s26 = sshll.u32 %s7998_s10, 4  ;;  %s5922_s26 = int_to_ptr.vmem [resolvable:$true] %s5921_s26 }
0x2bf6   :  { %v5726_v53 = vunpack.c.0.s8 %v5725_v3  ;;  %s7914_s20 = scalar_lea.vmem %s5922_s26, 32  ;;  %p7919_p8 = scmp.lt.s32.totalorder %s5922_s26, %s5922_s26 }
0x2bf7   :  { %p7915_p7 = scmp.ne.s32.totalorder %s5922_s26, %s7914_s20  ;;  %p7920_p9 = scmp.lt.s32.totalorder %s7914_s20, %s7914_s20 }
0x2bf8   :  { %v5729_v22 = vsub.s32 %v5726_v53, %v8383_v14 }
0x2bf9   :  { %p7921_p10 = por %p7920_p9, %p7919_p8 }
0x2bfa   :  { %v6188_v61 = vld [vmem:[%s9462_s15] ss:$0 sm:$0xff] }
0x2bfb   :  { %p7922_p11 = pnand %p7921_p10, %p7915_p7 }
0x2c07   :  { %v5716_v24 = vpop.f32.mrb[68].mxu1 }
0x2c08   :  { %v5717_v31 = vadd.f32 %v6188_v61, %v5716_v24  ;;  %v6755_v26 = vpop.f32.mrb[69].mxu1 }
0x2c09   :  { %v5719_v40 = vpop.f32.mrb[70].mxu1 }
0x2c0a   :  { %7504 = vtanh.f32 %v5717_v31  ;;  %v6756_v60 = vpop.f32.mrb[71].mxu1 }
0x2c14   :  { %v7505_v18 = vpop.eup %7504 }
0x2c15   :  { %v5730_v10 = vrot.slane %v7505_v18, %v5729_v22 }
0x2c17   :  { %v5731_v35 = vcombine.high %v5730_v10, %v5730_v10  ;;  %6197 = vst.sshfl [vmem:[#allocation33] sm:$0x1 pattern:$0x73625140] %v5730_v10 }
0x2c19   :  { %6198 = vst.sshfl [vmem:[#allocation33 + $0x1] sm:$0x1 pattern:$0x73625140] %v5731_v35 }
0x2c1a   :  { %7925 = shalt.err (!%p7922_p11)
}
0x2c1b   :  { %s9463_s9 = sld [smem:[#allocation57_spill]] }
0x2c21   :  { %s7926_s16 = scalar_lea.hbm %s9463_s9, 32 }
0x2c22   :  { %p7927_p12 = scmp.ne.s32.totalorder %s9463_s9, %s7926_s16  ;;  %p7930_p13 = scmp.lt.u32.totalorder %s7926_s16, %s9463_s9 }
0x2c24   :  { %p7932_p0 = pnand %p7930_p13, %p7927_p12 }
0x2c26   :  { %7935 = shalt.err (!%p7932_p0)
}
0x2c27   :  { %5927 = dma.vmem_to_hbm [thread:$0]  %s5922_s26, 32, %s9463_s9, [#allocation32], %s7962_s28, %s7962_s28, %s7963_s29  }
0x2c28   :  { %7956 = dma.done.wait [#allocation6], 512  }
0x2c29   :  { %7957 = vsyncadd [#allocation6], 4294966784 }
0x2c2a   :  { %7958 = dma.done.wait [#allocation32], 544  }
0x2c2b   :  { %7959 = vsyncadd [#allocation32], 4294966752 }
0x2c2c   :  { %5937 = vsyncpa [#allocation5], 1 }
0x2c2d   :  { %5938 = vsyncpa [#allocation8], 1 }
0x2c2e   :  { %5939 = vsyncpa [#allocation11], 1 }
0x2c2f   :  { %5940 = vsyncpa [#allocation14], 1 }
0x2c30   :  { %5941 = vsyncpa [#allocation17], 1 }
0x2c31   :  { %5942 = vsyncpa [#allocation20], 1 }
0x2c32   :  { %5943 = vsyncpa [#allocation23], 1 }
0x2c33   :  { %5944 = vsyncpa [#allocation26], 1 }
0x2c34   :  { %5945 = vsyncpa [#allocation29], 1 }
0x2c35   :  { %5946 = vsyncpa [#allocation6], 1 }
0x2c36   :  { %5947 = vsyncpa [#allocation32], 1 }

</bundles_post_ra>
